<compile_context>
chip_gen: v7x
topology: tpu7x:2x2x1
jax: 0.10.0
libtpu: 0.0.40
codegen_flags: <defaults>
</compile_context>

<pallas_src>
import functools

import jax
import jax.numpy as jnp
from jax import lax
from jax.experimental import pallas as pl
from jax.experimental.pallas import tpu as pltpu


# ---------------- fused CBAM kernel ------------------------------------------
def cbam_kernel(x_ref, w1t_ref, b1_ref, w2t_ref, b2_ref, rc_ref, wsp_ref, bc_ref,
                o_ref, *, H, W):
    HW = H * W
    x = x_ref[...].astype(jnp.float32)                 # (Bt, C, HW), f32 compute
    Bt = x.shape[0]

    # ---- channel attention: avg/max pool + shared MLP (single MXU pass) ----
    avg_c = jnp.mean(x, axis=2)                        # (Bt, C)
    max_c = jnp.max(x, axis=2)                         # (Bt, C)
    v = jnp.concatenate([avg_c, max_c], axis=0)        # (2*Bt, C)
    h = jnp.dot(v, w1t_ref[...], preferred_element_type=jnp.float32) + b1_ref[...]
    h = jnp.maximum(h, 0.0)
    z = jnp.dot(h, w2t_ref[...], preferred_element_type=jnp.float32) + b2_ref[...]
    zz = z[:Bt] + z[Bt:]                               # (Bt, C)
    ca = 1.0 / (1.0 + jnp.exp(-zz))                    # exact sigmoid (tiny tensor)
    y = x * ca[:, :, None]                             # (Bt, C, HW), stays on-chip

    # ---- spatial attention: channel mean/max + 7x7 conv via lane rolls -----
    avg_s = jnp.mean(y, axis=1)                        # (Bt, HW)
    max_s = jnp.max(y, axis=1)                         # (Bt, HW)
    stacked = jnp.concatenate([avg_s, max_s], axis=0)  # (2*Bt, HW): ONE roll/tap

    rc = rc_ref[...]                                   # (2, HW) int32
    rows = rc[0:1, :]                                  # (1, HW) row index of pixel
    cols = rc[1:2, :]                                  # (1, HW) col index of pixel
    # First Bt sublanes carry the avg channel, last Bt the max channel.
    is_max_half = lax.broadcasted_iota(jnp.int32, (2 * Bt, 1), 0) >= Bt

    acc = jnp.zeros((2 * Bt, HW), jnp.float32)
    for ky in range(7):                                # fully unrolled, 49 taps
        for kx in range(7):
            t = ky * 7 + kx
            dy, dx = ky - 3, kx - 3
            s = dy * W + dx                            # flat offset of this tap
            shift = (-s) % HW                          # lane i reads flat[i + s]
            rolled = stacked if shift == 0 else pltpu.roll(stacked, shift, axis=1)
            wa = wsp_ref[t]                            # SMEM scalar (avg channel)
            wm = wsp_ref[49 + t]                       # SMEM scalar (max channel)
            w_sel = jnp.where(is_max_half, wm, wa)     # (2*Bt, 1)
            if dy == 0 and dx == 0:
                mult = w_sel                           # center tap: always valid
            else:
                # zero-padding edge mask: neighbor (row+dy, col+dx) inside image
                valid = ((rows >= -dy) & (rows < H - dy) &
                         (cols >= -dx) & (cols < W - dx))          # (1, HW)
                mult = jnp.where(valid, w_sel, 0.0)    # (2*Bt, HW)
            acc = acc + mult * rolled

    conv = acc[:Bt] + acc[Bt:] + bc_ref[0]             # (Bt, HW)
    # sigmoid with EUP approximate reciprocal (exp already runs on the EUP)
    sa = pl.reciprocal(1.0 + jnp.exp(-conv), approx=True)
    o_ref[...] = (y * sa[:, None, :]).astype(o_ref.dtype)   # lane-dense store


# ---------------- host-side helpers ------------------------------------------
def _device_kind():
    try:
        return jax.devices()[0].device_kind.lower()
    except Exception:
        return ""


def _pick_batch_tile(B, per_image_bytes, block_bytes_target, want_multi_step):
    """Largest divisor of B whose input block stays under the byte target.
    Prefers multiples of 8 (sublane tile) when that costs < 2x block size.
    If want_multi_step (v7x, 2 TensorCores) force at least 2 grid steps."""
    cap = max(1, block_bytes_target // max(per_image_bytes, 1))
    if want_multi_step and B >= 2:
        cap = min(cap, B // 2)
    cap = max(1, min(cap, B))
    divisors = [d for d in range(1, B + 1) if B % d == 0 and d <= cap]
    best = max(divisors)
    mult8 = [d for d in divisors if d % 8 == 0]
    if mult8 and max(mult8) * 2 >= best:
        best = max(mult8)
    return best


def cbam_forward(x, params, *, block_bytes_target=None, vmem_limit_bytes=None):
    B, C, H, W = x.shape
    HW = H * W
    Ch = params["w1"].shape[0]

    kind = _device_kind()
    is_v7 = ("v7" in kind) or ("tpu7" in kind)
    if block_bytes_target is None:
        # v7x: 64 MiB VMEM -> smaller blocks; v5e/v6e: 128 MiB -> ~8 MiB blocks.
        block_bytes_target = (4 << 20) if is_v7 else (8 << 20)
    if vmem_limit_bytes is None:
        vmem_limit_bytes = (48 << 20) if is_v7 else (64 << 20)

    xf = x.reshape(B, C, HW)
    per_image = C * HW * x.dtype.itemsize
    bt = _pick_batch_tile(B, per_image, block_bytes_target, want_multi_step=is_v7)

    w1t = jnp.transpose(params["w1"]).astype(jnp.float32)   # (C, Ch)
    w2t = jnp.transpose(params["w2"]).astype(jnp.float32)   # (Ch, C)
    b1r = params["b1"].reshape(1, Ch).astype(jnp.float32)
    b2r = params["b2"].reshape(1, C).astype(jnp.float32)
    wsp = params["wconv"].reshape(98).astype(jnp.float32)   # SMEM scalars
    bcv = params["bconv"].reshape(1).astype(jnp.float32)    # SMEM scalar

    idx = jnp.arange(HW, dtype=jnp.int32)
    rowcol = jnp.stack([idx // W, idx % W], axis=0)          # (2, HW) int32

    out = pl.pallas_call(
        functools.partial(cbam_kernel, H=H, W=W),
        out_shape=jax.ShapeDtypeStruct((B, C, HW), x.dtype),
        grid=(B // bt,),
        in_specs=[
            pl.BlockSpec((bt, C, HW), lambda b: (b, 0, 0)),
            pl.BlockSpec((C, Ch), lambda b: (0, 0)),
            pl.BlockSpec((1, Ch), lambda b: (0, 0)),
            pl.BlockSpec((Ch, C), lambda b: (0, 0)),
            pl.BlockSpec((1, C), lambda b: (0, 0)),
            pl.BlockSpec((2, HW), lambda b: (0, 0)),
            pl.BlockSpec(memory_space=pltpu.MemorySpace.SMEM),   # conv weights (98,)
            pl.BlockSpec(memory_space=pltpu.MemorySpace.SMEM),   # conv bias (1,)
        ],
        out_specs=pl.BlockSpec((bt, C, HW), lambda b: (b, 0, 0)),
        compiler_params=pltpu.CompilerParams(
            dimension_semantics=("parallel",),    # batch axis -> megacore on v7x
            vmem_limit_bytes=int(vmem_limit_bytes),
        ),
    )(xf, w1t, b1r, w2t, b2r, rowcol, wsp, bcv)
    return out.reshape(B, C, H, W)


# ---------------- pure-JAX reference (for validation only) -------------------
def cbam_reference(x, params):
    B, C, H, W = x.shape
    w1, b1 = params["w1"], params["b1"][:, 0]
    w2, b2 = params["w2"], params["b2"][:, 0]
    avg = x.mean(axis=(2, 3))
    mx = x.max(axis=(2, 3))

    def mlp(v):
        h = jnp.maximum(v @ w1.T + b1, 0.0)
        return h @ w2.T + b2

    ca = jax.nn.sigmoid(mlp(avg) + mlp(mx))
    x = x * ca[:, :, None, None]

    avg_s = x.mean(axis=1)
    max_s = x.max(axis=1)
    wc = params["wconv"].reshape(2, 7, 7)
    bc = params["bconv"][0]
    pa = jnp.pad(avg_s, ((0, 0), (3, 3), (3, 3)))
    pm = jnp.pad(max_s, ((0, 0), (3, 3), (3, 3)))
    acc = jnp.zeros((B, H, W), jnp.float32) + bc
    for dy in range(7):
        for dx in range(7):
            acc = acc + wc[0, dy, dx] * pa[:, dy:dy + H, dx:dx + W]
            acc = acc + wc[1, dy, dx] * pm[:, dy:dy + H, dx:dx + W]
    sa = jax.nn.sigmoid(acc)
    return x * sa[:, None, :, :]


def init_params(channels, key, ratio=8):
    hidden = channels // ratio
    k1, k2, k3, k4, k5, k6 = jax.random.split(key, 6)
    return {
        # Conv2d(C, C//ratio, 1) -> (hidden, C) matrix + bias
        "w1": (0.2 * jax.random.normal(k1, (hidden, channels))).astype(jnp.float32),
        "b1": (0.1 * jax.random.normal(k2, (hidden, 1))).astype(jnp.float32),
        # Conv2d(C//ratio, C, 1) -> (C, hidden) matrix + bias
        "w2": (0.2 * jax.random.normal(k3, (channels, hidden))).astype(jnp.float32),
        "b2": (0.1 * jax.random.normal(k4, (channels, 1))).astype(jnp.float32),
        # Conv2d(2, 1, kernel_size=7, padding=3): weight (1,2,7,7) flattened (98,)
        "wconv": (0.2 * jax.random.normal(k5, (2, 7, 7))).astype(jnp.float32).reshape(98),
        "bconv": (0.1 * jax.random.normal(k6, (1,))).astype(jnp.float32),
    }


if __name__ == "__main__":
    B, C, H, W = 2, 16, 16, 16        # C=16 so in_planes // ratio(8) = 2
    kx, kp = jax.random.split(jax.random.PRNGKey(0))
    x = jax.random.normal(kx, (B, C, H, W), jnp.float32)
    params = init_params(C, kp)

    ref = cbam_reference(x, params)

    out = jax.block_until_ready(cbam_forward(x, params))
    assert out.shape == (B, C, H, W)
    # tolerance covers the EUP approximate reciprocal in the spatial sigmoid
    assert jnp.allclose(out, ref, rtol=2e-2, atol=2e-2), "mismatch vs reference"

    # Multi-step grid (one image per block) must match the single-block result.
    out2 = jax.block_until_ready(cbam_forward(x, params, block_bytes_target=1))
    assert jnp.allclose(out2, ref, rtol=2e-2, atol=2e-2), "mismatch (grid > 1)"
    assert jnp.allclose(out, out2, rtol=1e-4, atol=1e-4), "grid tiling changed result"

    # bf16 I/O path (halves HBM traffic; all in-kernel accumulation stays f32).
    xb = x.astype(jnp.bfloat16)
    ref_b = cbam_reference(xb.astype(jnp.float32), params)
    out_b = jax.block_until_ready(cbam_forward(xb, params))
    assert out_b.dtype == jnp.bfloat16
    assert jnp.allclose(out_b.astype(jnp.float32), ref_b, rtol=5e-2, atol=5e-2), \
        "mismatch (bf16 I/O)"

    print("KERNEL_OK")
</pallas_src>

<mosaic_0001>
module attributes {stable_mosaic.version = 11 : i64} {
  func.func @cbam_kernel(%arg0: i32, %arg1: memref<2x16x256xf32, #tpu.memory_space<vmem>>, %arg2: memref<16x2xf32, #tpu.memory_space<vmem>>, %arg3: memref<1x2xf32, #tpu.memory_space<vmem>>, %arg4: memref<2x16xf32, #tpu.memory_space<vmem>>, %arg5: memref<1x16xf32, #tpu.memory_space<vmem>>, %arg6: memref<2x256xi32, #tpu.memory_space<vmem>>, %arg7: memref<98xf32, #tpu.memory_space<smem>>, %arg8: memref<1xf32, #tpu.memory_space<smem>>, %arg9: memref<2x16x256xf32, #tpu.memory_space<vmem>>) attributes {dimension_semantics = [#tpu.dimension_semantics<parallel>], iteration_bounds = array<i64: 1>, scalar_prefetch = 0 : i64, scratch_operands = 0 : i64, tpu.core_type = #tpu.core_type<tc>, window_params = [{transform_indices = @transform_0, window_bounds = array<i64: 2, 16, 256>}, {pipeline_mode = #tpu.pipeline_mode<synchronous>, transform_indices = @transform_1, window_bounds = array<i64: 16, 2>}, {pipeline_mode = #tpu.pipeline_mode<synchronous>, transform_indices = @transform_2, window_bounds = array<i64: 1, 2>}, {pipeline_mode = #tpu.pipeline_mode<synchronous>, transform_indices = @transform_3, window_bounds = array<i64: 2, 16>}, {pipeline_mode = #tpu.pipeline_mode<synchronous>, transform_indices = @transform_4, window_bounds = array<i64: 1, 16>}, {pipeline_mode = #tpu.pipeline_mode<synchronous>, transform_indices = @transform_5, window_bounds = array<i64: 2, 256>}, {transform_indices = @transform_6, window_bounds = array<i64: 98>}, {transform_indices = @transform_7, window_bounds = array<i64: 1>}, {transform_indices = @transform_8, window_bounds = array<i64: 2, 16, 256>}]} {
    %c0 = arith.constant 0 : index
    %c0_0 = arith.constant 0 : index
    %c0_1 = arith.constant 0 : index
    %0 = vector.load %arg1[%c0, %c0_0, %c0_1] : memref<2x16x256xf32, #tpu.memory_space<vmem>>, vector<2x16x256xf32>
    %cst = arith.constant dense<0.000000e+00> : vector<2x16xf32>
    %1 = vector.multi_reduction <add>, %0, %cst [2] : vector<2x16x256xf32> to vector<2x16xf32>
    %cst_2 = arith.constant 2.560000e+02 : f32
    %2 = vector.broadcast %cst_2 : f32 to vector<2x16xf32>
    %3 = arith.divf %1, %2 : vector<2x16xf32>
    %cst_3 = arith.constant dense<0xFF800000> : vector<2x16xf32>
    %4 = vector.multi_reduction <maximumf>, %0, %cst_3 [2] : vector<2x16x256xf32> to vector<2x16xf32>
    %5 = tpu.concatenate %3, %4 in 0 : vector<2x16xf32>, vector<2x16xf32> -> vector<4x16xf32>
    %c0_4 = arith.constant 0 : index
    %c0_5 = arith.constant 0 : index
    %6 = vector.load %arg2[%c0_4, %c0_5] : memref<16x2xf32, #tpu.memory_space<vmem>>, vector<16x2xf32>
    %cst_6 = arith.constant dense<0.000000e+00> : vector<4x2xf32>
    %7 = tpu.matmul %5, %6, %cst_6 {dimension_numbers = #tpu.dot_dimension_numbers<[1], [0], [0], [1], [0, 0, 1, 1], [], []>} : vector<4x16xf32>, vector<16x2xf32>, vector<4x2xf32> -> vector<4x2xf32>
    %c0_7 = arith.constant 0 : index
    %c0_8 = arith.constant 0 : index
    %8 = vector.load %arg3[%c0_7, %c0_8] : memref<1x2xf32, #tpu.memory_space<vmem>>, vector<1x2xf32>
    %9 = vector.broadcast %8 : vector<1x2xf32> to vector<4x2xf32>
    %10 = arith.addf %7, %9 : vector<4x2xf32>
    %cst_9 = arith.constant 0.000000e+00 : f32
    %11 = vector.broadcast %cst_9 : f32 to vector<4x2xf32>
    %12 = arith.maximumf %10, %11 : vector<4x2xf32>
    %c0_10 = arith.constant 0 : index
    %c0_11 = arith.constant 0 : index
    %13 = vector.load %arg4[%c0_10, %c0_11] : memref<2x16xf32, #tpu.memory_space<vmem>>, vector<2x16xf32>
    %cst_12 = arith.constant dense<0.000000e+00> : vector<4x16xf32>
    %14 = tpu.matmul %12, %13, %cst_12 {dimension_numbers = #tpu.dot_dimension_numbers<[1], [0], [0], [1], [0, 0, 1, 1], [], []>} : vector<4x2xf32>, vector<2x16xf32>, vector<4x16xf32> -> vector<4x16xf32>
    %c0_13 = arith.constant 0 : index
    %c0_14 = arith.constant 0 : index
    %15 = vector.load %arg5[%c0_13, %c0_14] : memref<1x16xf32, #tpu.memory_space<vmem>>, vector<1x16xf32>
    %16 = vector.broadcast %15 : vector<1x16xf32> to vector<4x16xf32>
    %17 = arith.addf %14, %16 : vector<4x16xf32>
    %18 = vector.extract_strided_slice %17 {offsets = [0, 0], sizes = [2, 16], strides = [1, 1]} : vector<4x16xf32> to vector<2x16xf32>
    %19 = vector.extract_strided_slice %17 {offsets = [2, 0], sizes = [2, 16], strides = [1, 1]} : vector<4x16xf32> to vector<2x16xf32>
    %20 = arith.addf %18, %19 : vector<2x16xf32>
    %cst_15 = arith.constant 0.000000e+00 : f32
    %21 = vector.broadcast %cst_15 : f32 to vector<2x16xf32>
    %22 = arith.subf %21, %20 : vector<2x16xf32>
    %23 = math.exp %22 : vector<2x16xf32>
    %cst_16 = arith.constant 1.000000e+00 : f32
    %24 = vector.broadcast %cst_16 : f32 to vector<2x16xf32>
    %25 = arith.addf %24, %23 : vector<2x16xf32>
    %cst_17 = arith.constant 1.000000e+00 : f32
    %26 = vector.broadcast %cst_17 : f32 to vector<2x16xf32>
    %27 = arith.divf %26, %25 : vector<2x16xf32>
    %28 = vector.shape_cast %27 : vector<2x16xf32> to vector<2x16x1xf32>
    %29 = vector.broadcast %28 : vector<2x16x1xf32> to vector<2x16x256xf32>
    %30 = arith.mulf %0, %29 : vector<2x16x256xf32>
    %cst_18 = arith.constant dense<0.000000e+00> : vector<2x256xf32>
    %31 = vector.multi_reduction <add>, %30, %cst_18 [1] : vector<2x16x256xf32> to vector<2x256xf32>
    %cst_19 = arith.constant 1.600000e+01 : f32
    %32 = vector.broadcast %cst_19 : f32 to vector<2x256xf32>
    %33 = arith.divf %31, %32 : vector<2x256xf32>
    %cst_20 = arith.constant dense<0xFF800000> : vector<2x256xf32>
    %34 = vector.multi_reduction <maximumf>, %30, %cst_20 [1] : vector<2x16x256xf32> to vector<2x256xf32>
    %35 = tpu.concatenate %33, %34 in 0 : vector<2x256xf32>, vector<2x256xf32> -> vector<4x256xf32>
    %c0_21 = arith.constant 0 : index
    %c0_22 = arith.constant 0 : index
    %36 = vector.load %arg6[%c0_21, %c0_22] : memref<2x256xi32, #tpu.memory_space<vmem>>, vector<2x256xi32>
    %37 = vector.extract_strided_slice %36 {offsets = [0, 0], sizes = [1, 256], strides = [1, 1]} : vector<2x256xi32> to vector<1x256xi32>
    %38 = vector.extract_strided_slice %36 {offsets = [1, 0], sizes = [1, 256], strides = [1, 1]} : vector<2x256xi32> to vector<1x256xi32>
    %39 = tpu.iota {dimensions = array<i32: 0>} : vector<4x1xi32>
    %c2_i32 = arith.constant 2 : i32
    %40 = vector.broadcast %c2_i32 : i32 to vector<4x1xi32>
    %41 = arith.cmpi sge, %39, %40 : vector<4x1xi32>
    %cst_23 = arith.constant 0.000000e+00 : f32
    %42 = vector.broadcast %cst_23 : f32 to vector<4x256xf32>
    %c51_i32 = arith.constant 51 : i32
    %43 = tpu.dynamic_rotate %35 by %c51_i32 dim 1 : vector<4x256xf32>, i32 -> vector<4x256xf32>
    %c0_24 = arith.constant 0 : index
    %44 = memref.load %arg7[%c0_24] : memref<98xf32, #tpu.memory_space<smem>>
    %c49 = arith.constant 49 : index
    %45 = memref.load %arg7[%c49] : memref<98xf32, #tpu.memory_space<smem>>
    %46 = vector.broadcast %45 : f32 to vector<4x1xf32>
    %47 = vector.broadcast %44 : f32 to vector<4x1xf32>
    %48 = arith.select %41, %46, %47 : vector<4x1xi1>, vector<4x1xf32>
    %c3_i32 = arith.constant 3 : i32
    %49 = vector.broadcast %c3_i32 : i32 to vector<1x256xi32>
    %50 = arith.cmpi sge, %37, %49 : vector<1x256xi32>
    %c19_i32 = arith.constant 19 : i32
    %51 = vector.broadcast %c19_i32 : i32 to vector<1x256xi32>
    %52 = arith.cmpi slt, %37, %51 : vector<1x256xi32>
    %53 = arith.andi %50, %52 : vector<1x256xi1>
    %c3_i32_25 = arith.constant 3 : i32
    %54 = vector.broadcast %c3_i32_25 : i32 to vector<1x256xi32>
    %55 = arith.cmpi sge, %38, %54 : vector<1x256xi32>
    %56 = arith.andi %53, %55 : vector<1x256xi1>
    %c19_i32_26 = arith.constant 19 : i32
    %57 = vector.broadcast %c19_i32_26 : i32 to vector<1x256xi32>
    %58 = arith.cmpi slt, %38, %57 : vector<1x256xi32>
    %59 = arith.andi %56, %58 : vector<1x256xi1>
    %cst_27 = arith.constant 0.000000e+00 : f32
    %60 = vector.shape_cast %59 : vector<1x256xi1> to vector<1x256xi1>
    %61 = vector.broadcast %60 : vector<1x256xi1> to vector<4x256xi1>
    %62 = vector.shape_cast %48 : vector<4x1xf32> to vector<4x1xf32>
    %63 = vector.broadcast %62 : vector<4x1xf32> to vector<4x256xf32>
    %64 = vector.broadcast %cst_27 : f32 to vector<4x256xf32>
    %65 = arith.select %61, %63, %64 : vector<4x256xi1>, vector<4x256xf32>
    %66 = arith.mulf %65, %43 : vector<4x256xf32>
    %67 = arith.addf %42, %66 : vector<4x256xf32>
    %c50_i32 = arith.constant 50 : i32
    %68 = tpu.dynamic_rotate %35 by %c50_i32 dim 1 : vector<4x256xf32>, i32 -> vector<4x256xf32>
    %c1 = arith.constant 1 : index
    %69 = memref.load %arg7[%c1] : memref<98xf32, #tpu.memory_space<smem>>
    %c50 = arith.constant 50 : index
    %70 = memref.load %arg7[%c50] : memref<98xf32, #tpu.memory_space<smem>>
    %71 = vector.broadcast %70 : f32 to vector<4x1xf32>
    %72 = vector.broadcast %69 : f32 to vector<4x1xf32>
    %73 = arith.select %41, %71, %72 : vector<4x1xi1>, vector<4x1xf32>
    %c3_i32_28 = arith.constant 3 : i32
    %74 = vector.broadcast %c3_i32_28 : i32 to vector<1x256xi32>
    %75 = arith.cmpi sge, %37, %74 : vector<1x256xi32>
    %c19_i32_29 = arith.constant 19 : i32
    %76 = vector.broadcast %c19_i32_29 : i32 to vector<1x256xi32>
    %77 = arith.cmpi slt, %37, %76 : vector<1x256xi32>
    %78 = arith.andi %75, %77 : vector<1x256xi1>
    %c2_i32_30 = arith.constant 2 : i32
    %79 = vector.broadcast %c2_i32_30 : i32 to vector<1x256xi32>
    %80 = arith.cmpi sge, %38, %79 : vector<1x256xi32>
    %81 = arith.andi %78, %80 : vector<1x256xi1>
    %c18_i32 = arith.constant 18 : i32
    %82 = vector.broadcast %c18_i32 : i32 to vector<1x256xi32>
    %83 = arith.cmpi slt, %38, %82 : vector<1x256xi32>
    %84 = arith.andi %81, %83 : vector<1x256xi1>
    %cst_31 = arith.constant 0.000000e+00 : f32
    %85 = vector.shape_cast %84 : vector<1x256xi1> to vector<1x256xi1>
    %86 = vector.broadcast %85 : vector<1x256xi1> to vector<4x256xi1>
    %87 = vector.shape_cast %73 : vector<4x1xf32> to vector<4x1xf32>
    %88 = vector.broadcast %87 : vector<4x1xf32> to vector<4x256xf32>
    %89 = vector.broadcast %cst_31 : f32 to vector<4x256xf32>
    %90 = arith.select %86, %88, %89 : vector<4x256xi1>, vector<4x256xf32>
    %91 = arith.mulf %90, %68 : vector<4x256xf32>
    %92 = arith.addf %67, %91 : vector<4x256xf32>
    %c49_i32 = arith.constant 49 : i32
    %93 = tpu.dynamic_rotate %35 by %c49_i32 dim 1 : vector<4x256xf32>, i32 -> vector<4x256xf32>
    %c2 = arith.constant 2 : index
    %94 = memref.load %arg7[%c2] : memref<98xf32, #tpu.memory_space<smem>>
    %c51 = arith.constant 51 : index
    %95 = memref.load %arg7[%c51] : memref<98xf32, #tpu.memory_space<smem>>
    %96 = vector.broadcast %95 : f32 to vector<4x1xf32>
    %97 = vector.broadcast %94 : f32 to vector<4x1xf32>
    %98 = arith.select %41, %96, %97 : vector<4x1xi1>, vector<4x1xf32>
    %c3_i32_32 = arith.constant 3 : i32
    %99 = vector.broadcast %c3_i32_32 : i32 to vector<1x256xi32>
    %100 = arith.cmpi sge, %37, %99 : vector<1x256xi32>
    %c19_i32_33 = arith.constant 19 : i32
    %101 = vector.broadcast %c19_i32_33 : i32 to vector<1x256xi32>
    %102 = arith.cmpi slt, %37, %101 : vector<1x256xi32>
    %103 = arith.andi %100, %102 : vector<1x256xi1>
    %c1_i32 = arith.constant 1 : i32
    %104 = vector.broadcast %c1_i32 : i32 to vector<1x256xi32>
    %105 = arith.cmpi sge, %38, %104 : vector<1x256xi32>
    %106 = arith.andi %103, %105 : vector<1x256xi1>
    %c17_i32 = arith.constant 17 : i32
    %107 = vector.broadcast %c17_i32 : i32 to vector<1x256xi32>
    %108 = arith.cmpi slt, %38, %107 : vector<1x256xi32>
    %109 = arith.andi %106, %108 : vector<1x256xi1>
    %cst_34 = arith.constant 0.000000e+00 : f32
    %110 = vector.shape_cast %109 : vector<1x256xi1> to vector<1x256xi1>
    %111 = vector.broadcast %110 : vector<1x256xi1> to vector<4x256xi1>
    %112 = vector.shape_cast %98 : vector<4x1xf32> to vector<4x1xf32>
    %113 = vector.broadcast %112 : vector<4x1xf32> to vector<4x256xf32>
    %114 = vector.broadcast %cst_34 : f32 to vector<4x256xf32>
    %115 = arith.select %111, %113, %114 : vector<4x256xi1>, vector<4x256xf32>
    %116 = arith.mulf %115, %93 : vector<4x256xf32>
    %117 = arith.addf %92, %116 : vector<4x256xf32>
    %c48_i32 = arith.constant 48 : i32
    %118 = tpu.dynamic_rotate %35 by %c48_i32 dim 1 : vector<4x256xf32>, i32 -> vector<4x256xf32>
    %c3 = arith.constant 3 : index
    %119 = memref.load %arg7[%c3] : memref<98xf32, #tpu.memory_space<smem>>
    %c52 = arith.constant 52 : index
    %120 = memref.load %arg7[%c52] : memref<98xf32, #tpu.memory_space<smem>>
    %121 = vector.broadcast %120 : f32 to vector<4x1xf32>
    %122 = vector.broadcast %119 : f32 to vector<4x1xf32>
    %123 = arith.select %41, %121, %122 : vector<4x1xi1>, vector<4x1xf32>
    %c3_i32_35 = arith.constant 3 : i32
    %124 = vector.broadcast %c3_i32_35 : i32 to vector<1x256xi32>
    %125 = arith.cmpi sge, %37, %124 : vector<1x256xi32>
    %c19_i32_36 = arith.constant 19 : i32
    %126 = vector.broadcast %c19_i32_36 : i32 to vector<1x256xi32>
    %127 = arith.cmpi slt, %37, %126 : vector<1x256xi32>
    %128 = arith.andi %125, %127 : vector<1x256xi1>
    %c0_i32 = arith.constant 0 : i32
    %129 = vector.broadcast %c0_i32 : i32 to vector<1x256xi32>
    %130 = arith.cmpi sge, %38, %129 : vector<1x256xi32>
    %131 = arith.andi %128, %130 : vector<1x256xi1>
    %c16_i32 = arith.constant 16 : i32
    %132 = vector.broadcast %c16_i32 : i32 to vector<1x256xi32>
    %133 = arith.cmpi slt, %38, %132 : vector<1x256xi32>
    %134 = arith.andi %131, %133 : vector<1x256xi1>
    %cst_37 = arith.constant 0.000000e+00 : f32
    %135 = vector.shape_cast %134 : vector<1x256xi1> to vector<1x256xi1>
    %136 = vector.broadcast %135 : vector<1x256xi1> to vector<4x256xi1>
    %137 = vector.shape_cast %123 : vector<4x1xf32> to vector<4x1xf32>
    %138 = vector.broadcast %137 : vector<4x1xf32> to vector<4x256xf32>
    %139 = vector.broadcast %cst_37 : f32 to vector<4x256xf32>
    %140 = arith.select %136, %138, %139 : vector<4x256xi1>, vector<4x256xf32>
    %141 = arith.mulf %140, %118 : vector<4x256xf32>
    %142 = arith.addf %117, %141 : vector<4x256xf32>
    %c47_i32 = arith.constant 47 : i32
    %143 = tpu.dynamic_rotate %35 by %c47_i32 dim 1 : vector<4x256xf32>, i32 -> vector<4x256xf32>
    %c4 = arith.constant 4 : index
    %144 = memref.load %arg7[%c4] : memref<98xf32, #tpu.memory_space<smem>>
    %c53 = arith.constant 53 : index
    %145 = memref.load %arg7[%c53] : memref<98xf32, #tpu.memory_space<smem>>
    %146 = vector.broadcast %145 : f32 to vector<4x1xf32>
    %147 = vector.broadcast %144 : f32 to vector<4x1xf32>
    %148 = arith.select %41, %146, %147 : vector<4x1xi1>, vector<4x1xf32>
    %c3_i32_38 = arith.constant 3 : i32
    %149 = vector.broadcast %c3_i32_38 : i32 to vector<1x256xi32>
    %150 = arith.cmpi sge, %37, %149 : vector<1x256xi32>
    %c19_i32_39 = arith.constant 19 : i32
    %151 = vector.broadcast %c19_i32_39 : i32 to vector<1x256xi32>
    %152 = arith.cmpi slt, %37, %151 : vector<1x256xi32>
    %153 = arith.andi %150, %152 : vector<1x256xi1>
    %c-1_i32 = arith.constant -1 : i32
    %154 = vector.broadcast %c-1_i32 : i32 to vector<1x256xi32>
    %155 = arith.cmpi sge, %38, %154 : vector<1x256xi32>
    %156 = arith.andi %153, %155 : vector<1x256xi1>
    %c15_i32 = arith.constant 15 : i32
    %157 = vector.broadcast %c15_i32 : i32 to vector<1x256xi32>
    %158 = arith.cmpi slt, %38, %157 : vector<1x256xi32>
    %159 = arith.andi %156, %158 : vector<1x256xi1>
    %cst_40 = arith.constant 0.000000e+00 : f32
    %160 = vector.shape_cast %159 : vector<1x256xi1> to vector<1x256xi1>
    %161 = vector.broadcast %160 : vector<1x256xi1> to vector<4x256xi1>
    %162 = vector.shape_cast %148 : vector<4x1xf32> to vector<4x1xf32>
    %163 = vector.broadcast %162 : vector<4x1xf32> to vector<4x256xf32>
    %164 = vector.broadcast %cst_40 : f32 to vector<4x256xf32>
    %165 = arith.select %161, %163, %164 : vector<4x256xi1>, vector<4x256xf32>
    %166 = arith.mulf %165, %143 : vector<4x256xf32>
    %167 = arith.addf %142, %166 : vector<4x256xf32>
    %c46_i32 = arith.constant 46 : i32
    %168 = tpu.dynamic_rotate %35 by %c46_i32 dim 1 : vector<4x256xf32>, i32 -> vector<4x256xf32>
    %c5 = arith.constant 5 : index
    %169 = memref.load %arg7[%c5] : memref<98xf32, #tpu.memory_space<smem>>
    %c54 = arith.constant 54 : index
    %170 = memref.load %arg7[%c54] : memref<98xf32, #tpu.memory_space<smem>>
    %171 = vector.broadcast %170 : f32 to vector<4x1xf32>
    %172 = vector.broadcast %169 : f32 to vector<4x1xf32>
    %173 = arith.select %41, %171, %172 : vector<4x1xi1>, vector<4x1xf32>
    %c3_i32_41 = arith.constant 3 : i32
    %174 = vector.broadcast %c3_i32_41 : i32 to vector<1x256xi32>
    %175 = arith.cmpi sge, %37, %174 : vector<1x256xi32>
    %c19_i32_42 = arith.constant 19 : i32
    %176 = vector.broadcast %c19_i32_42 : i32 to vector<1x256xi32>
    %177 = arith.cmpi slt, %37, %176 : vector<1x256xi32>
    %178 = arith.andi %175, %177 : vector<1x256xi1>
    %c-2_i32 = arith.constant -2 : i32
    %179 = vector.broadcast %c-2_i32 : i32 to vector<1x256xi32>
    %180 = arith.cmpi sge, %38, %179 : vector<1x256xi32>
    %181 = arith.andi %178, %180 : vector<1x256xi1>
    %c14_i32 = arith.constant 14 : i32
    %182 = vector.broadcast %c14_i32 : i32 to vector<1x256xi32>
    %183 = arith.cmpi slt, %38, %182 : vector<1x256xi32>
    %184 = arith.andi %181, %183 : vector<1x256xi1>
    %cst_43 = arith.constant 0.000000e+00 : f32
    %185 = vector.shape_cast %184 : vector<1x256xi1> to vector<1x256xi1>
    %186 = vector.broadcast %185 : vector<1x256xi1> to vector<4x256xi1>
    %187 = vector.shape_cast %173 : vector<4x1xf32> to vector<4x1xf32>
    %188 = vector.broadcast %187 : vector<4x1xf32> to vector<4x256xf32>
    %189 = vector.broadcast %cst_43 : f32 to vector<4x256xf32>
    %190 = arith.select %186, %188, %189 : vector<4x256xi1>, vector<4x256xf32>
    %191 = arith.mulf %190, %168 : vector<4x256xf32>
    %192 = arith.addf %167, %191 : vector<4x256xf32>
    %c45_i32 = arith.constant 45 : i32
    %193 = tpu.dynamic_rotate %35 by %c45_i32 dim 1 : vector<4x256xf32>, i32 -> vector<4x256xf32>
    %c6 = arith.constant 6 : index
    %194 = memref.load %arg7[%c6] : memref<98xf32, #tpu.memory_space<smem>>
    %c55 = arith.constant 55 : index
    %195 = memref.load %arg7[%c55] : memref<98xf32, #tpu.memory_space<smem>>
    %196 = vector.broadcast %195 : f32 to vector<4x1xf32>
    %197 = vector.broadcast %194 : f32 to vector<4x1xf32>
    %198 = arith.select %41, %196, %197 : vector<4x1xi1>, vector<4x1xf32>
    %c3_i32_44 = arith.constant 3 : i32
    %199 = vector.broadcast %c3_i32_44 : i32 to vector<1x256xi32>
    %200 = arith.cmpi sge, %37, %199 : vector<1x256xi32>
    %c19_i32_45 = arith.constant 19 : i32
    %201 = vector.broadcast %c19_i32_45 : i32 to vector<1x256xi32>
    %202 = arith.cmpi slt, %37, %201 : vector<1x256xi32>
    %203 = arith.andi %200, %202 : vector<1x256xi1>
    %c-3_i32 = arith.constant -3 : i32
    %204 = vector.broadcast %c-3_i32 : i32 to vector<1x256xi32>
    %205 = arith.cmpi sge, %38, %204 : vector<1x256xi32>
    %206 = arith.andi %203, %205 : vector<1x256xi1>
    %c13_i32 = arith.constant 13 : i32
    %207 = vector.broadcast %c13_i32 : i32 to vector<1x256xi32>
    %208 = arith.cmpi slt, %38, %207 : vector<1x256xi32>
    %209 = arith.andi %206, %208 : vector<1x256xi1>
    %cst_46 = arith.constant 0.000000e+00 : f32
    %210 = vector.shape_cast %209 : vector<1x256xi1> to vector<1x256xi1>
    %211 = vector.broadcast %210 : vector<1x256xi1> to vector<4x256xi1>
    %212 = vector.shape_cast %198 : vector<4x1xf32> to vector<4x1xf32>
    %213 = vector.broadcast %212 : vector<4x1xf32> to vector<4x256xf32>
    %214 = vector.broadcast %cst_46 : f32 to vector<4x256xf32>
    %215 = arith.select %211, %213, %214 : vector<4x256xi1>, vector<4x256xf32>
    %216 = arith.mulf %215, %193 : vector<4x256xf32>
    %217 = arith.addf %192, %216 : vector<4x256xf32>
    %c35_i32 = arith.constant 35 : i32
    %218 = tpu.dynamic_rotate %35 by %c35_i32 dim 1 : vector<4x256xf32>, i32 -> vector<4x256xf32>
    %c7 = arith.constant 7 : index
    %219 = memref.load %arg7[%c7] : memref<98xf32, #tpu.memory_space<smem>>
    %c56 = arith.constant 56 : index
    %220 = memref.load %arg7[%c56] : memref<98xf32, #tpu.memory_space<smem>>
    %221 = vector.broadcast %220 : f32 to vector<4x1xf32>
    %222 = vector.broadcast %219 : f32 to vector<4x1xf32>
    %223 = arith.select %41, %221, %222 : vector<4x1xi1>, vector<4x1xf32>
    %c2_i32_47 = arith.constant 2 : i32
    %224 = vector.broadcast %c2_i32_47 : i32 to vector<1x256xi32>
    %225 = arith.cmpi sge, %37, %224 : vector<1x256xi32>
    %c18_i32_48 = arith.constant 18 : i32
    %226 = vector.broadcast %c18_i32_48 : i32 to vector<1x256xi32>
    %227 = arith.cmpi slt, %37, %226 : vector<1x256xi32>
    %228 = arith.andi %225, %227 : vector<1x256xi1>
    %c3_i32_49 = arith.constant 3 : i32
    %229 = vector.broadcast %c3_i32_49 : i32 to vector<1x256xi32>
    %230 = arith.cmpi sge, %38, %229 : vector<1x256xi32>
    %231 = arith.andi %228, %230 : vector<1x256xi1>
    %c19_i32_50 = arith.constant 19 : i32
    %232 = vector.broadcast %c19_i32_50 : i32 to vector<1x256xi32>
    %233 = arith.cmpi slt, %38, %232 : vector<1x256xi32>
    %234 = arith.andi %231, %233 : vector<1x256xi1>
    %cst_51 = arith.constant 0.000000e+00 : f32
    %235 = vector.shape_cast %234 : vector<1x256xi1> to vector<1x256xi1>
    %236 = vector.broadcast %235 : vector<1x256xi1> to vector<4x256xi1>
    %237 = vector.shape_cast %223 : vector<4x1xf32> to vector<4x1xf32>
    %238 = vector.broadcast %237 : vector<4x1xf32> to vector<4x256xf32>
    %239 = vector.broadcast %cst_51 : f32 to vector<4x256xf32>
    %240 = arith.select %236, %238, %239 : vector<4x256xi1>, vector<4x256xf32>
    %241 = arith.mulf %240, %218 : vector<4x256xf32>
    %242 = arith.addf %217, %241 : vector<4x256xf32>
    %c34_i32 = arith.constant 34 : i32
    %243 = tpu.dynamic_rotate %35 by %c34_i32 dim 1 : vector<4x256xf32>, i32 -> vector<4x256xf32>
    %c8 = arith.constant 8 : index
    %244 = memref.load %arg7[%c8] : memref<98xf32, #tpu.memory_space<smem>>
    %c57 = arith.constant 57 : index
    %245 = memref.load %arg7[%c57] : memref<98xf32, #tpu.memory_space<smem>>
    %246 = vector.broadcast %245 : f32 to vector<4x1xf32>
    %247 = vector.broadcast %244 : f32 to vector<4x1xf32>
    %248 = arith.select %41, %246, %247 : vector<4x1xi1>, vector<4x1xf32>
    %c2_i32_52 = arith.constant 2 : i32
    %249 = vector.broadcast %c2_i32_52 : i32 to vector<1x256xi32>
    %250 = arith.cmpi sge, %37, %249 : vector<1x256xi32>
    %c18_i32_53 = arith.constant 18 : i32
    %251 = vector.broadcast %c18_i32_53 : i32 to vector<1x256xi32>
    %252 = arith.cmpi slt, %37, %251 : vector<1x256xi32>
    %253 = arith.andi %250, %252 : vector<1x256xi1>
    %c2_i32_54 = arith.constant 2 : i32
    %254 = vector.broadcast %c2_i32_54 : i32 to vector<1x256xi32>
    %255 = arith.cmpi sge, %38, %254 : vector<1x256xi32>
    %256 = arith.andi %253, %255 : vector<1x256xi1>
    %c18_i32_55 = arith.constant 18 : i32
    %257 = vector.broadcast %c18_i32_55 : i32 to vector<1x256xi32>
    %258 = arith.cmpi slt, %38, %257 : vector<1x256xi32>
    %259 = arith.andi %256, %258 : vector<1x256xi1>
    %cst_56 = arith.constant 0.000000e+00 : f32
    %260 = vector.shape_cast %259 : vector<1x256xi1> to vector<1x256xi1>
    %261 = vector.broadcast %260 : vector<1x256xi1> to vector<4x256xi1>
    %262 = vector.shape_cast %248 : vector<4x1xf32> to vector<4x1xf32>
    %263 = vector.broadcast %262 : vector<4x1xf32> to vector<4x256xf32>
    %264 = vector.broadcast %cst_56 : f32 to vector<4x256xf32>
    %265 = arith.select %261, %263, %264 : vector<4x256xi1>, vector<4x256xf32>
    %266 = arith.mulf %265, %243 : vector<4x256xf32>
    %267 = arith.addf %242, %266 : vector<4x256xf32>
    %c33_i32 = arith.constant 33 : i32
    %268 = tpu.dynamic_rotate %35 by %c33_i32 dim 1 : vector<4x256xf32>, i32 -> vector<4x256xf32>
    %c9 = arith.constant 9 : index
    %269 = memref.load %arg7[%c9] : memref<98xf32, #tpu.memory_space<smem>>
    %c58 = arith.constant 58 : index
    %270 = memref.load %arg7[%c58] : memref<98xf32, #tpu.memory_space<smem>>
    %271 = vector.broadcast %270 : f32 to vector<4x1xf32>
    %272 = vector.broadcast %269 : f32 to vector<4x1xf32>
    %273 = arith.select %41, %271, %272 : vector<4x1xi1>, vector<4x1xf32>
    %c2_i32_57 = arith.constant 2 : i32
    %274 = vector.broadcast %c2_i32_57 : i32 to vector<1x256xi32>
    %275 = arith.cmpi sge, %37, %274 : vector<1x256xi32>
    %c18_i32_58 = arith.constant 18 : i32
    %276 = vector.broadcast %c18_i32_58 : i32 to vector<1x256xi32>
    %277 = arith.cmpi slt, %37, %276 : vector<1x256xi32>
    %278 = arith.andi %275, %277 : vector<1x256xi1>
    %c1_i32_59 = arith.constant 1 : i32
    %279 = vector.broadcast %c1_i32_59 : i32 to vector<1x256xi32>
    %280 = arith.cmpi sge, %38, %279 : vector<1x256xi32>
    %281 = arith.andi %278, %280 : vector<1x256xi1>
    %c17_i32_60 = arith.constant 17 : i32
    %282 = vector.broadcast %c17_i32_60 : i32 to vector<1x256xi32>
    %283 = arith.cmpi slt, %38, %282 : vector<1x256xi32>
    %284 = arith.andi %281, %283 : vector<1x256xi1>
    %cst_61 = arith.constant 0.000000e+00 : f32
    %285 = vector.shape_cast %284 : vector<1x256xi1> to vector<1x256xi1>
    %286 = vector.broadcast %285 : vector<1x256xi1> to vector<4x256xi1>
    %287 = vector.shape_cast %273 : vector<4x1xf32> to vector<4x1xf32>
    %288 = vector.broadcast %287 : vector<4x1xf32> to vector<4x256xf32>
    %289 = vector.broadcast %cst_61 : f32 to vector<4x256xf32>
    %290 = arith.select %286, %288, %289 : vector<4x256xi1>, vector<4x256xf32>
    %291 = arith.mulf %290, %268 : vector<4x256xf32>
    %292 = arith.addf %267, %291 : vector<4x256xf32>
    %c32_i32 = arith.constant 32 : i32
    %293 = tpu.dynamic_rotate %35 by %c32_i32 dim 1 : vector<4x256xf32>, i32 -> vector<4x256xf32>
    %c10 = arith.constant 10 : index
    %294 = memref.load %arg7[%c10] : memref<98xf32, #tpu.memory_space<smem>>
    %c59 = arith.constant 59 : index
    %295 = memref.load %arg7[%c59] : memref<98xf32, #tpu.memory_space<smem>>
    %296 = vector.broadcast %295 : f32 to vector<4x1xf32>
    %297 = vector.broadcast %294 : f32 to vector<4x1xf32>
    %298 = arith.select %41, %296, %297 : vector<4x1xi1>, vector<4x1xf32>
    %c2_i32_62 = arith.constant 2 : i32
    %299 = vector.broadcast %c2_i32_62 : i32 to vector<1x256xi32>
    %300 = arith.cmpi sge, %37, %299 : vector<1x256xi32>
    %c18_i32_63 = arith.constant 18 : i32
    %301 = vector.broadcast %c18_i32_63 : i32 to vector<1x256xi32>
    %302 = arith.cmpi slt, %37, %301 : vector<1x256xi32>
    %303 = arith.andi %300, %302 : vector<1x256xi1>
    %c0_i32_64 = arith.constant 0 : i32
    %304 = vector.broadcast %c0_i32_64 : i32 to vector<1x256xi32>
    %305 = arith.cmpi sge, %38, %304 : vector<1x256xi32>
    %306 = arith.andi %303, %305 : vector<1x256xi1>
    %c16_i32_65 = arith.constant 16 : i32
    %307 = vector.broadcast %c16_i32_65 : i32 to vector<1x256xi32>
    %308 = arith.cmpi slt, %38, %307 : vector<1x256xi32>
    %309 = arith.andi %306, %308 : vector<1x256xi1>
    %cst_66 = arith.constant 0.000000e+00 : f32
    %310 = vector.shape_cast %309 : vector<1x256xi1> to vector<1x256xi1>
    %311 = vector.broadcast %310 : vector<1x256xi1> to vector<4x256xi1>
    %312 = vector.shape_cast %298 : vector<4x1xf32> to vector<4x1xf32>
    %313 = vector.broadcast %312 : vector<4x1xf32> to vector<4x256xf32>
    %314 = vector.broadcast %cst_66 : f32 to vector<4x256xf32>
    %315 = arith.select %311, %313, %314 : vector<4x256xi1>, vector<4x256xf32>
    %316 = arith.mulf %315, %293 : vector<4x256xf32>
    %317 = arith.addf %292, %316 : vector<4x256xf32>
    %c31_i32 = arith.constant 31 : i32
    %318 = tpu.dynamic_rotate %35 by %c31_i32 dim 1 : vector<4x256xf32>, i32 -> vector<4x256xf32>
    %c11 = arith.constant 11 : index
    %319 = memref.load %arg7[%c11] : memref<98xf32, #tpu.memory_space<smem>>
    %c60 = arith.constant 60 : index
    %320 = memref.load %arg7[%c60] : memref<98xf32, #tpu.memory_space<smem>>
    %321 = vector.broadcast %320 : f32 to vector<4x1xf32>
    %322 = vector.broadcast %319 : f32 to vector<4x1xf32>
    %323 = arith.select %41, %321, %322 : vector<4x1xi1>, vector<4x1xf32>
    %c2_i32_67 = arith.constant 2 : i32
    %324 = vector.broadcast %c2_i32_67 : i32 to vector<1x256xi32>
    %325 = arith.cmpi sge, %37, %324 : vector<1x256xi32>
    %c18_i32_68 = arith.constant 18 : i32
    %326 = vector.broadcast %c18_i32_68 : i32 to vector<1x256xi32>
    %327 = arith.cmpi slt, %37, %326 : vector<1x256xi32>
    %328 = arith.andi %325, %327 : vector<1x256xi1>
    %c-1_i32_69 = arith.constant -1 : i32
    %329 = vector.broadcast %c-1_i32_69 : i32 to vector<1x256xi32>
    %330 = arith.cmpi sge, %38, %329 : vector<1x256xi32>
    %331 = arith.andi %328, %330 : vector<1x256xi1>
    %c15_i32_70 = arith.constant 15 : i32
    %332 = vector.broadcast %c15_i32_70 : i32 to vector<1x256xi32>
    %333 = arith.cmpi slt, %38, %332 : vector<1x256xi32>
    %334 = arith.andi %331, %333 : vector<1x256xi1>
    %cst_71 = arith.constant 0.000000e+00 : f32
    %335 = vector.shape_cast %334 : vector<1x256xi1> to vector<1x256xi1>
    %336 = vector.broadcast %335 : vector<1x256xi1> to vector<4x256xi1>
    %337 = vector.shape_cast %323 : vector<4x1xf32> to vector<4x1xf32>
    %338 = vector.broadcast %337 : vector<4x1xf32> to vector<4x256xf32>
    %339 = vector.broadcast %cst_71 : f32 to vector<4x256xf32>
    %340 = arith.select %336, %338, %339 : vector<4x256xi1>, vector<4x256xf32>
    %341 = arith.mulf %340, %318 : vector<4x256xf32>
    %342 = arith.addf %317, %341 : vector<4x256xf32>
    %c30_i32 = arith.constant 30 : i32
    %343 = tpu.dynamic_rotate %35 by %c30_i32 dim 1 : vector<4x256xf32>, i32 -> vector<4x256xf32>
    %c12 = arith.constant 12 : index
    %344 = memref.load %arg7[%c12] : memref<98xf32, #tpu.memory_space<smem>>
    %c61 = arith.constant 61 : index
    %345 = memref.load %arg7[%c61] : memref<98xf32, #tpu.memory_space<smem>>
    %346 = vector.broadcast %345 : f32 to vector<4x1xf32>
    %347 = vector.broadcast %344 : f32 to vector<4x1xf32>
    %348 = arith.select %41, %346, %347 : vector<4x1xi1>, vector<4x1xf32>
    %c2_i32_72 = arith.constant 2 : i32
    %349 = vector.broadcast %c2_i32_72 : i32 to vector<1x256xi32>
    %350 = arith.cmpi sge, %37, %349 : vector<1x256xi32>
    %c18_i32_73 = arith.constant 18 : i32
    %351 = vector.broadcast %c18_i32_73 : i32 to vector<1x256xi32>
    %352 = arith.cmpi slt, %37, %351 : vector<1x256xi32>
    %353 = arith.andi %350, %352 : vector<1x256xi1>
    %c-2_i32_74 = arith.constant -2 : i32
    %354 = vector.broadcast %c-2_i32_74 : i32 to vector<1x256xi32>
    %355 = arith.cmpi sge, %38, %354 : vector<1x256xi32>
    %356 = arith.andi %353, %355 : vector<1x256xi1>
    %c14_i32_75 = arith.constant 14 : i32
    %357 = vector.broadcast %c14_i32_75 : i32 to vector<1x256xi32>
    %358 = arith.cmpi slt, %38, %357 : vector<1x256xi32>
    %359 = arith.andi %356, %358 : vector<1x256xi1>
    %cst_76 = arith.constant 0.000000e+00 : f32
    %360 = vector.shape_cast %359 : vector<1x256xi1> to vector<1x256xi1>
    %361 = vector.broadcast %360 : vector<1x256xi1> to vector<4x256xi1>
    %362 = vector.shape_cast %348 : vector<4x1xf32> to vector<4x1xf32>
    %363 = vector.broadcast %362 : vector<4x1xf32> to vector<4x256xf32>
    %364 = vector.broadcast %cst_76 : f32 to vector<4x256xf32>
    %365 = arith.select %361, %363, %364 : vector<4x256xi1>, vector<4x256xf32>
    %366 = arith.mulf %365, %343 : vector<4x256xf32>
    %367 = arith.addf %342, %366 : vector<4x256xf32>
    %c29_i32 = arith.constant 29 : i32
    %368 = tpu.dynamic_rotate %35 by %c29_i32 dim 1 : vector<4x256xf32>, i32 -> vector<4x256xf32>
    %c13 = arith.constant 13 : index
    %369 = memref.load %arg7[%c13] : memref<98xf32, #tpu.memory_space<smem>>
    %c62 = arith.constant 62 : index
    %370 = memref.load %arg7[%c62] : memref<98xf32, #tpu.memory_space<smem>>
    %371 = vector.broadcast %370 : f32 to vector<4x1xf32>
    %372 = vector.broadcast %369 : f32 to vector<4x1xf32>
    %373 = arith.select %41, %371, %372 : vector<4x1xi1>, vector<4x1xf32>
    %c2_i32_77 = arith.constant 2 : i32
    %374 = vector.broadcast %c2_i32_77 : i32 to vector<1x256xi32>
    %375 = arith.cmpi sge, %37, %374 : vector<1x256xi32>
    %c18_i32_78 = arith.constant 18 : i32
    %376 = vector.broadcast %c18_i32_78 : i32 to vector<1x256xi32>
    %377 = arith.cmpi slt, %37, %376 : vector<1x256xi32>
    %378 = arith.andi %375, %377 : vector<1x256xi1>
    %c-3_i32_79 = arith.constant -3 : i32
    %379 = vector.broadcast %c-3_i32_79 : i32 to vector<1x256xi32>
    %380 = arith.cmpi sge, %38, %379 : vector<1x256xi32>
    %381 = arith.andi %378, %380 : vector<1x256xi1>
    %c13_i32_80 = arith.constant 13 : i32
    %382 = vector.broadcast %c13_i32_80 : i32 to vector<1x256xi32>
    %383 = arith.cmpi slt, %38, %382 : vector<1x256xi32>
    %384 = arith.andi %381, %383 : vector<1x256xi1>
    %cst_81 = arith.constant 0.000000e+00 : f32
    %385 = vector.shape_cast %384 : vector<1x256xi1> to vector<1x256xi1>
    %386 = vector.broadcast %385 : vector<1x256xi1> to vector<4x256xi1>
    %387 = vector.shape_cast %373 : vector<4x1xf32> to vector<4x1xf32>
    %388 = vector.broadcast %387 : vector<4x1xf32> to vector<4x256xf32>
    %389 = vector.broadcast %cst_81 : f32 to vector<4x256xf32>
    %390 = arith.select %386, %388, %389 : vector<4x256xi1>, vector<4x256xf32>
    %391 = arith.mulf %390, %368 : vector<4x256xf32>
    %392 = arith.addf %367, %391 : vector<4x256xf32>
    %c19_i32_82 = arith.constant 19 : i32
    %393 = tpu.dynamic_rotate %35 by %c19_i32_82 dim 1 : vector<4x256xf32>, i32 -> vector<4x256xf32>
    %c14 = arith.constant 14 : index
    %394 = memref.load %arg7[%c14] : memref<98xf32, #tpu.memory_space<smem>>
    %c63 = arith.constant 63 : index
    %395 = memref.load %arg7[%c63] : memref<98xf32, #tpu.memory_space<smem>>
    %396 = vector.broadcast %395 : f32 to vector<4x1xf32>
    %397 = vector.broadcast %394 : f32 to vector<4x1xf32>
    %398 = arith.select %41, %396, %397 : vector<4x1xi1>, vector<4x1xf32>
    %c1_i32_83 = arith.constant 1 : i32
    %399 = vector.broadcast %c1_i32_83 : i32 to vector<1x256xi32>
    %400 = arith.cmpi sge, %37, %399 : vector<1x256xi32>
    %c17_i32_84 = arith.constant 17 : i32
    %401 = vector.broadcast %c17_i32_84 : i32 to vector<1x256xi32>
    %402 = arith.cmpi slt, %37, %401 : vector<1x256xi32>
    %403 = arith.andi %400, %402 : vector<1x256xi1>
    %c3_i32_85 = arith.constant 3 : i32
    %404 = vector.broadcast %c3_i32_85 : i32 to vector<1x256xi32>
    %405 = arith.cmpi sge, %38, %404 : vector<1x256xi32>
    %406 = arith.andi %403, %405 : vector<1x256xi1>
    %c19_i32_86 = arith.constant 19 : i32
    %407 = vector.broadcast %c19_i32_86 : i32 to vector<1x256xi32>
    %408 = arith.cmpi slt, %38, %407 : vector<1x256xi32>
    %409 = arith.andi %406, %408 : vector<1x256xi1>
    %cst_87 = arith.constant 0.000000e+00 : f32
    %410 = vector.shape_cast %409 : vector<1x256xi1> to vector<1x256xi1>
    %411 = vector.broadcast %410 : vector<1x256xi1> to vector<4x256xi1>
    %412 = vector.shape_cast %398 : vector<4x1xf32> to vector<4x1xf32>
    %413 = vector.broadcast %412 : vector<4x1xf32> to vector<4x256xf32>
    %414 = vector.broadcast %cst_87 : f32 to vector<4x256xf32>
    %415 = arith.select %411, %413, %414 : vector<4x256xi1>, vector<4x256xf32>
    %416 = arith.mulf %415, %393 : vector<4x256xf32>
    %417 = arith.addf %392, %416 : vector<4x256xf32>
    %c18_i32_88 = arith.constant 18 : i32
    %418 = tpu.dynamic_rotate %35 by %c18_i32_88 dim 1 : vector<4x256xf32>, i32 -> vector<4x256xf32>
    %c15 = arith.constant 15 : index
    %419 = memref.load %arg7[%c15] : memref<98xf32, #tpu.memory_space<smem>>
    %c64 = arith.constant 64 : index
    %420 = memref.load %arg7[%c64] : memref<98xf32, #tpu.memory_space<smem>>
    %421 = vector.broadcast %420 : f32 to vector<4x1xf32>
    %422 = vector.broadcast %419 : f32 to vector<4x1xf32>
    %423 = arith.select %41, %421, %422 : vector<4x1xi1>, vector<4x1xf32>
    %c1_i32_89 = arith.constant 1 : i32
    %424 = vector.broadcast %c1_i32_89 : i32 to vector<1x256xi32>
    %425 = arith.cmpi sge, %37, %424 : vector<1x256xi32>
    %c17_i32_90 = arith.constant 17 : i32
    %426 = vector.broadcast %c17_i32_90 : i32 to vector<1x256xi32>
    %427 = arith.cmpi slt, %37, %426 : vector<1x256xi32>
    %428 = arith.andi %425, %427 : vector<1x256xi1>
    %c2_i32_91 = arith.constant 2 : i32
    %429 = vector.broadcast %c2_i32_91 : i32 to vector<1x256xi32>
    %430 = arith.cmpi sge, %38, %429 : vector<1x256xi32>
    %431 = arith.andi %428, %430 : vector<1x256xi1>
    %c18_i32_92 = arith.constant 18 : i32
    %432 = vector.broadcast %c18_i32_92 : i32 to vector<1x256xi32>
    %433 = arith.cmpi slt, %38, %432 : vector<1x256xi32>
    %434 = arith.andi %431, %433 : vector<1x256xi1>
    %cst_93 = arith.constant 0.000000e+00 : f32
    %435 = vector.shape_cast %434 : vector<1x256xi1> to vector<1x256xi1>
    %436 = vector.broadcast %435 : vector<1x256xi1> to vector<4x256xi1>
    %437 = vector.shape_cast %423 : vector<4x1xf32> to vector<4x1xf32>
    %438 = vector.broadcast %437 : vector<4x1xf32> to vector<4x256xf32>
    %439 = vector.broadcast %cst_93 : f32 to vector<4x256xf32>
    %440 = arith.select %436, %438, %439 : vector<4x256xi1>, vector<4x256xf32>
    %441 = arith.mulf %440, %418 : vector<4x256xf32>
    %442 = arith.addf %417, %441 : vector<4x256xf32>
    %c17_i32_94 = arith.constant 17 : i32
    %443 = tpu.dynamic_rotate %35 by %c17_i32_94 dim 1 : vector<4x256xf32>, i32 -> vector<4x256xf32>
    %c16 = arith.constant 16 : index
    %444 = memref.load %arg7[%c16] : memref<98xf32, #tpu.memory_space<smem>>
    %c65 = arith.constant 65 : index
    %445 = memref.load %arg7[%c65] : memref<98xf32, #tpu.memory_space<smem>>
    %446 = vector.broadcast %445 : f32 to vector<4x1xf32>
    %447 = vector.broadcast %444 : f32 to vector<4x1xf32>
    %448 = arith.select %41, %446, %447 : vector<4x1xi1>, vector<4x1xf32>
    %c1_i32_95 = arith.constant 1 : i32
    %449 = vector.broadcast %c1_i32_95 : i32 to vector<1x256xi32>
    %450 = arith.cmpi sge, %37, %449 : vector<1x256xi32>
    %c17_i32_96 = arith.constant 17 : i32
    %451 = vector.broadcast %c17_i32_96 : i32 to vector<1x256xi32>
    %452 = arith.cmpi slt, %37, %451 : vector<1x256xi32>
    %453 = arith.andi %450, %452 : vector<1x256xi1>
    %c1_i32_97 = arith.constant 1 : i32
    %454 = vector.broadcast %c1_i32_97 : i32 to vector<1x256xi32>
    %455 = arith.cmpi sge, %38, %454 : vector<1x256xi32>
    %456 = arith.andi %453, %455 : vector<1x256xi1>
    %c17_i32_98 = arith.constant 17 : i32
    %457 = vector.broadcast %c17_i32_98 : i32 to vector<1x256xi32>
    %458 = arith.cmpi slt, %38, %457 : vector<1x256xi32>
    %459 = arith.andi %456, %458 : vector<1x256xi1>
    %cst_99 = arith.constant 0.000000e+00 : f32
    %460 = vector.shape_cast %459 : vector<1x256xi1> to vector<1x256xi1>
    %461 = vector.broadcast %460 : vector<1x256xi1> to vector<4x256xi1>
    %462 = vector.shape_cast %448 : vector<4x1xf32> to vector<4x1xf32>
    %463 = vector.broadcast %462 : vector<4x1xf32> to vector<4x256xf32>
    %464 = vector.broadcast %cst_99 : f32 to vector<4x256xf32>
    %465 = arith.select %461, %463, %464 : vector<4x256xi1>, vector<4x256xf32>
    %466 = arith.mulf %465, %443 : vector<4x256xf32>
    %467 = arith.addf %442, %466 : vector<4x256xf32>
    %c16_i32_100 = arith.constant 16 : i32
    %468 = tpu.dynamic_rotate %35 by %c16_i32_100 dim 1 : vector<4x256xf32>, i32 -> vector<4x256xf32>
    %c17 = arith.constant 17 : index
    %469 = memref.load %arg7[%c17] : memref<98xf32, #tpu.memory_space<smem>>
    %c66 = arith.constant 66 : index
    %470 = memref.load %arg7[%c66] : memref<98xf32, #tpu.memory_space<smem>>
    %471 = vector.broadcast %470 : f32 to vector<4x1xf32>
    %472 = vector.broadcast %469 : f32 to vector<4x1xf32>
    %473 = arith.select %41, %471, %472 : vector<4x1xi1>, vector<4x1xf32>
    %c1_i32_101 = arith.constant 1 : i32
    %474 = vector.broadcast %c1_i32_101 : i32 to vector<1x256xi32>
    %475 = arith.cmpi sge, %37, %474 : vector<1x256xi32>
    %c17_i32_102 = arith.constant 17 : i32
    %476 = vector.broadcast %c17_i32_102 : i32 to vector<1x256xi32>
    %477 = arith.cmpi slt, %37, %476 : vector<1x256xi32>
    %478 = arith.andi %475, %477 : vector<1x256xi1>
    %c0_i32_103 = arith.constant 0 : i32
    %479 = vector.broadcast %c0_i32_103 : i32 to vector<1x256xi32>
    %480 = arith.cmpi sge, %38, %479 : vector<1x256xi32>
    %481 = arith.andi %478, %480 : vector<1x256xi1>
    %c16_i32_104 = arith.constant 16 : i32
    %482 = vector.broadcast %c16_i32_104 : i32 to vector<1x256xi32>
    %483 = arith.cmpi slt, %38, %482 : vector<1x256xi32>
    %484 = arith.andi %481, %483 : vector<1x256xi1>
    %cst_105 = arith.constant 0.000000e+00 : f32
    %485 = vector.shape_cast %484 : vector<1x256xi1> to vector<1x256xi1>
    %486 = vector.broadcast %485 : vector<1x256xi1> to vector<4x256xi1>
    %487 = vector.shape_cast %473 : vector<4x1xf32> to vector<4x1xf32>
    %488 = vector.broadcast %487 : vector<4x1xf32> to vector<4x256xf32>
    %489 = vector.broadcast %cst_105 : f32 to vector<4x256xf32>
    %490 = arith.select %486, %488, %489 : vector<4x256xi1>, vector<4x256xf32>
    %491 = arith.mulf %490, %468 : vector<4x256xf32>
    %492 = arith.addf %467, %491 : vector<4x256xf32>
    %c15_i32_106 = arith.constant 15 : i32
    %493 = tpu.dynamic_rotate %35 by %c15_i32_106 dim 1 : vector<4x256xf32>, i32 -> vector<4x256xf32>
    %c18 = arith.constant 18 : index
    %494 = memref.load %arg7[%c18] : memref<98xf32, #tpu.memory_space<smem>>
    %c67 = arith.constant 67 : index
    %495 = memref.load %arg7[%c67] : memref<98xf32, #tpu.memory_space<smem>>
    %496 = vector.broadcast %495 : f32 to vector<4x1xf32>
    %497 = vector.broadcast %494 : f32 to vector<4x1xf32>
    %498 = arith.select %41, %496, %497 : vector<4x1xi1>, vector<4x1xf32>
    %c1_i32_107 = arith.constant 1 : i32
    %499 = vector.broadcast %c1_i32_107 : i32 to vector<1x256xi32>
    %500 = arith.cmpi sge, %37, %499 : vector<1x256xi32>
    %c17_i32_108 = arith.constant 17 : i32
    %501 = vector.broadcast %c17_i32_108 : i32 to vector<1x256xi32>
    %502 = arith.cmpi slt, %37, %501 : vector<1x256xi32>
    %503 = arith.andi %500, %502 : vector<1x256xi1>
    %c-1_i32_109 = arith.constant -1 : i32
    %504 = vector.broadcast %c-1_i32_109 : i32 to vector<1x256xi32>
    %505 = arith.cmpi sge, %38, %504 : vector<1x256xi32>
    %506 = arith.andi %503, %505 : vector<1x256xi1>
    %c15_i32_110 = arith.constant 15 : i32
    %507 = vector.broadcast %c15_i32_110 : i32 to vector<1x256xi32>
    %508 = arith.cmpi slt, %38, %507 : vector<1x256xi32>
    %509 = arith.andi %506, %508 : vector<1x256xi1>
    %cst_111 = arith.constant 0.000000e+00 : f32
    %510 = vector.shape_cast %509 : vector<1x256xi1> to vector<1x256xi1>
    %511 = vector.broadcast %510 : vector<1x256xi1> to vector<4x256xi1>
    %512 = vector.shape_cast %498 : vector<4x1xf32> to vector<4x1xf32>
    %513 = vector.broadcast %512 : vector<4x1xf32> to vector<4x256xf32>
    %514 = vector.broadcast %cst_111 : f32 to vector<4x256xf32>
    %515 = arith.select %511, %513, %514 : vector<4x256xi1>, vector<4x256xf32>
    %516 = arith.mulf %515, %493 : vector<4x256xf32>
    %517 = arith.addf %492, %516 : vector<4x256xf32>
    %c14_i32_112 = arith.constant 14 : i32
    %518 = tpu.dynamic_rotate %35 by %c14_i32_112 dim 1 : vector<4x256xf32>, i32 -> vector<4x256xf32>
    %c19 = arith.constant 19 : index
    %519 = memref.load %arg7[%c19] : memref<98xf32, #tpu.memory_space<smem>>
    %c68 = arith.constant 68 : index
    %520 = memref.load %arg7[%c68] : memref<98xf32, #tpu.memory_space<smem>>
    %521 = vector.broadcast %520 : f32 to vector<4x1xf32>
    %522 = vector.broadcast %519 : f32 to vector<4x1xf32>
    %523 = arith.select %41, %521, %522 : vector<4x1xi1>, vector<4x1xf32>
    %c1_i32_113 = arith.constant 1 : i32
    %524 = vector.broadcast %c1_i32_113 : i32 to vector<1x256xi32>
    %525 = arith.cmpi sge, %37, %524 : vector<1x256xi32>
    %c17_i32_114 = arith.constant 17 : i32
    %526 = vector.broadcast %c17_i32_114 : i32 to vector<1x256xi32>
    %527 = arith.cmpi slt, %37, %526 : vector<1x256xi32>
    %528 = arith.andi %525, %527 : vector<1x256xi1>
    %c-2_i32_115 = arith.constant -2 : i32
    %529 = vector.broadcast %c-2_i32_115 : i32 to vector<1x256xi32>
    %530 = arith.cmpi sge, %38, %529 : vector<1x256xi32>
    %531 = arith.andi %528, %530 : vector<1x256xi1>
    %c14_i32_116 = arith.constant 14 : i32
    %532 = vector.broadcast %c14_i32_116 : i32 to vector<1x256xi32>
    %533 = arith.cmpi slt, %38, %532 : vector<1x256xi32>
    %534 = arith.andi %531, %533 : vector<1x256xi1>
    %cst_117 = arith.constant 0.000000e+00 : f32
    %535 = vector.shape_cast %534 : vector<1x256xi1> to vector<1x256xi1>
    %536 = vector.broadcast %535 : vector<1x256xi1> to vector<4x256xi1>
    %537 = vector.shape_cast %523 : vector<4x1xf32> to vector<4x1xf32>
    %538 = vector.broadcast %537 : vector<4x1xf32> to vector<4x256xf32>
    %539 = vector.broadcast %cst_117 : f32 to vector<4x256xf32>
    %540 = arith.select %536, %538, %539 : vector<4x256xi1>, vector<4x256xf32>
    %541 = arith.mulf %540, %518 : vector<4x256xf32>
    %542 = arith.addf %517, %541 : vector<4x256xf32>
    %c13_i32_118 = arith.constant 13 : i32
    %543 = tpu.dynamic_rotate %35 by %c13_i32_118 dim 1 : vector<4x256xf32>, i32 -> vector<4x256xf32>
    %c20 = arith.constant 20 : index
    %544 = memref.load %arg7[%c20] : memref<98xf32, #tpu.memory_space<smem>>
    %c69 = arith.constant 69 : index
    %545 = memref.load %arg7[%c69] : memref<98xf32, #tpu.memory_space<smem>>
    %546 = vector.broadcast %545 : f32 to vector<4x1xf32>
    %547 = vector.broadcast %544 : f32 to vector<4x1xf32>
    %548 = arith.select %41, %546, %547 : vector<4x1xi1>, vector<4x1xf32>
    %c1_i32_119 = arith.constant 1 : i32
    %549 = vector.broadcast %c1_i32_119 : i32 to vector<1x256xi32>
    %550 = arith.cmpi sge, %37, %549 : vector<1x256xi32>
    %c17_i32_120 = arith.constant 17 : i32
    %551 = vector.broadcast %c17_i32_120 : i32 to vector<1x256xi32>
    %552 = arith.cmpi slt, %37, %551 : vector<1x256xi32>
    %553 = arith.andi %550, %552 : vector<1x256xi1>
    %c-3_i32_121 = arith.constant -3 : i32
    %554 = vector.broadcast %c-3_i32_121 : i32 to vector<1x256xi32>
    %555 = arith.cmpi sge, %38, %554 : vector<1x256xi32>
    %556 = arith.andi %553, %555 : vector<1x256xi1>
    %c13_i32_122 = arith.constant 13 : i32
    %557 = vector.broadcast %c13_i32_122 : i32 to vector<1x256xi32>
    %558 = arith.cmpi slt, %38, %557 : vector<1x256xi32>
    %559 = arith.andi %556, %558 : vector<1x256xi1>
    %cst_123 = arith.constant 0.000000e+00 : f32
    %560 = vector.shape_cast %559 : vector<1x256xi1> to vector<1x256xi1>
    %561 = vector.broadcast %560 : vector<1x256xi1> to vector<4x256xi1>
    %562 = vector.shape_cast %548 : vector<4x1xf32> to vector<4x1xf32>
    %563 = vector.broadcast %562 : vector<4x1xf32> to vector<4x256xf32>
    %564 = vector.broadcast %cst_123 : f32 to vector<4x256xf32>
    %565 = arith.select %561, %563, %564 : vector<4x256xi1>, vector<4x256xf32>
    %566 = arith.mulf %565, %543 : vector<4x256xf32>
    %567 = arith.addf %542, %566 : vector<4x256xf32>
    %c3_i32_124 = arith.constant 3 : i32
    %568 = tpu.dynamic_rotate %35 by %c3_i32_124 dim 1 : vector<4x256xf32>, i32 -> vector<4x256xf32>
    %c21 = arith.constant 21 : index
    %569 = memref.load %arg7[%c21] : memref<98xf32, #tpu.memory_space<smem>>
    %c70 = arith.constant 70 : index
    %570 = memref.load %arg7[%c70] : memref<98xf32, #tpu.memory_space<smem>>
    %571 = vector.broadcast %570 : f32 to vector<4x1xf32>
    %572 = vector.broadcast %569 : f32 to vector<4x1xf32>
    %573 = arith.select %41, %571, %572 : vector<4x1xi1>, vector<4x1xf32>
    %c0_i32_125 = arith.constant 0 : i32
    %574 = vector.broadcast %c0_i32_125 : i32 to vector<1x256xi32>
    %575 = arith.cmpi sge, %37, %574 : vector<1x256xi32>
    %c16_i32_126 = arith.constant 16 : i32
    %576 = vector.broadcast %c16_i32_126 : i32 to vector<1x256xi32>
    %577 = arith.cmpi slt, %37, %576 : vector<1x256xi32>
    %578 = arith.andi %575, %577 : vector<1x256xi1>
    %c3_i32_127 = arith.constant 3 : i32
    %579 = vector.broadcast %c3_i32_127 : i32 to vector<1x256xi32>
    %580 = arith.cmpi sge, %38, %579 : vector<1x256xi32>
    %581 = arith.andi %578, %580 : vector<1x256xi1>
    %c19_i32_128 = arith.constant 19 : i32
    %582 = vector.broadcast %c19_i32_128 : i32 to vector<1x256xi32>
    %583 = arith.cmpi slt, %38, %582 : vector<1x256xi32>
    %584 = arith.andi %581, %583 : vector<1x256xi1>
    %cst_129 = arith.constant 0.000000e+00 : f32
    %585 = vector.shape_cast %584 : vector<1x256xi1> to vector<1x256xi1>
    %586 = vector.broadcast %585 : vector<1x256xi1> to vector<4x256xi1>
    %587 = vector.shape_cast %573 : vector<4x1xf32> to vector<4x1xf32>
    %588 = vector.broadcast %587 : vector<4x1xf32> to vector<4x256xf32>
    %589 = vector.broadcast %cst_129 : f32 to vector<4x256xf32>
    %590 = arith.select %586, %588, %589 : vector<4x256xi1>, vector<4x256xf32>
    %591 = arith.mulf %590, %568 : vector<4x256xf32>
    %592 = arith.addf %567, %591 : vector<4x256xf32>
    %c2_i32_130 = arith.constant 2 : i32
    %593 = tpu.dynamic_rotate %35 by %c2_i32_130 dim 1 : vector<4x256xf32>, i32 -> vector<4x256xf32>
    %c22 = arith.constant 22 : index
    %594 = memref.load %arg7[%c22] : memref<98xf32, #tpu.memory_space<smem>>
    %c71 = arith.constant 71 : index
    %595 = memref.load %arg7[%c71] : memref<98xf32, #tpu.memory_space<smem>>
    %596 = vector.broadcast %595 : f32 to vector<4x1xf32>
    %597 = vector.broadcast %594 : f32 to vector<4x1xf32>
    %598 = arith.select %41, %596, %597 : vector<4x1xi1>, vector<4x1xf32>
    %c0_i32_131 = arith.constant 0 : i32
    %599 = vector.broadcast %c0_i32_131 : i32 to vector<1x256xi32>
    %600 = arith.cmpi sge, %37, %599 : vector<1x256xi32>
    %c16_i32_132 = arith.constant 16 : i32
    %601 = vector.broadcast %c16_i32_132 : i32 to vector<1x256xi32>
    %602 = arith.cmpi slt, %37, %601 : vector<1x256xi32>
    %603 = arith.andi %600, %602 : vector<1x256xi1>
    %c2_i32_133 = arith.constant 2 : i32
    %604 = vector.broadcast %c2_i32_133 : i32 to vector<1x256xi32>
    %605 = arith.cmpi sge, %38, %604 : vector<1x256xi32>
    %606 = arith.andi %603, %605 : vector<1x256xi1>
    %c18_i32_134 = arith.constant 18 : i32
    %607 = vector.broadcast %c18_i32_134 : i32 to vector<1x256xi32>
    %608 = arith.cmpi slt, %38, %607 : vector<1x256xi32>
    %609 = arith.andi %606, %608 : vector<1x256xi1>
    %cst_135 = arith.constant 0.000000e+00 : f32
    %610 = vector.shape_cast %609 : vector<1x256xi1> to vector<1x256xi1>
    %611 = vector.broadcast %610 : vector<1x256xi1> to vector<4x256xi1>
    %612 = vector.shape_cast %598 : vector<4x1xf32> to vector<4x1xf32>
    %613 = vector.broadcast %612 : vector<4x1xf32> to vector<4x256xf32>
    %614 = vector.broadcast %cst_135 : f32 to vector<4x256xf32>
    %615 = arith.select %611, %613, %614 : vector<4x256xi1>, vector<4x256xf32>
    %616 = arith.mulf %615, %593 : vector<4x256xf32>
    %617 = arith.addf %592, %616 : vector<4x256xf32>
    %c1_i32_136 = arith.constant 1 : i32
    %618 = tpu.dynamic_rotate %35 by %c1_i32_136 dim 1 : vector<4x256xf32>, i32 -> vector<4x256xf32>
    %c23 = arith.constant 23 : index
    %619 = memref.load %arg7[%c23] : memref<98xf32, #tpu.memory_space<smem>>
    %c72 = arith.constant 72 : index
    %620 = memref.load %arg7[%c72] : memref<98xf32, #tpu.memory_space<smem>>
    %621 = vector.broadcast %620 : f32 to vector<4x1xf32>
    %622 = vector.broadcast %619 : f32 to vector<4x1xf32>
    %623 = arith.select %41, %621, %622 : vector<4x1xi1>, vector<4x1xf32>
    %c0_i32_137 = arith.constant 0 : i32
    %624 = vector.broadcast %c0_i32_137 : i32 to vector<1x256xi32>
    %625 = arith.cmpi sge, %37, %624 : vector<1x256xi32>
    %c16_i32_138 = arith.constant 16 : i32
    %626 = vector.broadcast %c16_i32_138 : i32 to vector<1x256xi32>
    %627 = arith.cmpi slt, %37, %626 : vector<1x256xi32>
    %628 = arith.andi %625, %627 : vector<1x256xi1>
    %c1_i32_139 = arith.constant 1 : i32
    %629 = vector.broadcast %c1_i32_139 : i32 to vector<1x256xi32>
    %630 = arith.cmpi sge, %38, %629 : vector<1x256xi32>
    %631 = arith.andi %628, %630 : vector<1x256xi1>
    %c17_i32_140 = arith.constant 17 : i32
    %632 = vector.broadcast %c17_i32_140 : i32 to vector<1x256xi32>
    %633 = arith.cmpi slt, %38, %632 : vector<1x256xi32>
    %634 = arith.andi %631, %633 : vector<1x256xi1>
    %cst_141 = arith.constant 0.000000e+00 : f32
    %635 = vector.shape_cast %634 : vector<1x256xi1> to vector<1x256xi1>
    %636 = vector.broadcast %635 : vector<1x256xi1> to vector<4x256xi1>
    %637 = vector.shape_cast %623 : vector<4x1xf32> to vector<4x1xf32>
    %638 = vector.broadcast %637 : vector<4x1xf32> to vector<4x256xf32>
    %639 = vector.broadcast %cst_141 : f32 to vector<4x256xf32>
    %640 = arith.select %636, %638, %639 : vector<4x256xi1>, vector<4x256xf32>
    %641 = arith.mulf %640, %618 : vector<4x256xf32>
    %642 = arith.addf %617, %641 : vector<4x256xf32>
    %c24 = arith.constant 24 : index
    %643 = memref.load %arg7[%c24] : memref<98xf32, #tpu.memory_space<smem>>
    %c73 = arith.constant 73 : index
    %644 = memref.load %arg7[%c73] : memref<98xf32, #tpu.memory_space<smem>>
    %645 = vector.broadcast %644 : f32 to vector<4x1xf32>
    %646 = vector.broadcast %643 : f32 to vector<4x1xf32>
    %647 = arith.select %41, %645, %646 : vector<4x1xi1>, vector<4x1xf32>
    %648 = vector.broadcast %647 : vector<4x1xf32> to vector<4x256xf32>
    %649 = arith.mulf %648, %35 : vector<4x256xf32>
    %650 = arith.addf %642, %649 : vector<4x256xf32>
    %c255_i32 = arith.constant 255 : i32
    %651 = tpu.dynamic_rotate %35 by %c255_i32 dim 1 : vector<4x256xf32>, i32 -> vector<4x256xf32>
    %c25 = arith.constant 25 : index
    %652 = memref.load %arg7[%c25] : memref<98xf32, #tpu.memory_space<smem>>
    %c74 = arith.constant 74 : index
    %653 = memref.load %arg7[%c74] : memref<98xf32, #tpu.memory_space<smem>>
    %654 = vector.broadcast %653 : f32 to vector<4x1xf32>
    %655 = vector.broadcast %652 : f32 to vector<4x1xf32>
    %656 = arith.select %41, %654, %655 : vector<4x1xi1>, vector<4x1xf32>
    %c0_i32_142 = arith.constant 0 : i32
    %657 = vector.broadcast %c0_i32_142 : i32 to vector<1x256xi32>
    %658 = arith.cmpi sge, %37, %657 : vector<1x256xi32>
    %c16_i32_143 = arith.constant 16 : i32
    %659 = vector.broadcast %c16_i32_143 : i32 to vector<1x256xi32>
    %660 = arith.cmpi slt, %37, %659 : vector<1x256xi32>
    %661 = arith.andi %658, %660 : vector<1x256xi1>
    %c-1_i32_144 = arith.constant -1 : i32
    %662 = vector.broadcast %c-1_i32_144 : i32 to vector<1x256xi32>
    %663 = arith.cmpi sge, %38, %662 : vector<1x256xi32>
    %664 = arith.andi %661, %663 : vector<1x256xi1>
    %c15_i32_145 = arith.constant 15 : i32
    %665 = vector.broadcast %c15_i32_145 : i32 to vector<1x256xi32>
    %666 = arith.cmpi slt, %38, %665 : vector<1x256xi32>
    %667 = arith.andi %664, %666 : vector<1x256xi1>
    %cst_146 = arith.constant 0.000000e+00 : f32
    %668 = vector.shape_cast %667 : vector<1x256xi1> to vector<1x256xi1>
    %669 = vector.broadcast %668 : vector<1x256xi1> to vector<4x256xi1>
    %670 = vector.shape_cast %656 : vector<4x1xf32> to vector<4x1xf32>
    %671 = vector.broadcast %670 : vector<4x1xf32> to vector<4x256xf32>
    %672 = vector.broadcast %cst_146 : f32 to vector<4x256xf32>
    %673 = arith.select %669, %671, %672 : vector<4x256xi1>, vector<4x256xf32>
    %674 = arith.mulf %673, %651 : vector<4x256xf32>
    %675 = arith.addf %650, %674 : vector<4x256xf32>
    %c254_i32 = arith.constant 254 : i32
    %676 = tpu.dynamic_rotate %35 by %c254_i32 dim 1 : vector<4x256xf32>, i32 -> vector<4x256xf32>
    %c26 = arith.constant 26 : index
    %677 = memref.load %arg7[%c26] : memref<98xf32, #tpu.memory_space<smem>>
    %c75 = arith.constant 75 : index
    %678 = memref.load %arg7[%c75] : memref<98xf32, #tpu.memory_space<smem>>
    %679 = vector.broadcast %678 : f32 to vector<4x1xf32>
    %680 = vector.broadcast %677 : f32 to vector<4x1xf32>
    %681 = arith.select %41, %679, %680 : vector<4x1xi1>, vector<4x1xf32>
    %c0_i32_147 = arith.constant 0 : i32
    %682 = vector.broadcast %c0_i32_147 : i32 to vector<1x256xi32>
    %683 = arith.cmpi sge, %37, %682 : vector<1x256xi32>
    %c16_i32_148 = arith.constant 16 : i32
    %684 = vector.broadcast %c16_i32_148 : i32 to vector<1x256xi32>
    %685 = arith.cmpi slt, %37, %684 : vector<1x256xi32>
    %686 = arith.andi %683, %685 : vector<1x256xi1>
    %c-2_i32_149 = arith.constant -2 : i32
    %687 = vector.broadcast %c-2_i32_149 : i32 to vector<1x256xi32>
    %688 = arith.cmpi sge, %38, %687 : vector<1x256xi32>
    %689 = arith.andi %686, %688 : vector<1x256xi1>
    %c14_i32_150 = arith.constant 14 : i32
    %690 = vector.broadcast %c14_i32_150 : i32 to vector<1x256xi32>
    %691 = arith.cmpi slt, %38, %690 : vector<1x256xi32>
    %692 = arith.andi %689, %691 : vector<1x256xi1>
    %cst_151 = arith.constant 0.000000e+00 : f32
    %693 = vector.shape_cast %692 : vector<1x256xi1> to vector<1x256xi1>
    %694 = vector.broadcast %693 : vector<1x256xi1> to vector<4x256xi1>
    %695 = vector.shape_cast %681 : vector<4x1xf32> to vector<4x1xf32>
    %696 = vector.broadcast %695 : vector<4x1xf32> to vector<4x256xf32>
    %697 = vector.broadcast %cst_151 : f32 to vector<4x256xf32>
    %698 = arith.select %694, %696, %697 : vector<4x256xi1>, vector<4x256xf32>
    %699 = arith.mulf %698, %676 : vector<4x256xf32>
    %700 = arith.addf %675, %699 : vector<4x256xf32>
    %c253_i32 = arith.constant 253 : i32
    %701 = tpu.dynamic_rotate %35 by %c253_i32 dim 1 : vector<4x256xf32>, i32 -> vector<4x256xf32>
    %c27 = arith.constant 27 : index
    %702 = memref.load %arg7[%c27] : memref<98xf32, #tpu.memory_space<smem>>
    %c76 = arith.constant 76 : index
    %703 = memref.load %arg7[%c76] : memref<98xf32, #tpu.memory_space<smem>>
    %704 = vector.broadcast %703 : f32 to vector<4x1xf32>
    %705 = vector.broadcast %702 : f32 to vector<4x1xf32>
    %706 = arith.select %41, %704, %705 : vector<4x1xi1>, vector<4x1xf32>
    %c0_i32_152 = arith.constant 0 : i32
    %707 = vector.broadcast %c0_i32_152 : i32 to vector<1x256xi32>
    %708 = arith.cmpi sge, %37, %707 : vector<1x256xi32>
    %c16_i32_153 = arith.constant 16 : i32
    %709 = vector.broadcast %c16_i32_153 : i32 to vector<1x256xi32>
    %710 = arith.cmpi slt, %37, %709 : vector<1x256xi32>
    %711 = arith.andi %708, %710 : vector<1x256xi1>
    %c-3_i32_154 = arith.constant -3 : i32
    %712 = vector.broadcast %c-3_i32_154 : i32 to vector<1x256xi32>
    %713 = arith.cmpi sge, %38, %712 : vector<1x256xi32>
    %714 = arith.andi %711, %713 : vector<1x256xi1>
    %c13_i32_155 = arith.constant 13 : i32
    %715 = vector.broadcast %c13_i32_155 : i32 to vector<1x256xi32>
    %716 = arith.cmpi slt, %38, %715 : vector<1x256xi32>
    %717 = arith.andi %714, %716 : vector<1x256xi1>
    %cst_156 = arith.constant 0.000000e+00 : f32
    %718 = vector.shape_cast %717 : vector<1x256xi1> to vector<1x256xi1>
    %719 = vector.broadcast %718 : vector<1x256xi1> to vector<4x256xi1>
    %720 = vector.shape_cast %706 : vector<4x1xf32> to vector<4x1xf32>
    %721 = vector.broadcast %720 : vector<4x1xf32> to vector<4x256xf32>
    %722 = vector.broadcast %cst_156 : f32 to vector<4x256xf32>
    %723 = arith.select %719, %721, %722 : vector<4x256xi1>, vector<4x256xf32>
    %724 = arith.mulf %723, %701 : vector<4x256xf32>
    %725 = arith.addf %700, %724 : vector<4x256xf32>
    %c243_i32 = arith.constant 243 : i32
    %726 = tpu.dynamic_rotate %35 by %c243_i32 dim 1 : vector<4x256xf32>, i32 -> vector<4x256xf32>
    %c28 = arith.constant 28 : index
    %727 = memref.load %arg7[%c28] : memref<98xf32, #tpu.memory_space<smem>>
    %c77 = arith.constant 77 : index
    %728 = memref.load %arg7[%c77] : memref<98xf32, #tpu.memory_space<smem>>
    %729 = vector.broadcast %728 : f32 to vector<4x1xf32>
    %730 = vector.broadcast %727 : f32 to vector<4x1xf32>
    %731 = arith.select %41, %729, %730 : vector<4x1xi1>, vector<4x1xf32>
    %c-1_i32_157 = arith.constant -1 : i32
    %732 = vector.broadcast %c-1_i32_157 : i32 to vector<1x256xi32>
    %733 = arith.cmpi sge, %37, %732 : vector<1x256xi32>
    %c15_i32_158 = arith.constant 15 : i32
    %734 = vector.broadcast %c15_i32_158 : i32 to vector<1x256xi32>
    %735 = arith.cmpi slt, %37, %734 : vector<1x256xi32>
    %736 = arith.andi %733, %735 : vector<1x256xi1>
    %c3_i32_159 = arith.constant 3 : i32
    %737 = vector.broadcast %c3_i32_159 : i32 to vector<1x256xi32>
    %738 = arith.cmpi sge, %38, %737 : vector<1x256xi32>
    %739 = arith.andi %736, %738 : vector<1x256xi1>
    %c19_i32_160 = arith.constant 19 : i32
    %740 = vector.broadcast %c19_i32_160 : i32 to vector<1x256xi32>
    %741 = arith.cmpi slt, %38, %740 : vector<1x256xi32>
    %742 = arith.andi %739, %741 : vector<1x256xi1>
    %cst_161 = arith.constant 0.000000e+00 : f32
    %743 = vector.shape_cast %742 : vector<1x256xi1> to vector<1x256xi1>
    %744 = vector.broadcast %743 : vector<1x256xi1> to vector<4x256xi1>
    %745 = vector.shape_cast %731 : vector<4x1xf32> to vector<4x1xf32>
    %746 = vector.broadcast %745 : vector<4x1xf32> to vector<4x256xf32>
    %747 = vector.broadcast %cst_161 : f32 to vector<4x256xf32>
    %748 = arith.select %744, %746, %747 : vector<4x256xi1>, vector<4x256xf32>
    %749 = arith.mulf %748, %726 : vector<4x256xf32>
    %750 = arith.addf %725, %749 : vector<4x256xf32>
    %c242_i32 = arith.constant 242 : i32
    %751 = tpu.dynamic_rotate %35 by %c242_i32 dim 1 : vector<4x256xf32>, i32 -> vector<4x256xf32>
    %c29 = arith.constant 29 : index
    %752 = memref.load %arg7[%c29] : memref<98xf32, #tpu.memory_space<smem>>
    %c78 = arith.constant 78 : index
    %753 = memref.load %arg7[%c78] : memref<98xf32, #tpu.memory_space<smem>>
    %754 = vector.broadcast %753 : f32 to vector<4x1xf32>
    %755 = vector.broadcast %752 : f32 to vector<4x1xf32>
    %756 = arith.select %41, %754, %755 : vector<4x1xi1>, vector<4x1xf32>
    %c-1_i32_162 = arith.constant -1 : i32
    %757 = vector.broadcast %c-1_i32_162 : i32 to vector<1x256xi32>
    %758 = arith.cmpi sge, %37, %757 : vector<1x256xi32>
    %c15_i32_163 = arith.constant 15 : i32
    %759 = vector.broadcast %c15_i32_163 : i32 to vector<1x256xi32>
    %760 = arith.cmpi slt, %37, %759 : vector<1x256xi32>
    %761 = arith.andi %758, %760 : vector<1x256xi1>
    %c2_i32_164 = arith.constant 2 : i32
    %762 = vector.broadcast %c2_i32_164 : i32 to vector<1x256xi32>
    %763 = arith.cmpi sge, %38, %762 : vector<1x256xi32>
    %764 = arith.andi %761, %763 : vector<1x256xi1>
    %c18_i32_165 = arith.constant 18 : i32
    %765 = vector.broadcast %c18_i32_165 : i32 to vector<1x256xi32>
    %766 = arith.cmpi slt, %38, %765 : vector<1x256xi32>
    %767 = arith.andi %764, %766 : vector<1x256xi1>
    %cst_166 = arith.constant 0.000000e+00 : f32
    %768 = vector.shape_cast %767 : vector<1x256xi1> to vector<1x256xi1>
    %769 = vector.broadcast %768 : vector<1x256xi1> to vector<4x256xi1>
    %770 = vector.shape_cast %756 : vector<4x1xf32> to vector<4x1xf32>
    %771 = vector.broadcast %770 : vector<4x1xf32> to vector<4x256xf32>
    %772 = vector.broadcast %cst_166 : f32 to vector<4x256xf32>
    %773 = arith.select %769, %771, %772 : vector<4x256xi1>, vector<4x256xf32>
    %774 = arith.mulf %773, %751 : vector<4x256xf32>
    %775 = arith.addf %750, %774 : vector<4x256xf32>
    %c241_i32 = arith.constant 241 : i32
    %776 = tpu.dynamic_rotate %35 by %c241_i32 dim 1 : vector<4x256xf32>, i32 -> vector<4x256xf32>
    %c30 = arith.constant 30 : index
    %777 = memref.load %arg7[%c30] : memref<98xf32, #tpu.memory_space<smem>>
    %c79 = arith.constant 79 : index
    %778 = memref.load %arg7[%c79] : memref<98xf32, #tpu.memory_space<smem>>
    %779 = vector.broadcast %778 : f32 to vector<4x1xf32>
    %780 = vector.broadcast %777 : f32 to vector<4x1xf32>
    %781 = arith.select %41, %779, %780 : vector<4x1xi1>, vector<4x1xf32>
    %c-1_i32_167 = arith.constant -1 : i32
    %782 = vector.broadcast %c-1_i32_167 : i32 to vector<1x256xi32>
    %783 = arith.cmpi sge, %37, %782 : vector<1x256xi32>
    %c15_i32_168 = arith.constant 15 : i32
    %784 = vector.broadcast %c15_i32_168 : i32 to vector<1x256xi32>
    %785 = arith.cmpi slt, %37, %784 : vector<1x256xi32>
    %786 = arith.andi %783, %785 : vector<1x256xi1>
    %c1_i32_169 = arith.constant 1 : i32
    %787 = vector.broadcast %c1_i32_169 : i32 to vector<1x256xi32>
    %788 = arith.cmpi sge, %38, %787 : vector<1x256xi32>
    %789 = arith.andi %786, %788 : vector<1x256xi1>
    %c17_i32_170 = arith.constant 17 : i32
    %790 = vector.broadcast %c17_i32_170 : i32 to vector<1x256xi32>
    %791 = arith.cmpi slt, %38, %790 : vector<1x256xi32>
    %792 = arith.andi %789, %791 : vector<1x256xi1>
    %cst_171 = arith.constant 0.000000e+00 : f32
    %793 = vector.shape_cast %792 : vector<1x256xi1> to vector<1x256xi1>
    %794 = vector.broadcast %793 : vector<1x256xi1> to vector<4x256xi1>
    %795 = vector.shape_cast %781 : vector<4x1xf32> to vector<4x1xf32>
    %796 = vector.broadcast %795 : vector<4x1xf32> to vector<4x256xf32>
    %797 = vector.broadcast %cst_171 : f32 to vector<4x256xf32>
    %798 = arith.select %794, %796, %797 : vector<4x256xi1>, vector<4x256xf32>
    %799 = arith.mulf %798, %776 : vector<4x256xf32>
    %800 = arith.addf %775, %799 : vector<4x256xf32>
    %c240_i32 = arith.constant 240 : i32
    %801 = tpu.dynamic_rotate %35 by %c240_i32 dim 1 : vector<4x256xf32>, i32 -> vector<4x256xf32>
    %c31 = arith.constant 31 : index
    %802 = memref.load %arg7[%c31] : memref<98xf32, #tpu.memory_space<smem>>
    %c80 = arith.constant 80 : index
    %803 = memref.load %arg7[%c80] : memref<98xf32, #tpu.memory_space<smem>>
    %804 = vector.broadcast %803 : f32 to vector<4x1xf32>
    %805 = vector.broadcast %802 : f32 to vector<4x1xf32>
    %806 = arith.select %41, %804, %805 : vector<4x1xi1>, vector<4x1xf32>
    %c-1_i32_172 = arith.constant -1 : i32
    %807 = vector.broadcast %c-1_i32_172 : i32 to vector<1x256xi32>
    %808 = arith.cmpi sge, %37, %807 : vector<1x256xi32>
    %c15_i32_173 = arith.constant 15 : i32
    %809 = vector.broadcast %c15_i32_173 : i32 to vector<1x256xi32>
    %810 = arith.cmpi slt, %37, %809 : vector<1x256xi32>
    %811 = arith.andi %808, %810 : vector<1x256xi1>
    %c0_i32_174 = arith.constant 0 : i32
    %812 = vector.broadcast %c0_i32_174 : i32 to vector<1x256xi32>
    %813 = arith.cmpi sge, %38, %812 : vector<1x256xi32>
    %814 = arith.andi %811, %813 : vector<1x256xi1>
    %c16_i32_175 = arith.constant 16 : i32
    %815 = vector.broadcast %c16_i32_175 : i32 to vector<1x256xi32>
    %816 = arith.cmpi slt, %38, %815 : vector<1x256xi32>
    %817 = arith.andi %814, %816 : vector<1x256xi1>
    %cst_176 = arith.constant 0.000000e+00 : f32
    %818 = vector.shape_cast %817 : vector<1x256xi1> to vector<1x256xi1>
    %819 = vector.broadcast %818 : vector<1x256xi1> to vector<4x256xi1>
    %820 = vector.shape_cast %806 : vector<4x1xf32> to vector<4x1xf32>
    %821 = vector.broadcast %820 : vector<4x1xf32> to vector<4x256xf32>
    %822 = vector.broadcast %cst_176 : f32 to vector<4x256xf32>
    %823 = arith.select %819, %821, %822 : vector<4x256xi1>, vector<4x256xf32>
    %824 = arith.mulf %823, %801 : vector<4x256xf32>
    %825 = arith.addf %800, %824 : vector<4x256xf32>
    %c239_i32 = arith.constant 239 : i32
    %826 = tpu.dynamic_rotate %35 by %c239_i32 dim 1 : vector<4x256xf32>, i32 -> vector<4x256xf32>
    %c32 = arith.constant 32 : index
    %827 = memref.load %arg7[%c32] : memref<98xf32, #tpu.memory_space<smem>>
    %c81 = arith.constant 81 : index
    %828 = memref.load %arg7[%c81] : memref<98xf32, #tpu.memory_space<smem>>
    %829 = vector.broadcast %828 : f32 to vector<4x1xf32>
    %830 = vector.broadcast %827 : f32 to vector<4x1xf32>
    %831 = arith.select %41, %829, %830 : vector<4x1xi1>, vector<4x1xf32>
    %c-1_i32_177 = arith.constant -1 : i32
    %832 = vector.broadcast %c-1_i32_177 : i32 to vector<1x256xi32>
    %833 = arith.cmpi sge, %37, %832 : vector<1x256xi32>
    %c15_i32_178 = arith.constant 15 : i32
    %834 = vector.broadcast %c15_i32_178 : i32 to vector<1x256xi32>
    %835 = arith.cmpi slt, %37, %834 : vector<1x256xi32>
    %836 = arith.andi %833, %835 : vector<1x256xi1>
    %c-1_i32_179 = arith.constant -1 : i32
    %837 = vector.broadcast %c-1_i32_179 : i32 to vector<1x256xi32>
    %838 = arith.cmpi sge, %38, %837 : vector<1x256xi32>
    %839 = arith.andi %836, %838 : vector<1x256xi1>
    %c15_i32_180 = arith.constant 15 : i32
    %840 = vector.broadcast %c15_i32_180 : i32 to vector<1x256xi32>
    %841 = arith.cmpi slt, %38, %840 : vector<1x256xi32>
    %842 = arith.andi %839, %841 : vector<1x256xi1>
    %cst_181 = arith.constant 0.000000e+00 : f32
    %843 = vector.shape_cast %842 : vector<1x256xi1> to vector<1x256xi1>
    %844 = vector.broadcast %843 : vector<1x256xi1> to vector<4x256xi1>
    %845 = vector.shape_cast %831 : vector<4x1xf32> to vector<4x1xf32>
    %846 = vector.broadcast %845 : vector<4x1xf32> to vector<4x256xf32>
    %847 = vector.broadcast %cst_181 : f32 to vector<4x256xf32>
    %848 = arith.select %844, %846, %847 : vector<4x256xi1>, vector<4x256xf32>
    %849 = arith.mulf %848, %826 : vector<4x256xf32>
    %850 = arith.addf %825, %849 : vector<4x256xf32>
    %c238_i32 = arith.constant 238 : i32
    %851 = tpu.dynamic_rotate %35 by %c238_i32 dim 1 : vector<4x256xf32>, i32 -> vector<4x256xf32>
    %c33 = arith.constant 33 : index
    %852 = memref.load %arg7[%c33] : memref<98xf32, #tpu.memory_space<smem>>
    %c82 = arith.constant 82 : index
    %853 = memref.load %arg7[%c82] : memref<98xf32, #tpu.memory_space<smem>>
    %854 = vector.broadcast %853 : f32 to vector<4x1xf32>
    %855 = vector.broadcast %852 : f32 to vector<4x1xf32>
    %856 = arith.select %41, %854, %855 : vector<4x1xi1>, vector<4x1xf32>
    %c-1_i32_182 = arith.constant -1 : i32
    %857 = vector.broadcast %c-1_i32_182 : i32 to vector<1x256xi32>
    %858 = arith.cmpi sge, %37, %857 : vector<1x256xi32>
    %c15_i32_183 = arith.constant 15 : i32
    %859 = vector.broadcast %c15_i32_183 : i32 to vector<1x256xi32>
    %860 = arith.cmpi slt, %37, %859 : vector<1x256xi32>
    %861 = arith.andi %858, %860 : vector<1x256xi1>
    %c-2_i32_184 = arith.constant -2 : i32
    %862 = vector.broadcast %c-2_i32_184 : i32 to vector<1x256xi32>
    %863 = arith.cmpi sge, %38, %862 : vector<1x256xi32>
    %864 = arith.andi %861, %863 : vector<1x256xi1>
    %c14_i32_185 = arith.constant 14 : i32
    %865 = vector.broadcast %c14_i32_185 : i32 to vector<1x256xi32>
    %866 = arith.cmpi slt, %38, %865 : vector<1x256xi32>
    %867 = arith.andi %864, %866 : vector<1x256xi1>
    %cst_186 = arith.constant 0.000000e+00 : f32
    %868 = vector.shape_cast %867 : vector<1x256xi1> to vector<1x256xi1>
    %869 = vector.broadcast %868 : vector<1x256xi1> to vector<4x256xi1>
    %870 = vector.shape_cast %856 : vector<4x1xf32> to vector<4x1xf32>
    %871 = vector.broadcast %870 : vector<4x1xf32> to vector<4x256xf32>
    %872 = vector.broadcast %cst_186 : f32 to vector<4x256xf32>
    %873 = arith.select %869, %871, %872 : vector<4x256xi1>, vector<4x256xf32>
    %874 = arith.mulf %873, %851 : vector<4x256xf32>
    %875 = arith.addf %850, %874 : vector<4x256xf32>
    %c237_i32 = arith.constant 237 : i32
    %876 = tpu.dynamic_rotate %35 by %c237_i32 dim 1 : vector<4x256xf32>, i32 -> vector<4x256xf32>
    %c34 = arith.constant 34 : index
    %877 = memref.load %arg7[%c34] : memref<98xf32, #tpu.memory_space<smem>>
    %c83 = arith.constant 83 : index
    %878 = memref.load %arg7[%c83] : memref<98xf32, #tpu.memory_space<smem>>
    %879 = vector.broadcast %878 : f32 to vector<4x1xf32>
    %880 = vector.broadcast %877 : f32 to vector<4x1xf32>
    %881 = arith.select %41, %879, %880 : vector<4x1xi1>, vector<4x1xf32>
    %c-1_i32_187 = arith.constant -1 : i32
    %882 = vector.broadcast %c-1_i32_187 : i32 to vector<1x256xi32>
    %883 = arith.cmpi sge, %37, %882 : vector<1x256xi32>
    %c15_i32_188 = arith.constant 15 : i32
    %884 = vector.broadcast %c15_i32_188 : i32 to vector<1x256xi32>
    %885 = arith.cmpi slt, %37, %884 : vector<1x256xi32>
    %886 = arith.andi %883, %885 : vector<1x256xi1>
    %c-3_i32_189 = arith.constant -3 : i32
    %887 = vector.broadcast %c-3_i32_189 : i32 to vector<1x256xi32>
    %888 = arith.cmpi sge, %38, %887 : vector<1x256xi32>
    %889 = arith.andi %886, %888 : vector<1x256xi1>
    %c13_i32_190 = arith.constant 13 : i32
    %890 = vector.broadcast %c13_i32_190 : i32 to vector<1x256xi32>
    %891 = arith.cmpi slt, %38, %890 : vector<1x256xi32>
    %892 = arith.andi %889, %891 : vector<1x256xi1>
    %cst_191 = arith.constant 0.000000e+00 : f32
    %893 = vector.shape_cast %892 : vector<1x256xi1> to vector<1x256xi1>
    %894 = vector.broadcast %893 : vector<1x256xi1> to vector<4x256xi1>
    %895 = vector.shape_cast %881 : vector<4x1xf32> to vector<4x1xf32>
    %896 = vector.broadcast %895 : vector<4x1xf32> to vector<4x256xf32>
    %897 = vector.broadcast %cst_191 : f32 to vector<4x256xf32>
    %898 = arith.select %894, %896, %897 : vector<4x256xi1>, vector<4x256xf32>
    %899 = arith.mulf %898, %876 : vector<4x256xf32>
    %900 = arith.addf %875, %899 : vector<4x256xf32>
    %c227_i32 = arith.constant 227 : i32
    %901 = tpu.dynamic_rotate %35 by %c227_i32 dim 1 : vector<4x256xf32>, i32 -> vector<4x256xf32>
    %c35 = arith.constant 35 : index
    %902 = memref.load %arg7[%c35] : memref<98xf32, #tpu.memory_space<smem>>
    %c84 = arith.constant 84 : index
    %903 = memref.load %arg7[%c84] : memref<98xf32, #tpu.memory_space<smem>>
    %904 = vector.broadcast %903 : f32 to vector<4x1xf32>
    %905 = vector.broadcast %902 : f32 to vector<4x1xf32>
    %906 = arith.select %41, %904, %905 : vector<4x1xi1>, vector<4x1xf32>
    %c-2_i32_192 = arith.constant -2 : i32
    %907 = vector.broadcast %c-2_i32_192 : i32 to vector<1x256xi32>
    %908 = arith.cmpi sge, %37, %907 : vector<1x256xi32>
    %c14_i32_193 = arith.constant 14 : i32
    %909 = vector.broadcast %c14_i32_193 : i32 to vector<1x256xi32>
    %910 = arith.cmpi slt, %37, %909 : vector<1x256xi32>
    %911 = arith.andi %908, %910 : vector<1x256xi1>
    %c3_i32_194 = arith.constant 3 : i32
    %912 = vector.broadcast %c3_i32_194 : i32 to vector<1x256xi32>
    %913 = arith.cmpi sge, %38, %912 : vector<1x256xi32>
    %914 = arith.andi %911, %913 : vector<1x256xi1>
    %c19_i32_195 = arith.constant 19 : i32
    %915 = vector.broadcast %c19_i32_195 : i32 to vector<1x256xi32>
    %916 = arith.cmpi slt, %38, %915 : vector<1x256xi32>
    %917 = arith.andi %914, %916 : vector<1x256xi1>
    %cst_196 = arith.constant 0.000000e+00 : f32
    %918 = vector.shape_cast %917 : vector<1x256xi1> to vector<1x256xi1>
    %919 = vector.broadcast %918 : vector<1x256xi1> to vector<4x256xi1>
    %920 = vector.shape_cast %906 : vector<4x1xf32> to vector<4x1xf32>
    %921 = vector.broadcast %920 : vector<4x1xf32> to vector<4x256xf32>
    %922 = vector.broadcast %cst_196 : f32 to vector<4x256xf32>
    %923 = arith.select %919, %921, %922 : vector<4x256xi1>, vector<4x256xf32>
    %924 = arith.mulf %923, %901 : vector<4x256xf32>
    %925 = arith.addf %900, %924 : vector<4x256xf32>
    %c226_i32 = arith.constant 226 : i32
    %926 = tpu.dynamic_rotate %35 by %c226_i32 dim 1 : vector<4x256xf32>, i32 -> vector<4x256xf32>
    %c36 = arith.constant 36 : index
    %927 = memref.load %arg7[%c36] : memref<98xf32, #tpu.memory_space<smem>>
    %c85 = arith.constant 85 : index
    %928 = memref.load %arg7[%c85] : memref<98xf32, #tpu.memory_space<smem>>
    %929 = vector.broadcast %928 : f32 to vector<4x1xf32>
    %930 = vector.broadcast %927 : f32 to vector<4x1xf32>
    %931 = arith.select %41, %929, %930 : vector<4x1xi1>, vector<4x1xf32>
    %c-2_i32_197 = arith.constant -2 : i32
    %932 = vector.broadcast %c-2_i32_197 : i32 to vector<1x256xi32>
    %933 = arith.cmpi sge, %37, %932 : vector<1x256xi32>
    %c14_i32_198 = arith.constant 14 : i32
    %934 = vector.broadcast %c14_i32_198 : i32 to vector<1x256xi32>
    %935 = arith.cmpi slt, %37, %934 : vector<1x256xi32>
    %936 = arith.andi %933, %935 : vector<1x256xi1>
    %c2_i32_199 = arith.constant 2 : i32
    %937 = vector.broadcast %c2_i32_199 : i32 to vector<1x256xi32>
    %938 = arith.cmpi sge, %38, %937 : vector<1x256xi32>
    %939 = arith.andi %936, %938 : vector<1x256xi1>
    %c18_i32_200 = arith.constant 18 : i32
    %940 = vector.broadcast %c18_i32_200 : i32 to vector<1x256xi32>
    %941 = arith.cmpi slt, %38, %940 : vector<1x256xi32>
    %942 = arith.andi %939, %941 : vector<1x256xi1>
    %cst_201 = arith.constant 0.000000e+00 : f32
    %943 = vector.shape_cast %942 : vector<1x256xi1> to vector<1x256xi1>
    %944 = vector.broadcast %943 : vector<1x256xi1> to vector<4x256xi1>
    %945 = vector.shape_cast %931 : vector<4x1xf32> to vector<4x1xf32>
    %946 = vector.broadcast %945 : vector<4x1xf32> to vector<4x256xf32>
    %947 = vector.broadcast %cst_201 : f32 to vector<4x256xf32>
    %948 = arith.select %944, %946, %947 : vector<4x256xi1>, vector<4x256xf32>
    %949 = arith.mulf %948, %926 : vector<4x256xf32>
    %950 = arith.addf %925, %949 : vector<4x256xf32>
    %c225_i32 = arith.constant 225 : i32
    %951 = tpu.dynamic_rotate %35 by %c225_i32 dim 1 : vector<4x256xf32>, i32 -> vector<4x256xf32>
    %c37 = arith.constant 37 : index
    %952 = memref.load %arg7[%c37] : memref<98xf32, #tpu.memory_space<smem>>
    %c86 = arith.constant 86 : index
    %953 = memref.load %arg7[%c86] : memref<98xf32, #tpu.memory_space<smem>>
    %954 = vector.broadcast %953 : f32 to vector<4x1xf32>
    %955 = vector.broadcast %952 : f32 to vector<4x1xf32>
    %956 = arith.select %41, %954, %955 : vector<4x1xi1>, vector<4x1xf32>
    %c-2_i32_202 = arith.constant -2 : i32
    %957 = vector.broadcast %c-2_i32_202 : i32 to vector<1x256xi32>
    %958 = arith.cmpi sge, %37, %957 : vector<1x256xi32>
    %c14_i32_203 = arith.constant 14 : i32
    %959 = vector.broadcast %c14_i32_203 : i32 to vector<1x256xi32>
    %960 = arith.cmpi slt, %37, %959 : vector<1x256xi32>
    %961 = arith.andi %958, %960 : vector<1x256xi1>
    %c1_i32_204 = arith.constant 1 : i32
    %962 = vector.broadcast %c1_i32_204 : i32 to vector<1x256xi32>
    %963 = arith.cmpi sge, %38, %962 : vector<1x256xi32>
    %964 = arith.andi %961, %963 : vector<1x256xi1>
    %c17_i32_205 = arith.constant 17 : i32
    %965 = vector.broadcast %c17_i32_205 : i32 to vector<1x256xi32>
    %966 = arith.cmpi slt, %38, %965 : vector<1x256xi32>
    %967 = arith.andi %964, %966 : vector<1x256xi1>
    %cst_206 = arith.constant 0.000000e+00 : f32
    %968 = vector.shape_cast %967 : vector<1x256xi1> to vector<1x256xi1>
    %969 = vector.broadcast %968 : vector<1x256xi1> to vector<4x256xi1>
    %970 = vector.shape_cast %956 : vector<4x1xf32> to vector<4x1xf32>
    %971 = vector.broadcast %970 : vector<4x1xf32> to vector<4x256xf32>
    %972 = vector.broadcast %cst_206 : f32 to vector<4x256xf32>
    %973 = arith.select %969, %971, %972 : vector<4x256xi1>, vector<4x256xf32>
    %974 = arith.mulf %973, %951 : vector<4x256xf32>
    %975 = arith.addf %950, %974 : vector<4x256xf32>
    %c224_i32 = arith.constant 224 : i32
    %976 = tpu.dynamic_rotate %35 by %c224_i32 dim 1 : vector<4x256xf32>, i32 -> vector<4x256xf32>
    %c38 = arith.constant 38 : index
    %977 = memref.load %arg7[%c38] : memref<98xf32, #tpu.memory_space<smem>>
    %c87 = arith.constant 87 : index
    %978 = memref.load %arg7[%c87] : memref<98xf32, #tpu.memory_space<smem>>
    %979 = vector.broadcast %978 : f32 to vector<4x1xf32>
    %980 = vector.broadcast %977 : f32 to vector<4x1xf32>
    %981 = arith.select %41, %979, %980 : vector<4x1xi1>, vector<4x1xf32>
    %c-2_i32_207 = arith.constant -2 : i32
    %982 = vector.broadcast %c-2_i32_207 : i32 to vector<1x256xi32>
    %983 = arith.cmpi sge, %37, %982 : vector<1x256xi32>
    %c14_i32_208 = arith.constant 14 : i32
    %984 = vector.broadcast %c14_i32_208 : i32 to vector<1x256xi32>
    %985 = arith.cmpi slt, %37, %984 : vector<1x256xi32>
    %986 = arith.andi %983, %985 : vector<1x256xi1>
    %c0_i32_209 = arith.constant 0 : i32
    %987 = vector.broadcast %c0_i32_209 : i32 to vector<1x256xi32>
    %988 = arith.cmpi sge, %38, %987 : vector<1x256xi32>
    %989 = arith.andi %986, %988 : vector<1x256xi1>
    %c16_i32_210 = arith.constant 16 : i32
    %990 = vector.broadcast %c16_i32_210 : i32 to vector<1x256xi32>
    %991 = arith.cmpi slt, %38, %990 : vector<1x256xi32>
    %992 = arith.andi %989, %991 : vector<1x256xi1>
    %cst_211 = arith.constant 0.000000e+00 : f32
    %993 = vector.shape_cast %992 : vector<1x256xi1> to vector<1x256xi1>
    %994 = vector.broadcast %993 : vector<1x256xi1> to vector<4x256xi1>
    %995 = vector.shape_cast %981 : vector<4x1xf32> to vector<4x1xf32>
    %996 = vector.broadcast %995 : vector<4x1xf32> to vector<4x256xf32>
    %997 = vector.broadcast %cst_211 : f32 to vector<4x256xf32>
    %998 = arith.select %994, %996, %997 : vector<4x256xi1>, vector<4x256xf32>
    %999 = arith.mulf %998, %976 : vector<4x256xf32>
    %1000 = arith.addf %975, %999 : vector<4x256xf32>
    %c223_i32 = arith.constant 223 : i32
    %1001 = tpu.dynamic_rotate %35 by %c223_i32 dim 1 : vector<4x256xf32>, i32 -> vector<4x256xf32>
    %c39 = arith.constant 39 : index
    %1002 = memref.load %arg7[%c39] : memref<98xf32, #tpu.memory_space<smem>>
    %c88 = arith.constant 88 : index
    %1003 = memref.load %arg7[%c88] : memref<98xf32, #tpu.memory_space<smem>>
    %1004 = vector.broadcast %1003 : f32 to vector<4x1xf32>
    %1005 = vector.broadcast %1002 : f32 to vector<4x1xf32>
    %1006 = arith.select %41, %1004, %1005 : vector<4x1xi1>, vector<4x1xf32>
    %c-2_i32_212 = arith.constant -2 : i32
    %1007 = vector.broadcast %c-2_i32_212 : i32 to vector<1x256xi32>
    %1008 = arith.cmpi sge, %37, %1007 : vector<1x256xi32>
    %c14_i32_213 = arith.constant 14 : i32
    %1009 = vector.broadcast %c14_i32_213 : i32 to vector<1x256xi32>
    %1010 = arith.cmpi slt, %37, %1009 : vector<1x256xi32>
    %1011 = arith.andi %1008, %1010 : vector<1x256xi1>
    %c-1_i32_214 = arith.constant -1 : i32
    %1012 = vector.broadcast %c-1_i32_214 : i32 to vector<1x256xi32>
    %1013 = arith.cmpi sge, %38, %1012 : vector<1x256xi32>
    %1014 = arith.andi %1011, %1013 : vector<1x256xi1>
    %c15_i32_215 = arith.constant 15 : i32
    %1015 = vector.broadcast %c15_i32_215 : i32 to vector<1x256xi32>
    %1016 = arith.cmpi slt, %38, %1015 : vector<1x256xi32>
    %1017 = arith.andi %1014, %1016 : vector<1x256xi1>
    %cst_216 = arith.constant 0.000000e+00 : f32
    %1018 = vector.shape_cast %1017 : vector<1x256xi1> to vector<1x256xi1>
    %1019 = vector.broadcast %1018 : vector<1x256xi1> to vector<4x256xi1>
    %1020 = vector.shape_cast %1006 : vector<4x1xf32> to vector<4x1xf32>
    %1021 = vector.broadcast %1020 : vector<4x1xf32> to vector<4x256xf32>
    %1022 = vector.broadcast %cst_216 : f32 to vector<4x256xf32>
    %1023 = arith.select %1019, %1021, %1022 : vector<4x256xi1>, vector<4x256xf32>
    %1024 = arith.mulf %1023, %1001 : vector<4x256xf32>
    %1025 = arith.addf %1000, %1024 : vector<4x256xf32>
    %c222_i32 = arith.constant 222 : i32
    %1026 = tpu.dynamic_rotate %35 by %c222_i32 dim 1 : vector<4x256xf32>, i32 -> vector<4x256xf32>
    %c40 = arith.constant 40 : index
    %1027 = memref.load %arg7[%c40] : memref<98xf32, #tpu.memory_space<smem>>
    %c89 = arith.constant 89 : index
    %1028 = memref.load %arg7[%c89] : memref<98xf32, #tpu.memory_space<smem>>
    %1029 = vector.broadcast %1028 : f32 to vector<4x1xf32>
    %1030 = vector.broadcast %1027 : f32 to vector<4x1xf32>
    %1031 = arith.select %41, %1029, %1030 : vector<4x1xi1>, vector<4x1xf32>
    %c-2_i32_217 = arith.constant -2 : i32
    %1032 = vector.broadcast %c-2_i32_217 : i32 to vector<1x256xi32>
    %1033 = arith.cmpi sge, %37, %1032 : vector<1x256xi32>
    %c14_i32_218 = arith.constant 14 : i32
    %1034 = vector.broadcast %c14_i32_218 : i32 to vector<1x256xi32>
    %1035 = arith.cmpi slt, %37, %1034 : vector<1x256xi32>
    %1036 = arith.andi %1033, %1035 : vector<1x256xi1>
    %c-2_i32_219 = arith.constant -2 : i32
    %1037 = vector.broadcast %c-2_i32_219 : i32 to vector<1x256xi32>
    %1038 = arith.cmpi sge, %38, %1037 : vector<1x256xi32>
    %1039 = arith.andi %1036, %1038 : vector<1x256xi1>
    %c14_i32_220 = arith.constant 14 : i32
    %1040 = vector.broadcast %c14_i32_220 : i32 to vector<1x256xi32>
    %1041 = arith.cmpi slt, %38, %1040 : vector<1x256xi32>
    %1042 = arith.andi %1039, %1041 : vector<1x256xi1>
    %cst_221 = arith.constant 0.000000e+00 : f32
    %1043 = vector.shape_cast %1042 : vector<1x256xi1> to vector<1x256xi1>
    %1044 = vector.broadcast %1043 : vector<1x256xi1> to vector<4x256xi1>
    %1045 = vector.shape_cast %1031 : vector<4x1xf32> to vector<4x1xf32>
    %1046 = vector.broadcast %1045 : vector<4x1xf32> to vector<4x256xf32>
    %1047 = vector.broadcast %cst_221 : f32 to vector<4x256xf32>
    %1048 = arith.select %1044, %1046, %1047 : vector<4x256xi1>, vector<4x256xf32>
    %1049 = arith.mulf %1048, %1026 : vector<4x256xf32>
    %1050 = arith.addf %1025, %1049 : vector<4x256xf32>
    %c221_i32 = arith.constant 221 : i32
    %1051 = tpu.dynamic_rotate %35 by %c221_i32 dim 1 : vector<4x256xf32>, i32 -> vector<4x256xf32>
    %c41 = arith.constant 41 : index
    %1052 = memref.load %arg7[%c41] : memref<98xf32, #tpu.memory_space<smem>>
    %c90 = arith.constant 90 : index
    %1053 = memref.load %arg7[%c90] : memref<98xf32, #tpu.memory_space<smem>>
    %1054 = vector.broadcast %1053 : f32 to vector<4x1xf32>
    %1055 = vector.broadcast %1052 : f32 to vector<4x1xf32>
    %1056 = arith.select %41, %1054, %1055 : vector<4x1xi1>, vector<4x1xf32>
    %c-2_i32_222 = arith.constant -2 : i32
    %1057 = vector.broadcast %c-2_i32_222 : i32 to vector<1x256xi32>
    %1058 = arith.cmpi sge, %37, %1057 : vector<1x256xi32>
    %c14_i32_223 = arith.constant 14 : i32
    %1059 = vector.broadcast %c14_i32_223 : i32 to vector<1x256xi32>
    %1060 = arith.cmpi slt, %37, %1059 : vector<1x256xi32>
    %1061 = arith.andi %1058, %1060 : vector<1x256xi1>
    %c-3_i32_224 = arith.constant -3 : i32
    %1062 = vector.broadcast %c-3_i32_224 : i32 to vector<1x256xi32>
    %1063 = arith.cmpi sge, %38, %1062 : vector<1x256xi32>
    %1064 = arith.andi %1061, %1063 : vector<1x256xi1>
    %c13_i32_225 = arith.constant 13 : i32
    %1065 = vector.broadcast %c13_i32_225 : i32 to vector<1x256xi32>
    %1066 = arith.cmpi slt, %38, %1065 : vector<1x256xi32>
    %1067 = arith.andi %1064, %1066 : vector<1x256xi1>
    %cst_226 = arith.constant 0.000000e+00 : f32
    %1068 = vector.shape_cast %1067 : vector<1x256xi1> to vector<1x256xi1>
    %1069 = vector.broadcast %1068 : vector<1x256xi1> to vector<4x256xi1>
    %1070 = vector.shape_cast %1056 : vector<4x1xf32> to vector<4x1xf32>
    %1071 = vector.broadcast %1070 : vector<4x1xf32> to vector<4x256xf32>
    %1072 = vector.broadcast %cst_226 : f32 to vector<4x256xf32>
    %1073 = arith.select %1069, %1071, %1072 : vector<4x256xi1>, vector<4x256xf32>
    %1074 = arith.mulf %1073, %1051 : vector<4x256xf32>
    %1075 = arith.addf %1050, %1074 : vector<4x256xf32>
    %c211_i32 = arith.constant 211 : i32
    %1076 = tpu.dynamic_rotate %35 by %c211_i32 dim 1 : vector<4x256xf32>, i32 -> vector<4x256xf32>
    %c42 = arith.constant 42 : index
    %1077 = memref.load %arg7[%c42] : memref<98xf32, #tpu.memory_space<smem>>
    %c91 = arith.constant 91 : index
    %1078 = memref.load %arg7[%c91] : memref<98xf32, #tpu.memory_space<smem>>
    %1079 = vector.broadcast %1078 : f32 to vector<4x1xf32>
    %1080 = vector.broadcast %1077 : f32 to vector<4x1xf32>
    %1081 = arith.select %41, %1079, %1080 : vector<4x1xi1>, vector<4x1xf32>
    %c-3_i32_227 = arith.constant -3 : i32
    %1082 = vector.broadcast %c-3_i32_227 : i32 to vector<1x256xi32>
    %1083 = arith.cmpi sge, %37, %1082 : vector<1x256xi32>
    %c13_i32_228 = arith.constant 13 : i32
    %1084 = vector.broadcast %c13_i32_228 : i32 to vector<1x256xi32>
    %1085 = arith.cmpi slt, %37, %1084 : vector<1x256xi32>
    %1086 = arith.andi %1083, %1085 : vector<1x256xi1>
    %c3_i32_229 = arith.constant 3 : i32
    %1087 = vector.broadcast %c3_i32_229 : i32 to vector<1x256xi32>
    %1088 = arith.cmpi sge, %38, %1087 : vector<1x256xi32>
    %1089 = arith.andi %1086, %1088 : vector<1x256xi1>
    %c19_i32_230 = arith.constant 19 : i32
    %1090 = vector.broadcast %c19_i32_230 : i32 to vector<1x256xi32>
    %1091 = arith.cmpi slt, %38, %1090 : vector<1x256xi32>
    %1092 = arith.andi %1089, %1091 : vector<1x256xi1>
    %cst_231 = arith.constant 0.000000e+00 : f32
    %1093 = vector.shape_cast %1092 : vector<1x256xi1> to vector<1x256xi1>
    %1094 = vector.broadcast %1093 : vector<1x256xi1> to vector<4x256xi1>
    %1095 = vector.shape_cast %1081 : vector<4x1xf32> to vector<4x1xf32>
    %1096 = vector.broadcast %1095 : vector<4x1xf32> to vector<4x256xf32>
    %1097 = vector.broadcast %cst_231 : f32 to vector<4x256xf32>
    %1098 = arith.select %1094, %1096, %1097 : vector<4x256xi1>, vector<4x256xf32>
    %1099 = arith.mulf %1098, %1076 : vector<4x256xf32>
    %1100 = arith.addf %1075, %1099 : vector<4x256xf32>
    %c210_i32 = arith.constant 210 : i32
    %1101 = tpu.dynamic_rotate %35 by %c210_i32 dim 1 : vector<4x256xf32>, i32 -> vector<4x256xf32>
    %c43 = arith.constant 43 : index
    %1102 = memref.load %arg7[%c43] : memref<98xf32, #tpu.memory_space<smem>>
    %c92 = arith.constant 92 : index
    %1103 = memref.load %arg7[%c92] : memref<98xf32, #tpu.memory_space<smem>>
    %1104 = vector.broadcast %1103 : f32 to vector<4x1xf32>
    %1105 = vector.broadcast %1102 : f32 to vector<4x1xf32>
    %1106 = arith.select %41, %1104, %1105 : vector<4x1xi1>, vector<4x1xf32>
    %c-3_i32_232 = arith.constant -3 : i32
    %1107 = vector.broadcast %c-3_i32_232 : i32 to vector<1x256xi32>
    %1108 = arith.cmpi sge, %37, %1107 : vector<1x256xi32>
    %c13_i32_233 = arith.constant 13 : i32
    %1109 = vector.broadcast %c13_i32_233 : i32 to vector<1x256xi32>
    %1110 = arith.cmpi slt, %37, %1109 : vector<1x256xi32>
    %1111 = arith.andi %1108, %1110 : vector<1x256xi1>
    %c2_i32_234 = arith.constant 2 : i32
    %1112 = vector.broadcast %c2_i32_234 : i32 to vector<1x256xi32>
    %1113 = arith.cmpi sge, %38, %1112 : vector<1x256xi32>
    %1114 = arith.andi %1111, %1113 : vector<1x256xi1>
    %c18_i32_235 = arith.constant 18 : i32
    %1115 = vector.broadcast %c18_i32_235 : i32 to vector<1x256xi32>
    %1116 = arith.cmpi slt, %38, %1115 : vector<1x256xi32>
    %1117 = arith.andi %1114, %1116 : vector<1x256xi1>
    %cst_236 = arith.constant 0.000000e+00 : f32
    %1118 = vector.shape_cast %1117 : vector<1x256xi1> to vector<1x256xi1>
    %1119 = vector.broadcast %1118 : vector<1x256xi1> to vector<4x256xi1>
    %1120 = vector.shape_cast %1106 : vector<4x1xf32> to vector<4x1xf32>
    %1121 = vector.broadcast %1120 : vector<4x1xf32> to vector<4x256xf32>
    %1122 = vector.broadcast %cst_236 : f32 to vector<4x256xf32>
    %1123 = arith.select %1119, %1121, %1122 : vector<4x256xi1>, vector<4x256xf32>
    %1124 = arith.mulf %1123, %1101 : vector<4x256xf32>
    %1125 = arith.addf %1100, %1124 : vector<4x256xf32>
    %c209_i32 = arith.constant 209 : i32
    %1126 = tpu.dynamic_rotate %35 by %c209_i32 dim 1 : vector<4x256xf32>, i32 -> vector<4x256xf32>
    %c44 = arith.constant 44 : index
    %1127 = memref.load %arg7[%c44] : memref<98xf32, #tpu.memory_space<smem>>
    %c93 = arith.constant 93 : index
    %1128 = memref.load %arg7[%c93] : memref<98xf32, #tpu.memory_space<smem>>
    %1129 = vector.broadcast %1128 : f32 to vector<4x1xf32>
    %1130 = vector.broadcast %1127 : f32 to vector<4x1xf32>
    %1131 = arith.select %41, %1129, %1130 : vector<4x1xi1>, vector<4x1xf32>
    %c-3_i32_237 = arith.constant -3 : i32
    %1132 = vector.broadcast %c-3_i32_237 : i32 to vector<1x256xi32>
    %1133 = arith.cmpi sge, %37, %1132 : vector<1x256xi32>
    %c13_i32_238 = arith.constant 13 : i32
    %1134 = vector.broadcast %c13_i32_238 : i32 to vector<1x256xi32>
    %1135 = arith.cmpi slt, %37, %1134 : vector<1x256xi32>
    %1136 = arith.andi %1133, %1135 : vector<1x256xi1>
    %c1_i32_239 = arith.constant 1 : i32
    %1137 = vector.broadcast %c1_i32_239 : i32 to vector<1x256xi32>
    %1138 = arith.cmpi sge, %38, %1137 : vector<1x256xi32>
    %1139 = arith.andi %1136, %1138 : vector<1x256xi1>
    %c17_i32_240 = arith.constant 17 : i32
    %1140 = vector.broadcast %c17_i32_240 : i32 to vector<1x256xi32>
    %1141 = arith.cmpi slt, %38, %1140 : vector<1x256xi32>
    %1142 = arith.andi %1139, %1141 : vector<1x256xi1>
    %cst_241 = arith.constant 0.000000e+00 : f32
    %1143 = vector.shape_cast %1142 : vector<1x256xi1> to vector<1x256xi1>
    %1144 = vector.broadcast %1143 : vector<1x256xi1> to vector<4x256xi1>
    %1145 = vector.shape_cast %1131 : vector<4x1xf32> to vector<4x1xf32>
    %1146 = vector.broadcast %1145 : vector<4x1xf32> to vector<4x256xf32>
    %1147 = vector.broadcast %cst_241 : f32 to vector<4x256xf32>
    %1148 = arith.select %1144, %1146, %1147 : vector<4x256xi1>, vector<4x256xf32>
    %1149 = arith.mulf %1148, %1126 : vector<4x256xf32>
    %1150 = arith.addf %1125, %1149 : vector<4x256xf32>
    %c208_i32 = arith.constant 208 : i32
    %1151 = tpu.dynamic_rotate %35 by %c208_i32 dim 1 : vector<4x256xf32>, i32 -> vector<4x256xf32>
    %c45 = arith.constant 45 : index
    %1152 = memref.load %arg7[%c45] : memref<98xf32, #tpu.memory_space<smem>>
    %c94 = arith.constant 94 : index
    %1153 = memref.load %arg7[%c94] : memref<98xf32, #tpu.memory_space<smem>>
    %1154 = vector.broadcast %1153 : f32 to vector<4x1xf32>
    %1155 = vector.broadcast %1152 : f32 to vector<4x1xf32>
    %1156 = arith.select %41, %1154, %1155 : vector<4x1xi1>, vector<4x1xf32>
    %c-3_i32_242 = arith.constant -3 : i32
    %1157 = vector.broadcast %c-3_i32_242 : i32 to vector<1x256xi32>
    %1158 = arith.cmpi sge, %37, %1157 : vector<1x256xi32>
    %c13_i32_243 = arith.constant 13 : i32
    %1159 = vector.broadcast %c13_i32_243 : i32 to vector<1x256xi32>
    %1160 = arith.cmpi slt, %37, %1159 : vector<1x256xi32>
    %1161 = arith.andi %1158, %1160 : vector<1x256xi1>
    %c0_i32_244 = arith.constant 0 : i32
    %1162 = vector.broadcast %c0_i32_244 : i32 to vector<1x256xi32>
    %1163 = arith.cmpi sge, %38, %1162 : vector<1x256xi32>
    %1164 = arith.andi %1161, %1163 : vector<1x256xi1>
    %c16_i32_245 = arith.constant 16 : i32
    %1165 = vector.broadcast %c16_i32_245 : i32 to vector<1x256xi32>
    %1166 = arith.cmpi slt, %38, %1165 : vector<1x256xi32>
    %1167 = arith.andi %1164, %1166 : vector<1x256xi1>
    %cst_246 = arith.constant 0.000000e+00 : f32
    %1168 = vector.shape_cast %1167 : vector<1x256xi1> to vector<1x256xi1>
    %1169 = vector.broadcast %1168 : vector<1x256xi1> to vector<4x256xi1>
    %1170 = vector.shape_cast %1156 : vector<4x1xf32> to vector<4x1xf32>
    %1171 = vector.broadcast %1170 : vector<4x1xf32> to vector<4x256xf32>
    %1172 = vector.broadcast %cst_246 : f32 to vector<4x256xf32>
    %1173 = arith.select %1169, %1171, %1172 : vector<4x256xi1>, vector<4x256xf32>
    %1174 = arith.mulf %1173, %1151 : vector<4x256xf32>
    %1175 = arith.addf %1150, %1174 : vector<4x256xf32>
    %c207_i32 = arith.constant 207 : i32
    %1176 = tpu.dynamic_rotate %35 by %c207_i32 dim 1 : vector<4x256xf32>, i32 -> vector<4x256xf32>
    %c46 = arith.constant 46 : index
    %1177 = memref.load %arg7[%c46] : memref<98xf32, #tpu.memory_space<smem>>
    %c95 = arith.constant 95 : index
    %1178 = memref.load %arg7[%c95] : memref<98xf32, #tpu.memory_space<smem>>
    %1179 = vector.broadcast %1178 : f32 to vector<4x1xf32>
    %1180 = vector.broadcast %1177 : f32 to vector<4x1xf32>
    %1181 = arith.select %41, %1179, %1180 : vector<4x1xi1>, vector<4x1xf32>
    %c-3_i32_247 = arith.constant -3 : i32
    %1182 = vector.broadcast %c-3_i32_247 : i32 to vector<1x256xi32>
    %1183 = arith.cmpi sge, %37, %1182 : vector<1x256xi32>
    %c13_i32_248 = arith.constant 13 : i32
    %1184 = vector.broadcast %c13_i32_248 : i32 to vector<1x256xi32>
    %1185 = arith.cmpi slt, %37, %1184 : vector<1x256xi32>
    %1186 = arith.andi %1183, %1185 : vector<1x256xi1>
    %c-1_i32_249 = arith.constant -1 : i32
    %1187 = vector.broadcast %c-1_i32_249 : i32 to vector<1x256xi32>
    %1188 = arith.cmpi sge, %38, %1187 : vector<1x256xi32>
    %1189 = arith.andi %1186, %1188 : vector<1x256xi1>
    %c15_i32_250 = arith.constant 15 : i32
    %1190 = vector.broadcast %c15_i32_250 : i32 to vector<1x256xi32>
    %1191 = arith.cmpi slt, %38, %1190 : vector<1x256xi32>
    %1192 = arith.andi %1189, %1191 : vector<1x256xi1>
    %cst_251 = arith.constant 0.000000e+00 : f32
    %1193 = vector.shape_cast %1192 : vector<1x256xi1> to vector<1x256xi1>
    %1194 = vector.broadcast %1193 : vector<1x256xi1> to vector<4x256xi1>
    %1195 = vector.shape_cast %1181 : vector<4x1xf32> to vector<4x1xf32>
    %1196 = vector.broadcast %1195 : vector<4x1xf32> to vector<4x256xf32>
    %1197 = vector.broadcast %cst_251 : f32 to vector<4x256xf32>
    %1198 = arith.select %1194, %1196, %1197 : vector<4x256xi1>, vector<4x256xf32>
    %1199 = arith.mulf %1198, %1176 : vector<4x256xf32>
    %1200 = arith.addf %1175, %1199 : vector<4x256xf32>
    %c206_i32 = arith.constant 206 : i32
    %1201 = tpu.dynamic_rotate %35 by %c206_i32 dim 1 : vector<4x256xf32>, i32 -> vector<4x256xf32>
    %c47 = arith.constant 47 : index
    %1202 = memref.load %arg7[%c47] : memref<98xf32, #tpu.memory_space<smem>>
    %c96 = arith.constant 96 : index
    %1203 = memref.load %arg7[%c96] : memref<98xf32, #tpu.memory_space<smem>>
    %1204 = vector.broadcast %1203 : f32 to vector<4x1xf32>
    %1205 = vector.broadcast %1202 : f32 to vector<4x1xf32>
    %1206 = arith.select %41, %1204, %1205 : vector<4x1xi1>, vector<4x1xf32>
    %c-3_i32_252 = arith.constant -3 : i32
    %1207 = vector.broadcast %c-3_i32_252 : i32 to vector<1x256xi32>
    %1208 = arith.cmpi sge, %37, %1207 : vector<1x256xi32>
    %c13_i32_253 = arith.constant 13 : i32
    %1209 = vector.broadcast %c13_i32_253 : i32 to vector<1x256xi32>
    %1210 = arith.cmpi slt, %37, %1209 : vector<1x256xi32>
    %1211 = arith.andi %1208, %1210 : vector<1x256xi1>
    %c-2_i32_254 = arith.constant -2 : i32
    %1212 = vector.broadcast %c-2_i32_254 : i32 to vector<1x256xi32>
    %1213 = arith.cmpi sge, %38, %1212 : vector<1x256xi32>
    %1214 = arith.andi %1211, %1213 : vector<1x256xi1>
    %c14_i32_255 = arith.constant 14 : i32
    %1215 = vector.broadcast %c14_i32_255 : i32 to vector<1x256xi32>
    %1216 = arith.cmpi slt, %38, %1215 : vector<1x256xi32>
    %1217 = arith.andi %1214, %1216 : vector<1x256xi1>
    %cst_256 = arith.constant 0.000000e+00 : f32
    %1218 = vector.shape_cast %1217 : vector<1x256xi1> to vector<1x256xi1>
    %1219 = vector.broadcast %1218 : vector<1x256xi1> to vector<4x256xi1>
    %1220 = vector.shape_cast %1206 : vector<4x1xf32> to vector<4x1xf32>
    %1221 = vector.broadcast %1220 : vector<4x1xf32> to vector<4x256xf32>
    %1222 = vector.broadcast %cst_256 : f32 to vector<4x256xf32>
    %1223 = arith.select %1219, %1221, %1222 : vector<4x256xi1>, vector<4x256xf32>
    %1224 = arith.mulf %1223, %1201 : vector<4x256xf32>
    %1225 = arith.addf %1200, %1224 : vector<4x256xf32>
    %c205_i32 = arith.constant 205 : i32
    %1226 = tpu.dynamic_rotate %35 by %c205_i32 dim 1 : vector<4x256xf32>, i32 -> vector<4x256xf32>
    %c48 = arith.constant 48 : index
    %1227 = memref.load %arg7[%c48] : memref<98xf32, #tpu.memory_space<smem>>
    %c97 = arith.constant 97 : index
    %1228 = memref.load %arg7[%c97] : memref<98xf32, #tpu.memory_space<smem>>
    %1229 = vector.broadcast %1228 : f32 to vector<4x1xf32>
    %1230 = vector.broadcast %1227 : f32 to vector<4x1xf32>
    %1231 = arith.select %41, %1229, %1230 : vector<4x1xi1>, vector<4x1xf32>
    %c-3_i32_257 = arith.constant -3 : i32
    %1232 = vector.broadcast %c-3_i32_257 : i32 to vector<1x256xi32>
    %1233 = arith.cmpi sge, %37, %1232 : vector<1x256xi32>
    %c13_i32_258 = arith.constant 13 : i32
    %1234 = vector.broadcast %c13_i32_258 : i32 to vector<1x256xi32>
    %1235 = arith.cmpi slt, %37, %1234 : vector<1x256xi32>
    %1236 = arith.andi %1233, %1235 : vector<1x256xi1>
    %c-3_i32_259 = arith.constant -3 : i32
    %1237 = vector.broadcast %c-3_i32_259 : i32 to vector<1x256xi32>
    %1238 = arith.cmpi sge, %38, %1237 : vector<1x256xi32>
    %1239 = arith.andi %1236, %1238 : vector<1x256xi1>
    %c13_i32_260 = arith.constant 13 : i32
    %1240 = vector.broadcast %c13_i32_260 : i32 to vector<1x256xi32>
    %1241 = arith.cmpi slt, %38, %1240 : vector<1x256xi32>
    %1242 = arith.andi %1239, %1241 : vector<1x256xi1>
    %cst_261 = arith.constant 0.000000e+00 : f32
    %1243 = vector.shape_cast %1242 : vector<1x256xi1> to vector<1x256xi1>
    %1244 = vector.broadcast %1243 : vector<1x256xi1> to vector<4x256xi1>
    %1245 = vector.shape_cast %1231 : vector<4x1xf32> to vector<4x1xf32>
    %1246 = vector.broadcast %1245 : vector<4x1xf32> to vector<4x256xf32>
    %1247 = vector.broadcast %cst_261 : f32 to vector<4x256xf32>
    %1248 = arith.select %1244, %1246, %1247 : vector<4x256xi1>, vector<4x256xf32>
    %1249 = arith.mulf %1248, %1226 : vector<4x256xf32>
    %1250 = arith.addf %1225, %1249 : vector<4x256xf32>
    %1251 = vector.extract_strided_slice %1250 {offsets = [0, 0], sizes = [2, 256], strides = [1, 1]} : vector<4x256xf32> to vector<2x256xf32>
    %1252 = vector.extract_strided_slice %1250 {offsets = [2, 0], sizes = [2, 256], strides = [1, 1]} : vector<4x256xf32> to vector<2x256xf32>
    %1253 = arith.addf %1251, %1252 : vector<2x256xf32>
    %c0_262 = arith.constant 0 : index
    %1254 = memref.load %arg8[%c0_262] : memref<1xf32, #tpu.memory_space<smem>>
    %1255 = vector.broadcast %1254 : f32 to vector<2x256xf32>
    %1256 = arith.addf %1253, %1255 : vector<2x256xf32>
    %cst_263 = arith.constant 0.000000e+00 : f32
    %1257 = vector.broadcast %cst_263 : f32 to vector<2x256xf32>
    %1258 = arith.subf %1257, %1256 : vector<2x256xf32>
    %1259 = math.exp %1258 : vector<2x256xf32>
    %cst_264 = arith.constant 1.000000e+00 : f32
    %1260 = vector.broadcast %cst_264 : f32 to vector<2x256xf32>
    %1261 = arith.addf %1260, %1259 : vector<2x256xf32>
    %1262 = tpu.reciprocal %1261 {approx = true} : vector<2x256xf32> -> vector<2x256xf32>
    %1263 = vector.shape_cast %1262 : vector<2x256xf32> to vector<2x1x256xf32>
    %1264 = vector.broadcast %1263 : vector<2x1x256xf32> to vector<2x16x256xf32>
    %1265 = arith.mulf %30, %1264 : vector<2x16x256xf32>
    %c0_265 = arith.constant 0 : index
    %c0_266 = arith.constant 0 : index
    %c0_267 = arith.constant 0 : index
    %1266 = vector.load %arg9[%c0_265, %c0_266, %c0_267] : memref<2x16x256xf32, #tpu.memory_space<vmem>>, vector<2x16x256xf32>
    tpu.vector_store %arg9[%c0_265, %c0_266, %c0_267], %1265 {strides = array<i32>} : memref<2x16x256xf32, #tpu.memory_space<vmem>>, vector<2x16x256xf32>,
    return
  }
  func.func @transform_0(%arg0: i32) -> (i32, i32, i32) {
    %c0_i32 = arith.constant 0 : i32
    %c0_i32_0 = arith.constant 0 : i32
    %c0_i32_1 = arith.constant 0 : i32
    return %arg0, %c0_i32, %c0_i32_0 : i32, i32, i32
  }
  func.func @transform_1(%arg0: i32) -> (i32, i32) {
    %c0_i32 = arith.constant 0 : i32
    %c0_i32_0 = arith.constant 0 : i32
    %c0_i32_1 = arith.constant 0 : i32
    return %c0_i32, %c0_i32_0 : i32, i32
  }
  func.func @transform_2(%arg0: i32) -> (i32, i32) {
    %c0_i32 = arith.constant 0 : i32
    %c0_i32_0 = arith.constant 0 : i32
    %c0_i32_1 = arith.constant 0 : i32
    return %c0_i32, %c0_i32_0 : i32, i32
  }
  func.func @transform_3(%arg0: i32) -> (i32, i32) {
    %c0_i32 = arith.constant 0 : i32
    %c0_i32_0 = arith.constant 0 : i32
    %c0_i32_1 = arith.constant 0 : i32
    return %c0_i32, %c0_i32_0 : i32, i32
  }
  func.func @transform_4(%arg0: i32) -> (i32, i32) {
    %c0_i32 = arith.constant 0 : i32
    %c0_i32_0 = arith.constant 0 : i32
    %c0_i32_1 = arith.constant 0 : i32
    return %c0_i32, %c0_i32_0 : i32, i32
  }
  func.func @transform_5(%arg0: i32) -> (i32, i32) {
    %c0_i32 = arith.constant 0 : i32
    %c0_i32_0 = arith.constant 0 : i32
    %c0_i32_1 = arith.constant 0 : i32
    return %c0_i32, %c0_i32_0 : i32, i32
  }
  func.func @transform_6(%arg0: i32) -> i32 {
    %c0_i32 = arith.constant 0 : i32
    %c0_i32_0 = arith.constant 0 : i32
    return %c0_i32 : i32
  }
  func.func @transform_7(%arg0: i32) -> i32 {
    %c0_i32 = arith.constant 0 : i32
    %c0_i32_0 = arith.constant 0 : i32
    return %c0_i32 : i32
  }
  func.func @transform_8(%arg0: i32) -> (i32, i32, i32) {
    %c0_i32 = arith.constant 0 : i32
    %c0_i32_0 = arith.constant 0 : i32
    %c0_i32_1 = arith.constant 0 : i32
    return %arg0, %c0_i32, %c0_i32_0 : i32, i32, i32
  }
}

</mosaic_0001>

<bundles_post_ra>
// kernel: tpu_custom_call.1
= control target key start
LH: loop header
LB: loop body
LE: loop exit
PB: predicated region body
PF: predicated region fallthrough
CT: control target
= control target key end

     0   :  { %14 = vsyncpa [#allocation4], 0  ;;  %s5840_s0 = inlined_call_operand.hbm [shape: f32[2,16,256], index: 0, kind: input, shape index: {}]   ;;  %s5841_s1 = inlined_call_operand.hbm [shape: f32[16,2], index: 1, kind: input, shape index: {}]   ;;  %s5842_s2 = inlined_call_operand.hbm [shape: f32[1,2], index: 2, kind: input, shape index: {}]   ;;  %s5843_s3 = inlined_call_operand.hbm [shape: f32[2,16], index: 3, kind: input, shape index: {}]   ;;  %s5844_s4 = inlined_call_operand.hbm [shape: f32[1,16], index: 4, kind: input, shape index: {}]   ;;  %s5845_s5 = inlined_call_operand.hbm [shape: s32[2,256], index: 5, kind: input, shape index: {}]   ;;  %s5846_s6 = inlined_call_operand.hbm [shape: f32[98], index: 6, kind: input, shape index: {}]   ;;  %s5847_s7 = inlined_call_operand.<no memory space> [shape: f32[1], index: 7, kind: input, shape index: {}]   ;;  %s5848_s8 = inlined_call_operand.hbm [shape: f32[2,16,256], index: 8, kind: output, shape index: {}]  }
   0x1   :  { %15 = vsyncpa [#allocation8], 0 }
   0x2   :  { %16 = vsyncpa [#allocation11], 0 }
   0x3   :  { %17 = vsyncpa [#allocation14], 0 }
   0x4   :  { %18 = vsyncpa [#allocation6], 0 }
   0x5   :  { %19 = vsyncpa [#allocation5], 0  ;;  %s2951_s27 = smov [#allocation7]   ;;  %s2775_s9 = scalar_lea.hbm %s5841_s1, 256 }
   0x6   :  { %s37_s28 = sshll.u32 %s2951_s27, 4  ;;  %p2776_p0 = scmp.ne.s32.totalorder %s5841_s1, %s2775_s9  ;;  %s38_s28 = int_to_ptr.vmem [resolvable:$true] %s37_s28 }
   0x7   :  { %p2779_p1 = scmp.lt.u32.totalorder %s2775_s9, %s5841_s1 }
   0x9   :  { %p2781_p2 = pnand %p2779_p1, %p2776_p0 }
   0xb   :  { %2784 = shalt.err (!%p2781_p2)
}
   0xc   :  { %s2785_s14 = scalar_lea.vmem %s38_s28, 256  ;;  %p2790_p4 = scmp.lt.s32.totalorder %s38_s28, %s38_s28 }
   0xd   :  { %p2786_p3 = scmp.ne.s32.totalorder %s38_s28, %s2785_s14  ;;  %p2791_p5 = scmp.lt.s32.totalorder %s2785_s14, %s2785_s14 }
   0xf   :  { %p2792_p6 = por %p2791_p5, %p2790_p4 }
  0x11   :  { %p2793_p7 = pnand %p2792_p6, %p2786_p3 }
  0x13   :  { %2796 = shalt.err (!%p2793_p7)
}
  0x14   :  { %s2952_s15 = smov 128   ;;  %s2953_s16 = smov 8  }
  0x15   :  { %43 = dma.hbm_to_vmem [thread:$0]  %s5841_s1, 256, %s38_s28, [#allocation8], %s2952_s15, %s2952_s15, %s2953_s16  }
  0x16   :  { %s2954_s19 = smov [#allocation10]   ;;  %s2955_s21 = smov [#allocation3]  }
  0x17   :  { %s60_s20 = sshll.u32 %s2954_s19, 4  ;;  %s25_s22 = sshll.u32 %s2955_s21, 4  ;;  %s61_s20 = int_to_ptr.vmem [resolvable:$true] %s60_s20  ;;  %s26_s22 = int_to_ptr.vmem [resolvable:$true] %s25_s22 }
  0x18   :  { %s2797_s25 = scalar_lea.hbm %s5843_s3, 32 }
  0x19   :  { %p2798_p8 = scmp.ne.s32.totalorder %s5843_s3, %s2797_s25  ;;  %p2801_p9 = scmp.lt.u32.totalorder %s2797_s25, %s5843_s3 }
  0x1b   :  { %p2803_p10 = pnand %p2801_p9, %p2798_p8 }
  0x1d   :  { %2806 = shalt.err (!%p2803_p10)
}
  0x1e   :  { %s2807_s1 = scalar_lea.vmem %s61_s20, 32  ;;  %p2812_p12 = scmp.lt.s32.totalorder %s61_s20, %s61_s20 }
  0x1f   :  { %p2808_p11 = scmp.ne.s32.totalorder %s61_s20, %s2807_s1  ;;  %p2813_p13 = scmp.lt.s32.totalorder %s2807_s1, %s2807_s1 }
  0x21   :  { %p2814_p0 = por %p2813_p13, %p2812_p12 }
  0x23   :  { %p2815_p1 = pnand %p2814_p0, %p2808_p11 }
  0x25   :  { %2818 = shalt.err (!%p2815_p1)
}
  0x26   :  { %63 = dma.hbm_to_vmem [thread:$0]  %s5843_s3, 32, %s61_s20, [#allocation11]  }
  0x27   :  { %s2819_s12 = scalar_lea.hbm %s5840_s0, 1024 }
  0x28   :  { %p2820_p2 = scmp.ne.s32.totalorder %s5840_s0, %s2819_s12  ;;  %p2823_p3 = scmp.lt.u32.totalorder %s2819_s12, %s5840_s0 }
  0x2a   :  { %p2825_p4 = pnand %p2823_p3, %p2820_p2 }
  0x2c   :  { %2828 = shalt.err (!%p2825_p4)
}
  0x2d   :  { %s2829_s17 = scalar_lea.vmem %s26_s22, 1024  ;;  %p2834_p6 = scmp.lt.s32.totalorder %s26_s22, %s26_s22 }
  0x2e   :  { %p2830_p5 = scmp.ne.s32.totalorder %s26_s22, %s2829_s17  ;;  %p2835_p7 = scmp.lt.s32.totalorder %s2829_s17, %s2829_s17 }
  0x30   :  { %p2836_p8 = por %p2835_p7, %p2834_p6 }
  0x32   :  { %p2837_p9 = pnand %p2836_p8, %p2830_p5 }
  0x34   :  { %2840 = shalt.err (!%p2837_p9)
}
  0x35   :  { %s2956_s3 = smov 256   ;;  %s2957_s18 = smov 16  }
  0x36   :  { %31 = dma.hbm_to_vmem [thread:$0]  %s5840_s0, 1024, %s26_s22, [#allocation4], %s2956_s3, %s2956_s3, %s2957_s18  }
  0x37   :  { %s2958_s21 = smov [#allocation9]   ;;  %s2959_s24 = smov [#allocation12]  }
  0x38   :  { %s50_s23 = sshll.u32 %s2958_s21, 4  ;;  %s70_s25 = sshll.u32 %s2959_s24, 4  ;;  %s51_s23 = int_to_ptr.vmem [resolvable:$true] %s50_s23  ;;  %s71_s25 = int_to_ptr.vmem [resolvable:$true] %s70_s25 }
  0x39   :  { %s2841_s29 = scalar_lea.hbm %s5842_s2, 16 }
  0x3a   :  { %p2842_p10 = scmp.ne.s32.totalorder %s5842_s2, %s2841_s29  ;;  %p2845_p11 = scmp.lt.u32.totalorder %s2841_s29, %s5842_s2 }
  0x3c   :  { %p2847_p12 = pnand %p2845_p11, %p2842_p10 }
  0x3e   :  { %2850 = shalt.err (!%p2847_p12)
}
  0x3f   :  { %s2851_s0 = scalar_lea.vmem %s51_s23, 16  ;;  %s2855_s22 = scalar_lea.vmem %s51_s23, 32 }
  0x40   :  { %p2852_p13 = scmp.ne.s32.totalorder %s51_s23, %s2851_s0  ;;  %p2856_p0 = scmp.lt.s32.totalorder %s51_s23, %s51_s23 }
  0x41   :  { %p2857_p1 = scmp.lt.s32.totalorder %s2855_s22, %s2851_s0 }
  0x43   :  { %p2858_p2 = por %p2857_p1, %p2856_p0 }
  0x45   :  { %p2859_p3 = pnand %p2858_p2, %p2852_p13 }
  0x47   :  { %2862 = shalt.err (!%p2859_p3)
}
  0x48   :  { %53 = dma.hbm_to_vmem [thread:$0]  %s5842_s2, 16, %s51_s23, [#allocation8]  }
  0x49   :  { %s2863_s14 = scalar_lea.hbm %s5844_s4, 16 }
  0x4a   :  { %p2864_p4 = scmp.ne.s32.totalorder %s5844_s4, %s2863_s14  ;;  %p2867_p5 = scmp.lt.u32.totalorder %s2863_s14, %s5844_s4 }
  0x4c   :  { %p2869_p6 = pnand %p2867_p5, %p2864_p4 }
  0x4e   :  { %2872 = shalt.err (!%p2869_p6)
}
  0x4f   :  { %s2873_s20 = scalar_lea.vmem %s71_s25, 16  ;;  %s2877_s21 = scalar_lea.vmem %s71_s25, 32 }
  0x50   :  { %p2874_p7 = scmp.ne.s32.totalorder %s71_s25, %s2873_s20  ;;  %p2878_p8 = scmp.lt.s32.totalorder %s71_s25, %s71_s25 }
  0x51   :  { %p2879_p9 = scmp.lt.s32.totalorder %s2877_s21, %s2873_s20 }
  0x53   :  { %p2880_p10 = por %p2879_p9, %p2878_p8 }
  0x55   :  { %p2881_p11 = pnand %p2880_p10, %p2874_p7 }
  0x57   :  { %2884 = shalt.err (!%p2881_p11)
}
  0x58   :  { %73 = dma.hbm_to_vmem [thread:$0]  %s5844_s4, 16, %s71_s25, [#allocation11]  }
  0x59   :  { %s2960_s24 = smov [#allocation13]   ;;  %s2885_s30 = scalar_lea.hbm %s5845_s5, 64 }
  0x5a   :  { %s80_s26 = sshll.u32 %s2960_s24, 4  ;;  %p2886_p12 = scmp.ne.s32.totalorder %s5845_s5, %s2885_s30  ;;  %s81_s26 = int_to_ptr.vmem [resolvable:$true] %s80_s26 }
  0x5b   :  { %p2889_p13 = scmp.lt.u32.totalorder %s2885_s30, %s5845_s5 }
  0x5d   :  { %p2891_p0 = pnand %p2889_p13, %p2886_p12 }
  0x5f   :  { %2894 = shalt.err (!%p2891_p0)
}
  0x60   :  { %s2895_s22 = scalar_lea.vmem %s81_s26, 64  ;;  %p2900_p2 = scmp.lt.s32.totalorder %s81_s26, %s81_s26 }
  0x61   :  { %p2896_p1 = scmp.ne.s32.totalorder %s81_s26, %s2895_s22  ;;  %p2901_p3 = scmp.lt.s32.totalorder %s2895_s22, %s2895_s22 }
  0x63   :  { %p2902_p4 = por %p2901_p3, %p2900_p2 }
  0x65   :  { %p2903_p5 = pnand %p2902_p4, %p2896_p1 }
  0x67   :  { %2906 = shalt.err (!%p2903_p5)
}
  0x68   :  { %83 = dma.hbm_to_vmem [thread:$0]  %s5845_s5, 64, %s81_s26, [#allocation14]  }
  0x69   :  { %s2907_s12 = scalar_lea.hbm %s5846_s6, 16 }
  0x6a   :  { %p2908_p6 = scmp.ne.s32.totalorder %s5846_s6, %s2907_s12  ;;  %p2911_p7 = scmp.lt.u32.totalorder %s2907_s12, %s5846_s6 }
  0x6c   :  { %p2913_p8 = pnand %p2911_p7, %p2908_p6 }
  0x6e   :  { %2916 = shalt.err (!%p2913_p8)
}
  0x6f   :  { %s2961_s17 = smov [#allocation15]  }
  0x70   :  { %91 = dma.hbm_to_smem %s5846_s6, 16, %s2961_s17, [#allocation6]  }
  0x71   :  { %2939 = dma.done.wait [#allocation4], 1024  }
  0x72   :  { %2940 = vsyncadd [#allocation4], 4294966272 }
  0x73   :  { %2941 = dma.done.wait [#allocation8], 272  }
  0x74   :  { %2942 = vsyncadd [#allocation8], 4294967024 }
  0x75   :  { %2943 = dma.done.wait [#allocation11], 48  }
  0x76   :  { %2944 = vsyncadd [#allocation11], 4294967248 }
  0x77   :  { %2945 = dma.done.wait [#allocation14], 64  }
  0x78   :  { %2946 = vsyncadd [#allocation14], 4294967232 }
  0x79   :  { %2947 = dma.done.wait [#allocation6], 16  }
  0x7a   :  { %2948 = vsyncadd [#allocation6], 4294967280 }
  0x7b   :  { %115 = sfence }
  0x7c   :  { %v3147_v0 = vld [vmem:[#allocation3 + $0x20] sm:$0xff]  ;;  %v3149_v1 = vld [vmem:[#allocation3 + $0x28] sm:$0xff]  ;;  %v3157_v5 = vld [vmem:[#allocation3 + $0x30] sm:$0xff]  ;;  %v2962_v19 = vmov 0.0|0.0   ;;  %vm2963_vm0 = vmmov 0   ;;  %v2964_v20 = vmov 0.0   ;;  %v157_v21 = vlaneseq }
  0x7d   :  { %v3151_v2 = vld [vmem:[#allocation3] sm:$0xff]  ;;  %v130_v3 = vadd.f32 %v3149_v1, %v3147_v0  ;;  %v3155_v4 = vld [vmem:[#allocation3 + $0x8] sm:$0xff]  ;;  %v3159_v6 = vld [vmem:[#allocation3 + $0x38] sm:$0xff]  ;;  %v147_v15 = vmax.f32 %v3147_v0, %v3149_v1  ;;  %2696 = vmatprep.subr.bf16.mxu0 %v2962_v19  ;;  %2688 = vmatprep.mubr.msk.f32.mxu0 %vm2963_vm0, %v2964_v20  ;;  %vm168_vm1 = vcmask 130112   ;;  %vm179_vm2 = vcmask 1041409   ;;  %s2965_s5 = smov 51  }
  0x7e   :  { %v124_v7 = vadd.f32 %v3155_v4, %v3151_v2  ;;  %v3163_v8 = vld [vmem:[#allocation3 + $0x10] sm:$0xff]  ;;  %v3165_v9 = vld [vmem:[#allocation3 + $0x18] sm:$0xff]  ;;  %v133_v10 = vadd.f32 %v3159_v6, %v3157_v5  ;;  %v141_v13 = vmax.f32 %v3151_v2, %v3155_v4  ;;  %v150_v14 = vmax.f32 %v3157_v5, %v3159_v6  ;;  %v209_v16 = vld [vmem:[#allocation7] sm:$0xff]  ;;  %2691 = vmatprep.subr.mxu1 %v2964_v20  ;;  %s2966_s6 = smov 50   ;;  %s2967_s21 = smov 49  }
  0x7f   :  { %131 = vadd.xlane.f32.xlu1 %v130_v3  ;;  %v127_v11 = vadd.f32 %v3165_v9, %v3163_v8  ;;  %v144_v12 = vmax.f32 %v3163_v8, %v3165_v9  ;;  %v210_v17 = vld [vmem:[#allocation7 + $0x8] sm:$0xff]  ;;  %2693 = vmatprep.mubr.msk.f32.mxu1 %vm2963_vm0, %v2964_v20  ;;  %v3179_v22 = vand.u32 127, %v157_v21  ;;  %v3182_v26 = vshrl.u32 %v157_v21, 7  ;;  %v293_v54 = vld [vmem:[#allocation10] sm:$0x3]  ;;  %s2968_s2 = smov 48  }
  0x80   :  { %125 = vadd.xlane.f32.xlu0 %v124_v7  ;;  %v2697_v18 = vpack.c.bf16 %v210_v17, %v209_v16  ;;  %vm204_vm3 = vcmask 1043459   ;;  %vm207_vm4 = vcmask 1041408   ;;  %vm218_vm5 = vcmask 130048   ;;  %v2563_v55 = vld [vmem:[#allocation9] ss:$0 sm:$0xff]  ;;  %s2969_s23 = smov 47  }
  0x81   :  { %v163_v25 = vadd.s32 4294967288, %v3179_v22  ;;  %v161_v32 = vsub.s32 %v3179_v22, %v3182_v26  ;;  %2692 = vmatpush3.msk.msra.mxu1 %vm207_vm4, %v293_v54  ;;  %vm301_vm6 = vcmask 15360   ;;  %v2565_v60 = vld [vmem:[#allocation12] ss:$0 sm:$0xff]  ;;  %v3196_v17 = vsub.s32 1, %v3182_v26  ;;  %s2970_s24 = smov 46  }
  0x82   :  { %2698 = vmatpush3.bf16.msra.mxu0 %v2697_v18  ;;  %s2971_s26 = smov 45   ;;  %s2972_s27 = smov 35  }
  0x83   :  { %134 = vadd.xlane.f32.xlu1 %v133_v10  ;;  %v166_v29 = vsub.s32 %v163_v25, %v3182_v26  ;;  %5928 = vst [vmem:[#allocation23_spill] sm:$0xff] %v3196_v17  ;;  %s2973_s29 = smov 34   ;;  %s2974_s30 = smov 33  }
  0x84   :  { %128 = vadd.xlane.f32.xlu0 %v127_v11  ;;  %s2975_s1 = smov 32   ;;  %s2976_s28 = smov 31  }
  0x85   :  { %s2977_s9 = smov 30   ;;  %s2978_s0 = smov 29  }
  0x86   :  { %s2979_s22 = smov 19   ;;  %s2980_s4 = smov 18  }
  0x87   :  { %145 = vmax.xlane.f32.xlu1 %v144_v12  ;;  %s2982_s25 = smov 17   ;;  %s2983_s10 = smov 15  }
  0x88   :  { %142 = vmax.xlane.f32.xlu0 %v141_v13  ;;  %s2984_s11 = smov 14   ;;  %s3365_s12 = sld [smem:[#allocation15 + $0x31]] }
  0x89   :  { %s3375_s13 = sld [smem:[#allocation15]]  ;;  %s3383_s14 = sld [smem:[#allocation15 + $0x1]] }
  0x8a   :  { %s2985_s15 = smov 13   ;;  %s3392_s16 = sld [smem:[#allocation15 + $0x32]] }
  0x8b   :  { %151 = vmax.xlane.f32.xlu1 %v150_v14  ;;  %v3192_v14 = vsub.s32 0, %v3182_v26  ;;  %s3412_s17 = sld [smem:[#allocation15 + $0x2]]  ;;  %s3415_s19 = sld [smem:[#allocation15 + $0x33]] }
  0x8c   :  { %148 = vmax.xlane.f32.xlu0 %v147_v15  ;;  %s2986_s20 = smov 3  }
 0x10c   :  { %v132_v23 = vpop.xlane.xlu1 %131 }
 0x10d   :  { %v126_v24 = vpop.xlane.xlu0 %125  ;;  %v139_v33 = vmul.f32 0.00390625, %v132_v23 }
 0x10e   :  { %v137_v34 = vmul.f32 0.00390625, %v126_v24 }
 0x10f   :  { %v173_v39 = vrot.slane %v139_v33, %v161_v32 }
 0x110   :  { %v135_v27 = vpop.xlane.xlu1 %134  ;;  %v162_v40 = vrot.slane %v137_v34, %v161_v32 }
 0x111   :  { %v129_v28 = vpop.xlane.xlu0 %128  ;;  %v140_v30 = vmul.f32 0.00390625, %v135_v27 }
 0x112   :  { %v138_v31 = vmul.f32 0.00390625, %v129_v28 }
 0x113   :  { %v177_v37 = vrot.slane %v140_v30, %v166_v29 }
 0x114   :  { %v146_v35 = vpop.xlane.xlu1 %145  ;;  %v167_v38 = vrot.slane %v138_v31, %v166_v29 }
 0x115   :  { %v143_v36 = vpop.xlane.xlu0 %142  ;;  %v193_v41 = vrot.slane %v146_v35, %v166_v29  ;;  %v178_v48 = vsel %vm168_vm1, %v177_v37, %v173_v39 }
 0x116   :  { %v189_v42 = vrot.slane %v143_v36, %v161_v32  ;;  %v169_v47 = vsel %vm168_vm1, %v167_v38, %v162_v40 }
 0x117   :  { %v180_v51 = vsel %vm179_vm2, %v178_v48, %v169_v47 }
 0x118   :  { %v152_v43 = vpop.xlane.xlu1 %151  ;;  %v194_v49 = vsel %vm168_vm1, %v193_v41, %v189_v42 }
 0x119   :  { %v202_v44 = vrot.slane %v152_v43, %v166_v29  ;;  %v149_v45 = vpop.xlane.xlu0 %148 }
 0x11a   :  { %v198_v46 = vrot.slane %v149_v45, %v161_v32 }
 0x11c   :  { %v203_v50 = vsel %vm168_vm1, %v202_v44, %v198_v46 }
 0x11d   :  { %v205_v52 = vsel %vm204_vm3, %v203_v50, %v194_v49 }
 0x11e   :  { %v208_v53 = vsel %vm207_vm4, %v180_v51, %v205_v52 }
 0x11f   :  { %2689 = vmatmul.mubr.msk.f32.vlgmr.msra.gmra.mrb[0].mxu0 %vm218_vm5, %v208_v53 }
 0x1f2   :  { %v288_v56 = vpop.f32.mrb[0].mxu0 }
 0x1f3   :  { %v289_v57 = vadd.f32 %v2563_v55, %v288_v56  ;;  %v2690_v58 = vpop.f32.mrb[1].mxu0 }
 0x1f5   :  { %v292_v59 = vmax.f32 %v289_v57, 0.0 }
 0x1f7   :  { %2694 = vmatmul.mubr.msk.f32.vlgmr.msra.gmra.mrb[0].mxu1 %vm301_vm6, %v292_v59 }
 0x2ca   :  { %v374_v61 = vpop.f32.mrb[0].mxu1 }
 0x2cb   :  { %v375_v62 = vadd.f32 %v2565_v60, %v374_v61  ;;  %v2695_v63 = vpop.f32.mrb[1].mxu1 }
 0x2cd   :  { %v379_v3 = vrot.slane %v375_v62, 2 }
 0x2cf   :  { %v381_v7 = vadd.f32 %v379_v3, %v375_v62 }
 0x2d1   :  { %v382_v10 = vsub.f32 0.0, %v381_v7 }
 0x2d3   :  { %v383_v11 = vmul.f32 1.442695, %v382_v10 }
 0x2d5   :  { %2763 = vpow2.f32 %v383_v11 }
 0x2df   :  { %v2764_v12 = vpop.eup %2763 }
 0x2e0   :  { %v385_v13 = vadd.f32 1.0, %v2764_v12 }
 0x2e2   :  { %2765 = vrcp.f32 %v385_v13 }
 0x2ec   :  { %v2766_v15 = vpop.eup %2765 }
 0x2ed   :  { %v391_v16 = vrot.slane %v2766_v15, %v3192_v14  ;;  %v402_v18 = vrot.slane %v2766_v15, %v3196_v17 }
 0x2ef   :  { %397 = vbcast.lane.b32.xlu1 %v391_v16, 264  ;;  %393 = vbcast.lane.b32.xlu0 %v391_v16, 256 }
 0x2f3   :  { %404 = vbcast.lane.b32.xlu1 %v402_v18, 256 }
 0x2f7   :  { %408 = vbcast.lane.b32.xlu1 %v402_v18, 264 }
 0x361   :  { %v398_v19 = vpop.permute.xlu1 %397  ;;  %v394_v20 = vpop.permute.xlu0 %393 }
 0x362   :  { %v3200_v21 = vmul.f32 %v398_v19, %v3163_v8  ;;  %v3203_v23 = vmul.f32 %v398_v19, %v3165_v9  ;;  %v3206_v24 = vmul.f32 %v394_v20, %v3151_v2  ;;  %v3209_v25 = vmul.f32 %v394_v20, %v3155_v4 }
 0x364   :  { %5929 = vst [vmem:[#allocation24_spill] sm:$0xff] %v3200_v21  ;;  %5930 = vst [vmem:[#allocation25_spill] sm:$0xff] %v3203_v23  ;;  %v418_v27 = vadd.f32 %v3200_v21, %v3206_v24  ;;  %v425_v28 = vadd.f32 %v3203_v23, %v3209_v25  ;;  %v451_v29 = vmax.f32 %v3206_v24, %v3200_v21 }
 0x365   :  { %5931 = vst [vmem:[#allocation26_spill] sm:$0xff] %v3206_v24  ;;  %5932 = vst [vmem:[#allocation27_spill] sm:$0xff] %v3209_v25  ;;  %v458_v8 = vmax.f32 %v3209_v25, %v3203_v23  ;;  %v405_v9 = vpop.permute.xlu1 %404 }
 0x366   :  { %v419_v30 = vrot.slane %v418_v27, 4  ;;  %v426_v31 = vrot.slane %v425_v28, 4  ;;  %v452_v2 = vrot.slane %v451_v29, 4  ;;  %v3220_v39 = vmul.f32 %v405_v9, %v3147_v0 }
 0x367   :  { %v459_v32 = vrot.slane %v458_v8, 4  ;;  %v3223_v40 = vmul.f32 %v405_v9, %v3149_v1 }
 0x368   :  { %v420_v33 = vadd.f32 %v419_v30, %v418_v27  ;;  %v427_v4 = vadd.f32 %v426_v31, %v425_v28  ;;  %v453_v37 = vmax.f32 %v451_v29, %v452_v2  ;;  %5933 = vst [vmem:[#allocation28_spill] sm:$0xff] %v3220_v39 }
 0x369   :  { %v409_v34 = vpop.permute.xlu1 %408  ;;  %v460_v38 = vmax.f32 %v458_v8, %v459_v32  ;;  %5934 = vst [vmem:[#allocation29_spill] sm:$0xff] %v3223_v40 }
 0x36a   :  { %v421_v35 = vrot.slane %v420_v33, 2  ;;  %v428_v36 = vrot.slane %v427_v4, 2  ;;  %v3226_v41 = vmul.f32 %v409_v34, %v3157_v5  ;;  %v3229_v42 = vmul.f32 %v409_v34, %v3159_v6 }
 0x36b   :  { %v454_v47 = vrot.slane %v453_v37, 2  ;;  %v461_v5 = vrot.slane %v460_v38, 2 }
 0x36c   :  { %5935 = vst [vmem:[#allocation30_spill] sm:$0xff] %v3226_v41  ;;  %5936 = vst [vmem:[#allocation31_spill] sm:$0xff] %v3229_v42  ;;  %v432_v43 = vadd.f32 %v3226_v41, %v3220_v39  ;;  %v439_v44 = vadd.f32 %v3229_v42, %v3223_v40  ;;  %v465_v45 = vmax.f32 %v3220_v39, %v3226_v41 }
 0x36d   :  { %v472_v0 = vmax.f32 %v3223_v40, %v3229_v42  ;;  %v422_v1 = vadd.f32 %v421_v35, %v420_v33  ;;  %v429_v46 = vadd.f32 %v428_v36, %v427_v4  ;;  %v455_v57 = vmax.f32 %v453_v37, %v454_v47 }
 0x36e   :  { %v433_v48 = vrot.slane %v432_v43, 4  ;;  %v440_v49 = vrot.slane %v439_v44, 4  ;;  %v466_v6 = vrot.slane %v465_v45, 4  ;;  %v462_v58 = vmax.f32 %v460_v38, %v461_v5 }
 0x36f   :  { %v473_v50 = vrot.slane %v472_v0, 4  ;;  %v423_v55 = vrot.slane %v422_v1, 1  ;;  %v430_v56 = vrot.slane %v429_v46, 1  ;;  %v456_v13 = vrot.slane %v455_v57, 1 }
 0x370   :  { %v434_v51 = vadd.f32 %v433_v48, %v432_v43  ;;  %v441_v52 = vadd.f32 %v440_v49, %v439_v44  ;;  %v467_v53 = vmax.f32 %v465_v45, %v466_v6  ;;  %v463_v15 = vrot.slane %v462_v58, 1  ;;  %v3279_v43 = vld [vmem:[#allocation13] sm:$0xf] }
 0x371   :  { %v474_v54 = vmax.f32 %v472_v0, %v473_v50  ;;  %v424_v11 = vadd.f32 %v423_v55, %v422_v1  ;;  %v431_v12 = vadd.f32 %v430_v56, %v429_v46  ;;  %v457_v9 = vmax.f32 %v455_v57, %v456_v13 }
 0x372   :  { %v435_v59 = vrot.slane %v434_v51, 2  ;;  %v442_v60 = vrot.slane %v441_v52, 2  ;;  %v468_v61 = vrot.slane %v467_v53, 2  ;;  %v464_v30 = vmax.f32 %v462_v58, %v463_v15 }
 0x373   :  { %v475_v62 = vrot.slane %v474_v54, 2  ;;  %v447_v31 = vmul.f32 0.0625, %v424_v11  ;;  %v448_v2 = vmul.f32 0.0625, %v431_v12  ;;  %vm513_vm7 = vcmp.ge.s32.totalorder %v3279_v43, 3 }
 0x374   :  { %v436_v63 = vadd.f32 %v435_v59, %v434_v51  ;;  %v443_v3 = vadd.f32 %v442_v60, %v441_v52  ;;  %v469_v7 = vmax.f32 %v467_v53, %v468_v61  ;;  %vm514_vm8 = vcmp.lt.s32.totalorder %v3279_v43, 19 }
 0x375   :  { %v476_v10 = vmax.f32 %v474_v54, %v475_v62  ;;  %v5878_v44 = vmov 0   ;;  %vm5858_vm9 = vcmp.ge.s32.totalorder %v3279_v43, 2  ;;  %vm5859_vm10 = vcmp.lt.s32.totalorder %v3279_v43, 18  ;;  %vm3307_vm12 = vmand %vm513_vm7, %vm514_vm8 }
 0x376   :  { %v437_v16 = vrot.slane %v436_v63, 1  ;;  %v444_v18 = vrot.slane %v443_v3, 1  ;;  %v470_v19 = vrot.slane %v469_v7, 1  ;;  %v516_v45 = vsel %vm513_vm7, 1, %v5878_v44 }
 0x377   :  { %v477_v20 = vrot.slane %v476_v10, 1  ;;  %v2569_v0 = vrot.slane %v516_v45, 9  ;;  %v521_v1 = vsel %vm514_vm8, 1, %v5878_v44  ;;  %v564_v46 = vsel %vm5858_vm9, 1, %v5878_v44 }
 0x378   :  { %v438_v27 = vadd.f32 %v437_v16, %v436_v63  ;;  %v445_v28 = vadd.f32 %v444_v18, %v443_v3  ;;  %v471_v29 = vmax.f32 %v469_v7, %v470_v19  ;;  %vm5853_vm11 = vcmp.ge.s32.totalorder %v3279_v43, 1 }
 0x379   :  { %v478_v8 = vmax.f32 %v476_v10, %v477_v20  ;;  %v2570_v47 = vrot.slane %v521_v1, 9  ;;  %vm3311_vm13 = vcmp.ne.s32.totalorder %v2569_v0, 0  ;;  %v5939_v48 = vmov 0 }
 0x37a   :  { %v449_v32 = vmul.f32 0.0625, %v438_v27  ;;  %v450_v33 = vmul.f32 0.0625, %v445_v28  ;;  %v491_v35 = vsel %vm204_vm3, %v471_v29, %v457_v9  ;;  %v5940_v48 = vsel %vm3311_vm13, 4294967295, %v5939_v48  ;;  %vm520_vm0 = vmand %vm3307_vm12, %vm3311_vm13 }
 0x37b   :  { %v492_v36 = vsel %vm204_vm3, %v478_v8, %v464_v30  ;;  %v2573_v49 = vrot.slane %v564_v46, 9  ;;  %v570_v6 = vsel %vm5859_vm10, 1, %v5878_v44  ;;  %v613_v50 = vsel %vm5853_vm11, 1, %v5878_v44 }
 0x37c   :  { %v483_v4 = vsel %vm179_vm2, %v449_v32, %v447_v31  ;;  %v484_v34 = vsel %vm179_vm2, %v450_v33, %v448_v2  ;;  %vm5855_vm14 = vcmp.lt.s32.totalorder %v3279_v43, 17  ;;  %vm5849_vm15 = vcmp.ge.s32.totalorder %v3279_v43, 0 }
 0x37d   :  { %v3244_v37 = vsel %vm207_vm4, %v483_v4, %v491_v35  ;;  %v3247_v38 = vsel %vm207_vm4, %v484_v34, %v492_v36  ;;  %vm3329_vm1 = vcmp.ne.s32.totalorder %v2570_v47, 0  ;;  %v5941_v51 = vmov 0 }
 0x37e   :  { %503 = vrot.lane.b32.xlu1 %v3247_v38, %s2965_s5  ;;  %501 = vrot.lane.b32.xlu0 %v3244_v37, %s2965_s5  ;;  %v5942_v51 = vsel %vm3329_vm1, 4294967295, %v5941_v51  ;;  %v2574_v52 = vrot.slane %v570_v6, 9  ;;  %vm3333_vm2 = vcmp.ne.s32.totalorder %v2573_v49, 0  ;;  %v5943_v53 = vmov 0  ;;  %vm3347_vm5 = vmand %vm520_vm0, %vm3329_vm1  ;;  %s3433_s5 = sld [smem:[#allocation15 + $0x34]] }
 0x37f   :  { %v5944_v53 = vsel %vm3333_vm2, 4294967295, %v5943_v53  ;;  %v2577_v54 = vrot.slane %v613_v50, 9  ;;  %v619_v55 = vsel %vm5855_vm14, 1, %v5878_v44  ;;  %vm5850_vm3 = vcmp.ge.s32.totalorder %v3279_v43, 4294967295  ;;  %vm568_vm6 = vmand %vm3307_vm12, %vm3333_vm2 }
 0x380   :  { %v662_v56 = vsel %vm5849_vm15, 1, %v5878_v44  ;;  %vm5851_vm4 = vcmp.lt.s32.totalorder %v3279_v43, 16  ;;  %vm3357_vm7 = vcmp.ne.s32.totalorder %v2574_v52, 0  ;;  %v5947_v58 = vmov 0 }
 0x381   :  { %v5948_v58 = vsel %vm3357_vm7, 4294967295, %v5947_v58  ;;  %v2578_v59 = vrot.slane %v619_v55, 9  ;;  %v711_v60 = vsel %vm5850_vm3, 1, %v5878_v44  ;;  %vm5852_vm8 = vcmp.lt.s32.totalorder %v3279_v43, 15  ;;  %vm574_vm3 = vmand %vm568_vm6, %vm3357_vm7 }
 0x382   :  { %553 = vrot.lane.b32.xlu1 %v3247_v38, %s2966_s6  ;;  %551 = vrot.lane.b32.xlu0 %v3244_v37, %s2966_s6  ;;  %vm3367_vm0 = vcmp.ne.s32.totalorder %v2577_v54, 0  ;;  %v5949_v61 = vmov 0  ;;  %v2581_v62 = vrot.slane %v662_v56, 9  ;;  %v668_v63 = vsel %vm5851_vm4, 1, %v5878_v44  ;;  %s3450_s6 = sld [smem:[#allocation15 + $0x3]] }
 0x383   :  { %v5950_v61 = vsel %vm3367_vm0, 4294967295, %v5949_v61  ;;  %vm5854_vm15 = vcmp.ge.s32.totalorder %v3279_v43, 4294967294  ;;  %v3378_v3 = vsub.s32 2, %v3182_v26  ;;  %v526_v7 = vsel %vm3347_vm5, 1, %v5878_v44  ;;  %vm617_vm5 = vmand %vm3307_vm12, %vm3367_vm0 }
 0x384   :  { %v2585_v10 = vrot.slane %v711_v60, 9  ;;  %v717_v11 = vsel %vm5852_vm8, 1, %v5878_v44  ;;  %vm3398_vm4 = vcmp.ne.s32.totalorder %v2578_v59, 0  ;;  %v5951_v12 = vmov 0 }
 0x385   :  { %v5952_v12 = vsel %vm3398_vm4, 4294967295, %v5951_v12  ;;  %v2582_v13 = vrot.slane %v668_v63, 9  ;;  %v760_v15 = vsel %vm5854_vm15, 1, %v5878_v44  ;;  %vm5856_vm6 = vcmp.lt.s32.totalorder %v3279_v43, 14  ;;  %vm3419_vm15 = vmand %vm617_vm5, %vm3398_vm4 }
 0x386   :  { %602 = vrot.lane.b32.xlu1 %v3247_v38, %s2967_s21  ;;  %600 = vrot.lane.b32.xlu0 %v3244_v37, %s2967_s21  ;;  %vm3406_vm8 = vcmp.ne.s32.totalorder %v2581_v62, 0  ;;  %v5953_v16 = vmov 0  ;;  %vm5857_vm11 = vcmp.ge.s32.totalorder %v3279_v43, 4294967293  ;;  %v575_v18 = vsel %vm574_vm3, 1, %v5878_v44  ;;  %s2987_s21 = smov 2  }
 0x387   :  { %v5954_v16 = vsel %vm3406_vm8, 4294967295, %v5953_v16  ;;  %v2586_v19 = vrot.slane %v717_v11, 9  ;;  %v530_v20 = vrot.slane %v526_v7, %v3192_v14  ;;  %vm3423_vm14 = vcmp.ne.s32.totalorder %v2585_v10, 0  ;;  %vm666_vm3 = vmand %vm3307_vm12, %vm3406_vm8 }
 0x388   :  { %v5957_v28 = vmov 0  ;;  %v2589_v29 = vrot.slane %v760_v15, 9  ;;  %v766_v8 = vsel %vm5856_vm6, 1, %v5878_v44  ;;  %v534_v9 = vrot.slane %v526_v7, %v3378_v3 }
 0x389   :  { %v5958_v28 = vsel %vm3423_vm14, 4294967295, %v5957_v28  ;;  %vm3439_vm5 = vcmp.ne.s32.totalorder %v2582_v13, 0  ;;  %v5960_v30 = vmov 0  ;;  %v809_v31 = vsel %vm5857_vm11, 1, %v5878_v44 }
 0x38a   :  { %651 = vrot.lane.b32.xlu1 %v3247_v38, %s2968_s2  ;;  %649 = vrot.lane.b32.xlu0 %v3244_v37, %s2968_s2  ;;  %5959 = vst [vmem:[#allocation32_spill] sm:$0xff] %v5958_v28  ;;  %v5961_v30 = vsel %vm3439_vm5, 4294967295, %v5960_v30  ;;  %v510_v2 = vstv %s3365_s12  ;;  %v579_v32 = vrot.slane %v575_v18, %v3192_v14  ;;  %v583_v33 = vrot.slane %v575_v18, %v3378_v3  ;;  %vm3467_vm10 = vmand %vm666_vm3, %vm3439_vm5  ;;  %s3484_s2 = sld [smem:[#allocation15 + $0x35]]  ;;  %s3720_s12 = sld [smem:[#allocation15 + $0x3b]] }
 0x38b   :  { %v511_v4 = vstv %s3375_s13  ;;  %v624_v34 = vsel %vm3419_vm15, 1, %v5878_v44  ;;  %vm3460_vm9 = vcmp.ne.s32.totalorder %v2586_v19, 0  ;;  %v5962_v35 = vmov 0  ;;  %s3727_s13 = sld [smem:[#allocation15 + $0xa]] }
 0x38c   :  { %v5963_v35 = vsel %vm3460_vm9, 4294967295, %v5962_v35  ;;  %v2590_v36 = vrot.slane %v766_v8, 9  ;;  %v538_v45 = vrot.slane %v530_v20, %v3192_v14  ;;  %vm3471_vm6 = vcmp.ne.s32.totalorder %v2589_v29, 0 }
 0x38d   :  { %5964 = vst [vmem:[#allocation33_spill] sm:$0xff] %v5963_v35  ;;  %v5967_v1 = vmov 0  ;;  %v2593_v46 = vrot.slane %v809_v31, 9  ;;  %vm5970_vm15 = vcmp.lt.s32.totalorder %v3279_v43, 13  ;;  %vm5864_vm11 = vcmp.ge.s32.totalorder %v3182_v26, 2 }
 0x38e   :  { %700 = vrot.lane.b32.xlu1 %v3247_v38, %s2969_s23  ;;  %698 = vrot.lane.b32.xlu0 %v3244_v37, %s2969_s23  ;;  %v5968_v1 = vsel %vm3471_vm6, 4294967295, %v5967_v1  ;;  %v815_v47 = vsel %vm5970_vm15, 1, %v5878_v44  ;;  %v542_v49 = vrot.slane %v534_v9, %v3192_v14  ;;  %v560_v6 = vstv %s3392_s16  ;;  %s3499_s23 = sld [smem:[#allocation15 + $0x4]] }
 0x38f   :  { %5969 = vst [vmem:[#allocation34_spill] sm:$0xff] %v5968_v1  ;;  %v561_v50 = vstv %s3383_s14  ;;  %vm5971_vm3 = vcmp.lt.s32.totalorder %v3279_v43, 18  ;;  %vm5972_vm5 = vcmp.ge.s32.totalorder %v3279_v43, 2  ;;  %v512_v54 = vsel %vm5864_vm11, %v510_v2, %v511_v4  ;;  %s2992_s14 = smov 115   ;;  %s3769_s16 = sld [smem:[#allocation15 + $0x3c]] }
 0x390   :  { %vm3490_vm4 = vmand %vm5972_vm5, %vm5971_vm3  ;;  %v587_v55 = vrot.slane %v579_v32, %v3192_v14  ;;  %v591_v56 = vrot.slane %v583_v33, %v3192_v14  ;;  %v628_v57 = vrot.slane %v624_v34, %v3192_v14  ;;  %v632_v60 = vrot.slane %v624_v34, %v3378_v3 }
 0x391   :  { %vm5975_vm5 = vmand %vm3307_vm12, %vm3423_vm14  ;;  %v673_v62 = vsel %vm3467_vm10, 1, %v5878_v44  ;;  %vm3520_vm11 = vcmp.ne.s32.totalorder %v2590_v36, 0  ;;  %v5978_v63 = vmov 0  ;;  %v2594_v7 = vrot.slane %v815_v47, 9 }
 0x392   :  { %749 = vrot.lane.b32.xlu1 %v3247_v38, %s2970_s24  ;;  %747 = vrot.lane.b32.xlu0 %v3244_v37, %s2970_s24  ;;  %vm3508_vm15 = vmand %vm5975_vm5, %vm3460_vm9  ;;  %v5979_v63 = vsel %vm3520_vm11, 4294967295, %v5978_v63  ;;  %vm5981_vm9 = vcmp.ge.s32.totalorder %v3182_v26, 2  ;;  %v609_v11 = vstv %s3415_s19  ;;  %s3527_s24 = sld [smem:[#allocation15 + $0x5]]  ;;  %vm3531_vm10 = vcmp.ne.s32.totalorder %v2593_v46, 0 }
 0x393   :  { %5980 = vst [vmem:[#allocation35_spill] sm:$0xff] %v5979_v63  ;;  %v562_v10 = vsel %vm5981_vm9, %v560_v6, %v561_v50  ;;  %v5982_v13 = vmov 0  ;;  %v610_v15 = vstv %s3412_s17  ;;  %v658_v18 = vstv %s3433_s5  ;;  %vm5985_vm3 = vmand %vm3307_vm12, %vm3471_vm6  ;;  %s2993_s17 = smov 114   ;;  %s3801_s19 = sld [smem:[#allocation15 + $0x3d]] }
 0x394   :  { %v5983_v13 = vsel %vm3531_vm10, 4294967295, %v5982_v13  ;;  %v722_v19 = vsel %vm3508_vm15, 1, %v5878_v44  ;;  %v659_v20 = vstv %s3450_s6  ;;  %v677_v27 = vrot.slane %v673_v62, %v3192_v14  ;;  %vm3555_vm8 = vmand %vm5985_vm3, %vm3520_vm11  ;;  %s2994_s5 = smov 113   ;;  %s2995_s6 = smov 112  }
 0x395   :  { %5984 = vst [vmem:[#allocation36_spill] sm:$0xff] %v5983_v13  ;;  %v636_v8 = vrot.slane %v628_v57, %v3192_v14  ;;  %v640_v9 = vrot.slane %v632_v60, %v3192_v14  ;;  %v681_v31 = vrot.slane %v673_v62, %v3378_v3  ;;  %vm3568_vm14 = vcmp.ne.s32.totalorder %v2594_v7, 0  ;;  %vm5993_vm15 = vmand %vm3490_vm4, %vm3311_vm13 }
 0x396   :  { %798 = vrot.lane.b32.xlu1 %v3247_v38, %s2971_s26  ;;  %796 = vrot.lane.b32.xlu0 %v3244_v37, %s2971_s26  ;;  %s3529_s26 = sld [smem:[#allocation15 + $0x36]]  ;;  %v5988_v2 = vmov 0  ;;  %vm5991_vm3 = vcmp.eq.s32.totalorder %v538_v45, 1  ;;  %vm5992_vm5 = vcmp.eq.s32.totalorder %v542_v49, 1  ;;  %v611_v4 = vsel %vm5981_vm9, %v609_v11, %v610_v15  ;;  %vm3588_vm11 = vmand %vm5993_vm15, %vm3329_vm1 }
 0x397   :  { %v5989_v2 = vsel %vm3568_vm14, 4294967295, %v5988_v2  ;;  %v3573_v32 = vsel %vm5991_vm3, %v512_v54, 0.0  ;;  %v3576_v33 = vsel %vm5992_vm5, %v512_v54, 0.0  ;;  %v726_v34 = vrot.slane %v722_v19, %v3192_v14  ;;  %vm5996_vm5 = vmmov %vm5981_vm9 }
 0x398   :  { %5990 = vst [vmem:[#allocation37_spill] sm:$0xff] %v5989_v2  ;;  %v660_v45 = vsel %vm5996_vm5, %v658_v18, %v659_v20  ;;  %v707_v0 = vstv %s3484_s2  ;;  %v730_v46 = vrot.slane %v722_v19, %v3378_v3  ;;  %v771_v47 = vsel %vm3555_vm8, 1, %v5878_v44  ;;  %vm5999_vm8 = vmand %vm3307_vm12, %vm3531_vm10  ;;  %s3875_s2 = sld [smem:[#allocation15 + $0xd]] }
 0x399   :  { %vm5997_vm15 = vcmp.eq.s32.totalorder %v587_v55, 1  ;;  %vm5998_vm3 = vcmp.eq.s32.totalorder %v591_v56, 1  ;;  %v685_v50 = vrot.slane %v677_v27, %v3192_v14  ;;  %v708_v54 = vstv %s3499_s23  ;;  %vm3622_vm5 = vmand %vm5999_vm8, %vm3568_vm14  ;;  %s2996_s23 = smov 111  }
 0x39a   :  { %847 = vrot.lane.b32.xlu1 %v3247_v38, %s2972_s27  ;;  %845 = vrot.lane.b32.xlu0 %v3244_v37, %s2972_s27  ;;  %s2988_s27 = smov 1   ;;  %v3608_v49 = vsel %vm5997_vm15, %v562_v10, 0.0  ;;  %v3611_v6 = vsel %vm5998_vm3, %v562_v10, 0.0  ;;  %vm641_vm15 = vcmp.eq.s32.totalorder %v636_v8, 1  ;;  %vm642_vm9 = vcmp.eq.s32.totalorder %v640_v9, 1  ;;  %vm6002_vm12 = vmand %vm3490_vm4, %vm3333_vm2 }
 0x39b   :  { %v689_v55 = vrot.slane %v681_v31, %v3192_v14  ;;  %v860_v56 = vsel %vm3588_vm11, 1, %v5878_v44  ;;  %v734_v5 = vrot.slane %v726_v34, %v3192_v14  ;;  %v757_v60 = vstv %s3527_s24  ;;  %vm3645_vm3 = vmand %vm6002_vm12, %vm3357_vm7  ;;  %s3923_s24 = sld [smem:[#allocation15 + $0x3f]] }
 0x39c   :  { %v756_v59 = vstv %s3529_s26  ;;  %v775_v62 = vrot.slane %v771_v47, %v3192_v14  ;;  %vm6005_vm11 = vcmp.ge.s32.totalorder %v3182_v26, 2  ;;  %v738_v11 = vrot.slane %v730_v46, %v3192_v14  ;;  %s3941_s26 = sld [smem:[#allocation15 + $0xe]] }
 0x39d   :  { %v709_v10 = vsel %vm6005_vm11, %v707_v0, %v708_v54  ;;  %v779_v15 = vrot.slane %v771_v47, %v3378_v3  ;;  %v820_v18 = vsel %vm3622_vm5, 1, %v5878_v44  ;;  %v3663_v19 = vsel %vm641_vm15, %v611_v4, 0.0  ;;  %vm6008_vm15 = vmand %vm3490_vm4, %vm3367_vm0 }
 0x39e   :  { %887 = vrot.lane.b32.xlu1 %v3247_v38, %s2973_s29  ;;  %885 = vrot.lane.b32.xlu0 %v3244_v37, %s2973_s29  ;;  %s3562_s29 = sld [smem:[#allocation15 + $0x37]]  ;;  %v3666_v20 = vsel %vm642_vm9, %v611_v4, 0.0  ;;  %vm690_vm8 = vcmp.eq.s32.totalorder %v685_v50, 1  ;;  %v864_v27 = vrot.slane %v860_v56, %v3192_v14  ;;  %vm691_vm12 = vcmp.eq.s32.totalorder %v689_v55, 1 }
 0x39f   :  { %v758_v29 = vsel %vm6005_vm11, %v756_v59, %v757_v60  ;;  %v899_v34 = vsel %vm3645_vm3, 1, %v5878_v44  ;;  %vm739_vm5 = vcmp.eq.s32.totalorder %v734_v5, 1  ;;  %v783_v8 = vrot.slane %v775_v62, %v3192_v14 }
 0x3a0   :  { %v824_v9 = vrot.slane %v820_v18, %v3192_v14  ;;  %v868_v4 = vrot.slane %v860_v56, %v3378_v3  ;;  %v3685_v36 = vsel %vm690_vm8, %v660_v45, 0.0  ;;  %vm740_vm3 = vcmp.eq.s32.totalorder %v738_v11, 1 }
 0x3a1   :  { %v787_v0 = vrot.slane %v779_v15, %v3192_v14  ;;  %vm6006_vm11 = vnez %v5954_v16  ;;  %v828_v47 = vrot.slane %v820_v18, %v3378_v3  ;;  %v872_v54 = vrot.slane %v864_v27, %v3192_v14 }
 0x3a2   :  { %926 = vrot.lane.b32.xlu1 %v3247_v38, %s2974_s30  ;;  %924 = vrot.lane.b32.xlu0 %v3244_v37, %s2974_s30  ;;  %s2989_s30 = smov 127   ;;  %v903_v57 = vrot.slane %v899_v34, %v3192_v14  ;;  %v3702_v56 = vsel %vm691_vm12, %v660_v45, 0.0  ;;  %v3705_v59 = vsel %vm739_vm5, %v709_v10, 0.0  ;;  %v907_v62 = vrot.slane %v899_v34, %v3378_v3 }
 0x3a3   :  { %vm6007_vm8 = vnez %v5952_v12  ;;  %v3723_v45 = vsel %vm740_vm3, %v709_v10, 0.0  ;;  %v832_v55 = vrot.slane %v824_v9, %v3192_v14  ;;  %v876_v5 = vrot.slane %v868_v4, %v3192_v14 }
 0x3a4   :  { %v805_v31 = vstv %s3562_s29  ;;  %vm3716_vm9 = vmand %vm6008_vm15, %vm6007_vm8  ;;  %vm6011_vm5 = vnez %v5961_v30  ;;  %vm789_vm12 = vcmp.eq.s32.totalorder %v787_v0, 1  ;;  %vm6015_vm0 = vcmp.ge.s32.totalorder %v3182_v26, 2  ;;  %s3964_s29 = sld [smem:[#allocation15 + $0xf]] }
 0x3a5   :  { %vm6012_vm15 = vmand %vm3490_vm4, %vm6006_vm11  ;;  %v836_v27 = vrot.slane %v828_v47, %v3192_v14  ;;  %vm877_vm11 = vcmp.eq.s32.totalorder %v872_v54, 1  ;;  %v911_v34 = vrot.slane %v903_v57, %v3192_v14  ;;  %v938_v9 = vsel %vm3716_vm9, 1, %v5878_v44 }
 0x3a6   :  { %965 = vrot.lane.b32.xlu1 %v3247_v38, %s2975_s1  ;;  %963 = vrot.lane.b32.xlu0 %v3244_v37, %s2975_s1  ;;  %s3601_s1 = sld [smem:[#allocation15 + $0x38]]  ;;  %vm3736_vm8 = vmand %vm6012_vm15, %vm6011_vm5  ;;  %vm6016_vm15 = vnez %v5958_v28  ;;  %vm6017_vm5 = vcmp.eq.s32.totalorder %v783_v8, 1  ;;  %v973_v41 = vstv %s3727_s13  ;;  %v6025_v40 = vmov 0   ;;  %s3002_s13 = smov 96  }
 0x3a7   :  { %v3757_v4 = vsel %vm6017_vm5, %v758_v29, 0.0  ;;  %v3765_v47 = vsel %vm3736_vm8, 1, %v5878_v44  ;;  %vm6018_vm3 = vmmov %vm6015_vm0  ;;  %vm838_vm5 = vcmp.eq.s32.totalorder %v836_v27, 1  ;;  %vm6022_vm8 = vcmp.eq.s32.totalorder %v876_v5, 1 }
 0x3a8   :  { %v981_v54 = vrot.slane %v3765_v47, %v3192_v14  ;;  %v972_v44 = vstv %s3720_s12  ;;  %s4144_s12 = sld [smem:[#allocation15 + $0x12]] }
 0x3aa   :  { %1004 = vrot.lane.b32.xlu1 %v3247_v38, %s2976_s28  ;;  %1002 = vrot.lane.b32.xlu0 %v3244_v37, %s2976_s28  ;;  %s3626_s28 = sld [smem:[#allocation15 + $0x7]] }
 0x3ac   :  { %v854_v46 = vstv %s3601_s1  ;;  %s2998_s1 = smov 109  }
 0x3ae   :  { %1043 = vrot.lane.b32.xlu1 %v3247_v38, %s2977_s9  ;;  %1041 = vrot.lane.b32.xlu0 %v3244_v37, %s2977_s9  ;;  %s3629_s9 = sld [smem:[#allocation15 + $0x6]] }
 0x3b0   :  { %v855_v50 = vstv %s3626_s28  ;;  %s4019_s28 = sld [smem:[#allocation15 + $0x41]] }
 0x3b1   :  { %v856_v10 = vsel %vm6015_vm0, %v854_v46, %v855_v50  ;;  %v915_v46 = vrot.slane %v907_v62, %v3192_v14  ;;  %v3771_v50 = vsel %vm789_vm12, %v758_v29, 0.0  ;;  %v942_v29 = vrot.slane %v938_v9, %v3192_v14 }
 0x3b2   :  { %1082 = vrot.lane.b32.xlu1 %v3247_v38, %s2978_s0  ;;  %1080 = vrot.lane.b32.xlu0 %v3244_v37, %s2978_s0  ;;  %s2990_s0 = smov 126   ;;  %vm6019_vm12 = vnez %v5963_v35  ;;  %v946_v62 = vrot.slane %v938_v9, %v3378_v3 }
 0x3b3   :  { %vm917_vm7 = vcmp.eq.s32.totalorder %v915_v46, 1 }
 0x3b4   :  { %v806_v60 = vstv %s3629_s9  ;;  %v954_v27 = vrot.slane %v946_v62, %v3192_v14  ;;  %s2999_s9 = smov 99  }
 0x3b5   :  { %v807_v0 = vsel %vm6015_vm0, %v805_v31, %v806_v60  ;;  %v3779_v31 = vsel %vm877_vm11, %v856_v10, 0.0  ;;  %vm6021_vm11 = vcmp.eq.s32.totalorder %v832_v55, 1 }
 0x3b6   :  { %1121 = vrot.lane.b32.xlu1 %v3247_v38, %s2979_s22  ;;  %1119 = vrot.lane.b32.xlu0 %v3244_v37, %s2979_s22  ;;  %s3658_s22 = sld [smem:[#allocation15 + $0x8]]  ;;  %v3815_v55 = vsel %vm838_vm5, %v807_v0, 0.0 }
 0x3ba   :  { %1161 = vrot.lane.b32.xlu1 %v3247_v38, %s2980_s4  ;;  %1159 = vrot.lane.b32.xlu0 %v3244_v37, %s2980_s4  ;;  %s3660_s4 = sld [smem:[#allocation15 + $0x39]] }
 0x3bc   :  { %v895_v18 = vstv %s3658_s22  ;;  %s4053_s22 = sld [smem:[#allocation15 + $0x11]] }
 0x3be   :  { %1200 = vrot.lane.b32.xlu1 %v3247_v38, %s2982_s25  ;;  %1198 = vrot.lane.b32.xlu0 %v3244_v37, %s2982_s25  ;;  %s2991_s25 = smov 125  }
 0x3c0   :  { %v894_v11 = vstv %s3660_s4  ;;  %s4055_s4 = sld [smem:[#allocation15 + $0x42]] }
 0x3c1   :  { %v896_v8 = vsel %vm6018_vm3, %v894_v11, %v895_v18  ;;  %vm6020_vm3 = vmand %vm3490_vm4, %vm6016_vm15  ;;  %v3795_v11 = vsel %vm6021_vm11, %v807_v0, 0.0  ;;  %v3798_v18 = vsel %vm6022_vm8, %v856_v10, 0.0  ;;  %vm6026_vm11 = vcmp.eq.s32.totalorder %v911_v34, 1 }
 0x3c2   :  { %1239 = vrot.lane.b32.xlu1 %v3247_v38, %s2957_s18  ;;  %1237 = vrot.lane.b32.xlu0 %v3244_v37, %s2957_s18  ;;  %vm1015_vm0 = vmand %vm6020_vm3, %vm6019_vm12  ;;  %vm6023_vm3 = vcmp.lt.s32.totalorder %v3179_v22, 51  ;;  %v3818_v5 = vsel %vm6026_vm11, %v896_v8, 0.0  ;;  %v985_v34 = vrot.slane %v3765_v47, %v3378_v3  ;;  %v989_v0 = vrot.slane %v981_v54, %v3192_v14 }
 0x3c3   :  { %vm6024_vm9 = vmmov %vm6023_vm3  ;;  %v1016_v39 = vsel %vm1015_vm0, 1, %v6025_v40  ;;  %vm6031_vm11 = vnez %v5979_v63 }
 0x3c4   :  { %vm1053_vm0 = vmand %vm3490_vm4, %vm3471_vm6  ;;  %v1020_v25 = vrot.slane %v1016_v39, %v3192_v14  ;;  %v1024_v62 = vrot.slane %v1016_v39, %v3378_v3 }
 0x3c6   :  { %1278 = vrot.lane.b32.xlu1 %v3247_v38, %s2983_s10  ;;  %1276 = vrot.lane.b32.xlu0 %v3244_v37, %s2983_s10  ;;  %s3689_s10 = sld [smem:[#allocation15 + $0x9]]  ;;  %v1032_v52 = vrot.slane %v1024_v62, %v3192_v14 }
 0x3ca   :  { %1317 = vrot.lane.b32.xlu1 %v3247_v38, %s2984_s11  ;;  %1315 = vrot.lane.b32.xlu0 %v3244_v37, %s2984_s11  ;;  %s3691_s11 = sld [smem:[#allocation15 + $0x3a]] }
 0x3cc   :  { %v934_v60 = vstv %s3689_s10  ;;  %s3001_s10 = smov 97  }
 0x3ce   :  { %1356 = vrot.lane.b32.xlu1 %v3247_v38, %s2985_s15  ;;  %1354 = vrot.lane.b32.xlu0 %v3244_v37, %s2985_s15  ;;  %s3767_s15 = sld [smem:[#allocation15 + $0xb]] }
 0x3d0   :  { %v933_v57 = vstv %s3691_s11  ;;  %s4121_s11 = sld [smem:[#allocation15 + $0x43]] }
 0x3d2   :  { %1395 = vrot.lane.b32.xlu1 %v3247_v38, %s2986_s20  ;;  %1393 = vrot.lane.b32.xlu0 %v3244_v37, %s2986_s20  ;;  %s3809_s20 = sld [smem:[#allocation15 + $0xc]] }
 0x3d6   :  { %1435 = vrot.lane.b32.xlu1 %v3247_v38, %s2987_s21  ;;  %1433 = vrot.lane.b32.xlu0 %v3244_v37, %s2987_s21  ;;  %s3864_s21 = sld [smem:[#allocation15 + $0x3e]] }
 0x3da   :  { %1474 = vrot.lane.b32.xlu1 %v3247_v38, %s2988_s27  ;;  %1472 = vrot.lane.b32.xlu0 %v3244_v37, %s2988_s27  ;;  %s2997_s27 = smov 110  }
 0x3de   :  { %1522 = vrot.lane.b32.xlu1 %v3247_v38, %s2989_s30  ;;  %1520 = vrot.lane.b32.xlu0 %v3244_v37, %s2989_s30  ;;  %s3966_s30 = sld [smem:[#allocation15 + $0x40]] }
 0x3e2   :  { %1561 = vrot.lane.b32.xlu1 %v3247_v38, %s2990_s0  ;;  %1559 = vrot.lane.b32.xlu0 %v3244_v37, %s2990_s0  ;;  %s4038_s0 = sld [smem:[#allocation15 + $0x10]] }
 0x3e6   :  { %1600 = vrot.lane.b32.xlu1 %v3247_v38, %s2991_s25  ;;  %1598 = vrot.lane.b32.xlu0 %v3244_v37, %s2991_s25  ;;  %s3000_s25 = smov 98  }
 0x3ea   :  { %1639 = vrot.lane.b32.xlu1 %v3247_v38, %s2992_s14  ;;  %1637 = vrot.lane.b32.xlu0 %v3244_v37, %s2992_s14  ;;  %s4174_s14 = sld [smem:[#allocation15 + $0x13]] }
 0x3ee   :  { %1679 = vrot.lane.b32.xlu1 %v3247_v38, %s2993_s17  ;;  %1677 = vrot.lane.b32.xlu0 %v3244_v37, %s2993_s17  ;;  %s4218_s17 = sld [smem:[#allocation15 + $0x45]] }
 0x3f0   :  { %v504_v7 = vpop.permute.xlu1 %503  ;;  %v502_v15 = vpop.permute.xlu0 %501 }
 0x3f1   :  { %v506_v42 = vsel %vm6023_vm3, %v502_v15, %v504_v7  ;;  %v507_v9 = vsel %vm6024_vm9, %v504_v7, %v502_v15  ;;  %vm6027_vm9 = vcmp.ge.s32.totalorder %v3182_v26, 2  ;;  %v950_v7 = vrot.slane %v942_v29, %v3192_v14 }
 0x3f2   :  { %1718 = vrot.lane.b32.xlu1 %v3247_v38, %s2994_s5  ;;  %1716 = vrot.lane.b32.xlu0 %v3244_v37, %s2994_s5  ;;  %v935_v10 = vsel %vm6027_vm9, %v933_v57, %v934_v60  ;;  %v3828_v15 = vsel %vm917_vm7, %v896_v8, 0.0  ;;  %vm6028_vm5 = vmmov %vm6027_vm9  ;;  %v1011_v60 = vstv %s3769_s16  ;;  %v1012_v29 = vstv %s3767_s15  ;;  %s4176_s15 = sld [smem:[#allocation15 + $0x44]]  ;;  %s3003_s16 = smov 95  }
 0x3f3   :  { %v3836_v57 = vsel %vm6028_vm5, %v972_v44, %v973_v41  ;;  %v547_v46 = vmul.f32 %v3573_v32, %v507_v9  ;;  %vm6029_vm7 = vcmp.lt.s32.totalorder %v3179_v22, 50  ;;  %vm3854_vm9 = vmand %vm1053_vm0, %vm6031_vm11  ;;  %v548_v44 = vmul.f32 %v3576_v33, %v506_v42  ;;  %s3005_s5 = smov 93  }
 0x3f4   :  { %v554_v23 = vpop.permute.xlu1 %553  ;;  %v552_v21 = vpop.permute.xlu0 %551  ;;  %vm6030_vm3 = vmmov %vm6029_vm7  ;;  %v1055_v9 = vsel %vm3854_vm9, 1, %v6025_v40 }
 0x3f5   :  { %v556_v8 = vsel %vm6029_vm7, %v552_v21, %v554_v23  ;;  %v557_v47 = vsel %vm6030_vm3, %v554_v23, %v552_v21  ;;  %vm1092_vm0 = vmand %vm3490_vm4, %vm3531_vm10  ;;  %v993_v21 = vrot.slane %v985_v34, %v3192_v14  ;;  %vm6036_vm3 = vcmp.ge.s32.totalorder %v3279_v43, 1 }
 0x3f6   :  { %v596_v32 = vmul.f32 %v3608_v49, %v557_v47  ;;  %v597_v54 = vmul.f32 %v3611_v6, %v556_v8  ;;  %1757 = vrot.lane.b32.xlu1 %v3247_v38, %s2995_s6  ;;  %1755 = vrot.lane.b32.xlu0 %v3244_v37, %s2995_s6  ;;  %vm6034_vm11 = vmmov %vm6028_vm5  ;;  %v1050_v6 = vstv %s3801_s19  ;;  %vm6035_vm5 = vcmp.lt.s32.totalorder %v3279_v43, 17  ;;  %s4232_s19 = sld [smem:[#allocation15 + $0x14]]  ;;  %s4294_s6 = sld [smem:[#allocation15 + $0x15]] }
 0x3f7   :  { %v3873_v23 = vsel %vm6034_vm11, %v1011_v60, %v1012_v29  ;;  %vm3885_vm8 = vmand %vm6036_vm3, %vm6035_vm5  ;;  %vm6039_vm11 = vcmp.lt.s32.totalorder %v3179_v22, 49  ;;  %v1051_v8 = vstv %s3809_s20  ;;  %vm6044_vm4 = vcmp.eq.s32.totalorder %v954_v27, 1  ;;  %s3004_s20 = smov 94  }
 0x3f8   :  { %v598_v39 = vadd.f32 %v596_v32, %v547_v46  ;;  %v599_v42 = vadd.f32 %v597_v54, %v548_v44  ;;  %v603_v33 = vpop.permute.xlu1 %602  ;;  %v601_v49 = vpop.permute.xlu0 %600  ;;  %vm6040_vm7 = vmmov %vm6039_vm11  ;;  %v1028_v46 = vrot.slane %v1020_v25, %v3192_v14  ;;  %v3916_v32 = vsel %vm6044_vm4, %v935_v10, 0.0 }
 0x3f9   :  { %v605_v60 = vsel %vm6039_vm11, %v601_v49, %v603_v33  ;;  %v606_v29 = vsel %vm6040_vm7, %v603_v33, %v601_v49  ;;  %vm3902_vm9 = vmand %vm1092_vm0, %vm3568_vm14  ;;  %vm6043_vm7 = vcmp.eq.s32.totalorder %v950_v7, 1  ;;  %vm995_vm0 = vcmp.eq.s32.totalorder %v993_v21, 1 }
 0x3fa   :  { %v645_v41 = vmul.f32 %v3663_v19, %v606_v29  ;;  %v646_v44 = vmul.f32 %v3666_v20, %v605_v60  ;;  %1796 = vrot.lane.b32.xlu1 %v3247_v38, %s2996_s23  ;;  %1794 = vrot.lane.b32.xlu0 %v3244_v37, %s2996_s23  ;;  %v3912_v25 = vsel %vm6043_vm7, %v935_v10, 0.0  ;;  %vm6045_vm3 = vcmp.eq.s32.totalorder %v989_v0, 1  ;;  %vm1132_vm11 = vmand %vm3885_vm8, %vm3311_vm13  ;;  %s3006_s23 = smov 83  }
 0x3fb   :  { %v3920_v19 = vsel %vm6045_vm3, %v3836_v57, 0.0  ;;  %v1059_v20 = vrot.slane %v1055_v9, %v3192_v14  ;;  %vm6046_vm7 = vcmp.ge.s32.totalorder %v3182_v26, 2  ;;  %v1094_v0 = vsel %vm3902_vm9, 1, %v6025_v40 }
 0x3fc   :  { %v647_v7 = vadd.f32 %v645_v41, %v598_v39  ;;  %v648_v54 = vadd.f32 %v646_v44, %v599_v42  ;;  %v652_v62 = vpop.permute.xlu1 %651  ;;  %v650_v10 = vpop.permute.xlu0 %649  ;;  %v3931_v27 = vsel %vm6046_vm7, %v1050_v6, %v1051_v8  ;;  %vm6047_vm4 = vcmp.lt.s32.totalorder %v3179_v22, 48 }
 0x3fd   :  { %v654_v33 = vsel %vm6047_vm4, %v650_v10, %v652_v62  ;;  %vm6048_vm3 = vmmov %vm6047_vm4  ;;  %vm1033_vm5 = vcmp.eq.s32.totalorder %v1028_v46, 1  ;;  %v1063_v39 = vrot.slane %v1055_v9, %v3378_v3  ;;  %vm1034_vm7 = vcmp.eq.s32.totalorder %v1032_v52, 1 }
 0x3fe   :  { %v655_v49 = vsel %vm6048_vm3, %v652_v62, %v650_v10  ;;  %v695_v6 = vmul.f32 %v3702_v56, %v654_v33  ;;  %1835 = vrot.lane.b32.xlu1 %v3247_v38, %s2997_s27  ;;  %1833 = vrot.lane.b32.xlu0 %v3244_v37, %s2997_s27  ;;  %v1089_v60 = vstv %s3864_s21  ;;  %vm3956_vm4 = vmand %vm1132_vm11, %vm3329_vm1  ;;  %v1067_v56 = vrot.slane %v1059_v20, %v3192_v14  ;;  %s4296_s21 = sld [smem:[#allocation15 + $0x46]]  ;;  %s4393_s27 = sld [smem:[#allocation15 + $0x17]] }
 0x3ff   :  { %v694_v42 = vmul.f32 %v3685_v36, %v655_v49  ;;  %v1090_v9 = vstv %s3875_s2  ;;  %v1098_v29 = vrot.slane %v1094_v0, %v3192_v14  ;;  %v1102_v8 = vrot.slane %v1094_v0, %v3378_v3  ;;  %vm1171_vm3 = vmand %vm3885_vm8, %vm3333_vm2  ;;  %s4298_s2 = sld [smem:[#allocation15 + $0x47]] }
 0x400   :  { %v697_v41 = vadd.f32 %v695_v6, %v648_v54  ;;  %v701_v44 = vpop.permute.xlu1 %700  ;;  %v699_v62 = vpop.permute.xlu0 %698  ;;  %v3974_v20 = vsel %vm995_vm0, %v3836_v57, 0.0  ;;  %v3978_v10 = vsel %vm1033_vm5, %v3873_v23, 0.0  ;;  %vm6051_vm11 = vcmp.lt.s32.totalorder %v3179_v22, 47 }
 0x401   :  { %v696_v47 = vadd.f32 %v694_v42, %v647_v7  ;;  %v703_v0 = vsel %vm6051_vm11, %v699_v62, %v701_v44  ;;  %vm6052_vm9 = vmmov %vm6051_vm11  ;;  %v1071_v7 = vrot.slane %v1063_v39, %v3192_v14  ;;  %v1134_v54 = vsel %vm3956_vm4, 1, %v6025_v40 }
 0x402   :  { %v704_v33 = vsel %vm6052_vm9, %v701_v44, %v699_v62  ;;  %v744_v21 = vmul.f32 %v3723_v45, %v703_v0  ;;  %1874 = vrot.lane.b32.xlu1 %v3247_v38, %s2998_s1  ;;  %1872 = vrot.lane.b32.xlu0 %v3244_v37, %s2998_s1  ;;  %v3995_v46 = vsel %vm1034_vm7, %v3873_v23, 0.0  ;;  %vm6053_vm0 = vcmp.ge.s32.totalorder %v3182_v26, 2  ;;  %s4439_s1 = sld [smem:[#allocation15 + $0x19]] }
 0x403   :  { %v743_v57 = vmul.f32 %v3705_v59, %v704_v33  ;;  %v1091_v49 = vsel %vm6053_vm0, %v1089_v60, %v1090_v9  ;;  %vm6054_vm9 = vnez %v5948_v58  ;;  %v1106_v45 = vrot.slane %v1098_v29, %v3192_v14 }
 0x404   :  { %vm4006_vm4 = vmand %vm1171_vm3, %vm6054_vm9  ;;  %v1110_v23 = vrot.slane %v1102_v8, %v3192_v14  ;;  %v1128_v52 = vstv %s3923_s24  ;;  %vm6057_vm7 = vnez %v5950_v61  ;;  %v746_v42 = vadd.f32 %v744_v21, %v697_v41  ;;  %v750_v6 = vpop.permute.xlu1 %749  ;;  %v748_v60 = vpop.permute.xlu0 %747  ;;  %s4358_s24 = sld [smem:[#allocation15 + $0x16]] }
 0x405   :  { %v745_v39 = vadd.f32 %v743_v57, %v696_v47  ;;  %v1138_v36 = vrot.slane %v1134_v54, %v3192_v14  ;;  %v1142_v9 = vrot.slane %v1134_v54, %v3378_v3  ;;  %vm6058_vm3 = vcmp.lt.s32.totalorder %v3179_v22, 46  ;;  %vm6062_vm11 = vmand %vm3885_vm8, %vm6057_vm7 }
 0x406   :  { %v752_v29 = vsel %vm6058_vm3, %v748_v60, %v750_v6  ;;  %vm6059_vm5 = vmmov %vm6058_vm3  ;;  %v1129_v44 = vstv %s3941_s26  ;;  %1913 = vrot.lane.b32.xlu1 %v3247_v38, %s2999_s9  ;;  %1911 = vrot.lane.b32.xlu0 %v3244_v37, %s2999_s9  ;;  %vm6060_vm3 = vcmp.eq.s32.totalorder %v1067_v56, 1  ;;  %v1173_v0 = vsel %vm4006_vm4, 1, %v6025_v40  ;;  %s3007_s26 = smov 82   ;;  %s3009_s9 = smov 80  }
 0x407   :  { %v753_v8 = vsel %vm6059_vm5, %v750_v6, %v748_v60  ;;  %v793_v41 = vmul.f32 %v3771_v50, %v752_v29  ;;  %v4033_v62 = vsel %vm6060_vm3, %v3931_v27, 0.0  ;;  %vm6061_vm5 = vnez %v5952_v12 }
 0x408   :  { %v792_v47 = vmul.f32 %v3757_v4, %v753_v8  ;;  %vm4047_vm9 = vmand %vm6062_vm11, %vm6061_vm5  ;;  %vm1111_vm0 = vcmp.eq.s32.totalorder %v1106_v45, 1  ;;  %v1168_v50 = vstv %s3966_s30  ;;  %v1169_v56 = vstv %s3964_s29  ;;  %v799_v57 = vpop.permute.xlu1 %798  ;;  %v797_v21 = vpop.permute.xlu0 %796  ;;  %s4395_s29 = sld [smem:[#allocation15 + $0x48]]  ;;  %s3008_s30 = smov 81  }
 0x409   :  { %v795_v54 = vadd.f32 %v793_v41, %v746_v42  ;;  %v1146_v59 = vrot.slane %v1138_v36, %v3192_v14  ;;  %v1150_v6 = vrot.slane %v1142_v9, %v3192_v14  ;;  %vm6065_vm4 = vcmp.lt.s32.totalorder %v3179_v22, 45 }
 0x40a   :  { %v794_v33 = vadd.f32 %v792_v47, %v745_v39  ;;  %v801_v60 = vsel %vm6065_vm4, %v797_v21, %v799_v57  ;;  %vm6066_vm11 = vmmov %vm6065_vm4  ;;  %v1177_v8 = vrot.slane %v1173_v0, %v3192_v14  ;;  %v1212_v24 = vsel %vm4047_vm9, 1, %v6025_v40  ;;  %1953 = vrot.lane.b32.xlu1 %v3247_v38, %s3000_s25  ;;  %1951 = vrot.lane.b32.xlu0 %v3244_v37, %s3000_s25  ;;  %s4545_s25 = sld [smem:[#allocation15 + $0x4c]] }
 0x40b   :  { %v802_v29 = vsel %vm6066_vm11, %v799_v57, %v797_v21  ;;  %v842_v42 = vmul.f32 %v3815_v55, %v801_v60  ;;  %vm6067_vm11 = vcmp.eq.s32.totalorder %v1071_v7, 1  ;;  %v1181_v9 = vrot.slane %v1173_v0, %v3378_v3 }
 0x40c   :  { %v841_v39 = vmul.f32 %v3795_v11, %v802_v29  ;;  %v4074_v36 = vsel %vm6067_vm11, %v3931_v27, 0.0  ;;  %vm6068_vm9 = vnez %v5954_v16  ;;  %v4082_v11 = vsel %vm1111_vm0, %v1091_v49, 0.0  ;;  %v848_v0 = vpop.permute.xlu1 %847  ;;  %v846_v4 = vpop.permute.xlu0 %845 }
 0x40d   :  { %vm1249_vm3 = vmand %vm3885_vm8, %vm6068_vm9  ;;  %vm6069_vm5 = vcmp.eq.s32.totalorder %v1110_v23, 1  ;;  %vm6070_vm7 = vcmp.ge.s32.totalorder %v3182_v26, 2  ;;  %v844_v41 = vadd.f32 %v842_v42, %v795_v54  ;;  %v1207_v57 = vstv %s4019_s28  ;;  %s4441_s28 = sld [smem:[#allocation15 + $0x4a]] }
 0x40e   :  { %v4085_v55 = vsel %vm6069_vm5, %v1091_v49, 0.0  ;;  %v1130_v47 = vsel %vm6070_vm7, %v1128_v52, %v1129_v44  ;;  %vm6071_vm4 = vmmov %vm6070_vm7  ;;  %v843_v7 = vadd.f32 %v841_v39, %v794_v33  ;;  %v1216_v45 = vrot.slane %v1212_v24, %v3192_v14  ;;  %1992 = vrot.lane.b32.xlu1 %v3247_v38, %s3001_s10  ;;  %1990 = vrot.lane.b32.xlu0 %v3244_v37, %s3001_s10  ;;  %s3010_s10 = smov 79  }
 0x40f   :  { %v4091_v27 = vsel %vm6071_vm4, %v1168_v50, %v1169_v56  ;;  %vm6072_vm0 = vcmp.lt.s32.totalorder %v3179_v22, 35  ;;  %vm1151_vm7 = vcmp.eq.s32.totalorder %v1146_v59, 1  ;;  %v1185_v52 = vrot.slane %v1177_v8, %v3192_v14 }
 0x410   :  { %v850_v49 = vsel %vm6072_vm0, %v846_v4, %v848_v0  ;;  %vm6073_vm5 = vmmov %vm6072_vm0  ;;  %vm6074_vm4 = vnez %v5961_v30  ;;  %v1189_v33 = vrot.slane %v1181_v9, %v3192_v14  ;;  %v1208_v54 = vstv %s4038_s0  ;;  %v888_v8 = vpop.permute.xlu1 %887  ;;  %v886_v39 = vpop.permute.xlu0 %885  ;;  %s4530_s0 = sld [smem:[#allocation15 + $0x1a]] }
 0x411   :  { %v851_v23 = vsel %vm6073_vm5, %v848_v0, %v846_v4  ;;  %vm4107_vm11 = vmand %vm1249_vm3, %vm6074_vm4  ;;  %v882_v56 = vmul.f32 %v3798_v18, %v850_v49  ;;  %v1220_v21 = vrot.slane %v1212_v24, %v3378_v3  ;;  %v1246_v60 = vstv %s4055_s4  ;;  %s4543_s4 = sld [smem:[#allocation15 + $0x1b]] }
 0x412   :  { %v881_v50 = vmul.f32 %v3779_v31, %v851_v23  ;;  %v1247_v29 = vstv %s4053_s22  ;;  %v1224_v42 = vrot.slane %v1216_v45, %v3192_v14  ;;  %v4131_v9 = vsel %vm4107_vm11, 1, %v6025_v40  ;;  %2031 = vrot.lane.b32.xlu1 %v3247_v38, %s3002_s13  ;;  %2029 = vrot.lane.b32.xlu0 %v3244_v37, %s3002_s13  ;;  %s4532_s22 = sld [smem:[#allocation15 + $0x4b]]  ;;  %s4571_s13 = sld [smem:[#allocation15 + $0x49]] }
 0x413   :  { %v884_v18 = vadd.f32 %v882_v56, %v844_v41  ;;  %vm6077_vm5 = vcmp.lt.s32.totalorder %v3179_v22, 34  ;;  %v4142_v41 = vsel %vm1151_vm7, %v1130_v47, 0.0  ;;  %vm6080_vm7 = vmand %vm3885_vm8, %vm6016_vm15  ;;  %vm6083_vm0 = vcmp.ge.s32.totalorder %v3182_v26, 2 }
 0x414   :  { %v883_v31 = vadd.f32 %v881_v50, %v843_v7  ;;  %v890_v24 = vsel %vm6077_vm5, %v886_v39, %v888_v8  ;;  %vm6078_vm3 = vmmov %vm6077_vm5  ;;  %vm6079_vm5 = vcmp.eq.s32.totalorder %v1150_v6, 1  ;;  %v1228_v59 = vrot.slane %v1220_v21, %v3192_v14  ;;  %v927_v44 = vpop.permute.xlu1 %926  ;;  %v925_v50 = vpop.permute.xlu0 %924 }
 0x415   :  { %v891_v7 = vsel %vm6078_vm3, %v888_v8, %v886_v39  ;;  %v921_v4 = vmul.f32 %v3828_v15, %v890_v24  ;;  %v4152_v45 = vsel %vm6079_vm5, %v1130_v47, 0.0  ;;  %vm4161_vm4 = vmand %vm6080_vm7, %vm6019_vm12  ;;  %v1209_v15 = vsel %vm6083_vm0, %v1207_v57, %v1208_v54 }
 0x416   :  { %v920_v0 = vmul.f32 %v3818_v5, %v891_v7  ;;  %vm6084_vm5 = vmmov %vm6083_vm0  ;;  %v1255_v47 = vrot.slane %v4131_v9, %v3192_v14  ;;  %vm6085_vm7 = vnez %v5979_v63  ;;  %vm1229_vm3 = vcmp.eq.s32.totalorder %v1224_v42, 1  ;;  %2070 = vrot.lane.b32.xlu1 %v3247_v38, %s3003_s16  ;;  %2068 = vrot.lane.b32.xlu0 %v3244_v37, %s3003_s16  ;;  %s4648_s16 = sld [smem:[#allocation15 + $0x1d]] }
 0x417   :  { %v4170_v6 = vsel %vm6084_vm5, %v1246_v60, %v1247_v29  ;;  %vm6086_vm0 = vmand %vm3885_vm8, %vm3471_vm6  ;;  %v923_v23 = vadd.f32 %v921_v4, %v884_v18  ;;  %vm6089_vm5 = vcmp.eq.s32.totalorder %v1185_v52, 1  ;;  %vm6090_vm9 = vcmp.lt.s32.totalorder %v3179_v22, 33 }
 0x418   :  { %vm4185_vm11 = vmand %vm6086_vm0, %vm6085_vm7  ;;  %v922_v49 = vadd.f32 %v920_v0, %v883_v31  ;;  %v4191_v56 = vsel %vm6089_vm5, %v4091_v27, 0.0  ;;  %v929_v54 = vsel %vm6090_vm9, %v925_v50, %v927_v44  ;;  %vm6092_vm0 = vcmp.eq.s32.totalorder %v1189_v33, 1  ;;  %v966_v42 = vpop.permute.xlu1 %965 }
 0x419   :  { %vm6091_vm12 = vmmov %vm6090_vm9  ;;  %v4199_v60 = vsel %vm6092_vm0, %v4091_v27, 0.0  ;;  %v1290_v29 = vsel %vm4161_vm4, 1, %v6025_v40  ;;  %v960_v31 = vmul.f32 %v3916_v32, %v929_v54  ;;  %vm1045_vm9 = vcmp.lt.s32.totalorder %v3179_v22, 30 }
 0x41a   :  { %v930_v21 = vsel %vm6091_vm12, %v927_v44, %v925_v50  ;;  %v1259_v33 = vrot.slane %v4131_v9, %v3378_v3  ;;  %v1329_v27 = vsel %vm4185_vm11, 1, %v6025_v40  ;;  %vm1230_vm12 = vcmp.eq.s32.totalorder %v1228_v59, 1  ;;  %vm1366_vm4 = vmand %vm3885_vm8, %vm3531_vm10  ;;  %v964_v9 = vpop.permute.xlu0 %963  ;;  %2109 = vrot.lane.b32.xlu1 %v3247_v38, %s3004_s20  ;;  %2107 = vrot.lane.b32.xlu0 %v3244_v37, %s3004_s20  ;;  %s4671_s20 = sld [smem:[#allocation15 + $0x4f]] }
 0x41b   :  { %v959_v52 = vmul.f32 %v3912_v25, %v930_v21  ;;  %v4214_v18 = vsel %vm1229_vm3, %v1209_v15, 0.0  ;;  %v1263_v25 = vrot.slane %v1255_v47, %v3192_v14  ;;  %v1285_v32 = vstv %s4121_s11  ;;  %vm4250_vm0 = vmand %vm1366_vm4, %vm3568_vm14  ;;  %s4551_s11 = sld [smem:[#allocation15 + $0x1c]] }
 0x41c   :  { %v962_v39 = vadd.f32 %v960_v31, %v923_v23  ;;  %v1294_v24 = vrot.slane %v1290_v29, %v3192_v14  ;;  %v1298_v7 = vrot.slane %v1290_v29, %v3378_v3  ;;  %vm6093_vm11 = vcmp.lt.s32.totalorder %v3179_v22, 32  ;;  %v1005_v21 = vpop.permute.xlu1 %1004 }
 0x41d   :  { %v961_v8 = vadd.f32 %v959_v52, %v922_v49  ;;  %v968_v0 = vsel %vm6093_vm11, %v964_v9, %v966_v42  ;;  %vm6094_vm3 = vmmov %vm6093_vm11  ;;  %v1286_v5 = vstv %s4144_s12  ;;  %v1333_v47 = vrot.slane %v1329_v27, %v3192_v14  ;;  %s4553_s12 = sld [smem:[#allocation15 + $0x4d]] }
 0x41e   :  { %v969_v4 = vsel %vm6094_vm3, %v966_v42, %v964_v9  ;;  %v999_v49 = vmul.f32 %v3974_v20, %v968_v0  ;;  %v4240_v23 = vsel %vm1230_vm12, %v1209_v15, 0.0  ;;  %v1337_v44 = vrot.slane %v1329_v27, %v3378_v3  ;;  %v1003_v29 = vpop.permute.xlu0 %1002  ;;  %2148 = vrot.lane.b32.xlu1 %v3247_v38, %s3005_s5  ;;  %2146 = vrot.lane.b32.xlu0 %v3244_v37, %s3005_s5  ;;  %s4679_s5 = sld [smem:[#allocation15 + $0x1e]] }
 0x41f   :  { %v998_v57 = vmul.f32 %v3920_v19, %v969_v4  ;;  %v1267_v20 = vrot.slane %v1259_v33, %v3192_v14  ;;  %vm1268_vm11 = vcmp.eq.s32.totalorder %v1263_v25, 1  ;;  %v1324_v50 = vstv %s4176_s15  ;;  %s4642_s15 = sld [smem:[#allocation15 + $0x18]] }
 0x420   :  { %v1325_v59 = vstv %s4174_s14  ;;  %vm6097_vm12 = vcmp.lt.s32.totalorder %v3279_v43, 16  ;;  %vm6098_vm3 = vcmp.ge.s32.totalorder %v3279_v43, 0  ;;  %v1001_v54 = vadd.f32 %v999_v49, %v962_v39  ;;  %s3011_s14 = smov 78  }
 0x421   :  { %vm4261_vm5 = vmand %vm6098_vm3, %vm6097_vm12  ;;  %v1000_v34 = vadd.f32 %v998_v57, %v961_v8  ;;  %v1302_v52 = vrot.slane %v1294_v24, %v3192_v14  ;;  %v1306_v31 = vrot.slane %v1298_v7, %v3192_v14  ;;  %vm6101_vm8 = vcmp.lt.s32.totalorder %v3179_v22, 31 }
 0x422   :  { %v1007_v33 = vsel %vm6101_vm8, %v1003_v29, %v1005_v21  ;;  %vm6102_vm4 = vmmov %vm6101_vm8  ;;  %vm6103_vm12 = vcmp.ge.s32.totalorder %v3182_v26, 2  ;;  %v1341_v9 = vrot.slane %v1333_v47, %v3192_v14  ;;  %v1345_v24 = vrot.slane %v1337_v44, %v3192_v14  ;;  %v1042_v47 = vpop.permute.xlu0 %1041  ;;  %2187 = vrot.lane.b32.xlu1 %v3247_v38, %s3006_s23  ;;  %2185 = vrot.lane.b32.xlu0 %v3244_v37, %s3006_s23  ;;  %s4754_s23 = sld [smem:[#allocation15 + $0x51]] }
 0x423   :  { %v1008_v27 = vsel %vm6102_vm4, %v1005_v21, %v1003_v29  ;;  %v1287_v42 = vsel %vm6103_vm12, %v1285_v32, %v1286_v5  ;;  %v1038_v39 = vmul.f32 %v3995_v46, %v1007_v33  ;;  %v1368_v7 = vsel %vm4250_vm0, 1, %v6025_v40  ;;  %vm1406_vm8 = vmand %vm4261_vm5, %vm3311_vm13  ;;  %v1044_v5 = vpop.permute.xlu1 %1043 }
 0x424   :  { %v1037_v8 = vmul.f32 %v3978_v10, %v1008_v27  ;;  %vm1269_vm4 = vcmp.eq.s32.totalorder %v1267_v20, 1  ;;  %v4289_v10 = vsel %vm1268_vm11, %v4170_v6, 0.0  ;;  %v1326_v46 = vsel %vm6103_vm12, %v1324_v50, %v1325_v59  ;;  %vm4317_vm12 = vmand %vm1406_vm8, %vm3329_vm1 }
 0x425   :  { %v1363_v32 = vstv %s4218_s17  ;;  %v1040_v4 = vadd.f32 %v1038_v39, %v1001_v54  ;;  %v1046_v25 = vsel %vm1045_vm9, %v1042_v47, %v1044_v5  ;;  %v1047_v57 = vsel %vm1045_vm9, %v1044_v5, %v1042_v47  ;;  %vm6112_vm11 = vmand %vm4261_vm5, %vm3333_vm2  ;;  %s3012_s17 = smov 77  }
 0x426   :  { %v1039_v0 = vadd.f32 %v1037_v8, %v1000_v34  ;;  %v1364_v49 = vstv %s4232_s19  ;;  %v1372_v44 = vrot.slane %v1368_v7, %v3192_v14  ;;  %v1076_v50 = vmul.f32 %v4033_v62, %v1047_v57  ;;  %2227 = vrot.lane.b32.xlu1 %v3247_v38, %s3007_s26  ;;  %2225 = vrot.lane.b32.xlu0 %v3244_v37, %s3007_s26  ;;  %s4666_s19 = sld [smem:[#allocation15 + $0x4e]]  ;;  %s4812_s26 = sld [smem:[#allocation15 + $0x52]] }
 0x427   :  { %v1077_v59 = vmul.f32 %v4074_v36, %v1046_v25  ;;  %vm6106_vm3 = vnez %v5950_v61  ;;  %v4331_v34 = vsel %vm1269_vm4, %v4170_v6, 0.0  ;;  %vm6107_vm8 = vcmp.eq.s32.totalorder %v1302_v52, 1  ;;  %v1083_v29 = vpop.permute.xlu1 %1082  ;;  %v1081_v52 = vpop.permute.xlu0 %1080 }
 0x428   :  { %v4334_v62 = vsel %vm6107_vm8, %v1287_v42, 0.0  ;;  %vm6109_vm1 = vcmp.eq.s32.totalorder %v1306_v31, 1  ;;  %v1376_v54 = vrot.slane %v1368_v7, %v3378_v3  ;;  %vm6111_vm9 = vnez %v5948_v58  ;;  %vm6123_vm4 = vmand %vm4261_vm5, %vm6106_vm3 }
 0x429   :  { %6108 = vst [vmem:[#allocation38_spill] sm:$0xff] %v4334_v62  ;;  %v4337_v36 = vsel %vm6109_vm1, %v1287_v42, 0.0  ;;  %vm4347_vm0 = vmand %vm6112_vm11, %vm6111_vm9  ;;  %v1078_v6 = vadd.f32 %v1076_v50, %v1039_v0  ;;  %v1079_v20 = vadd.f32 %v1077_v59, %v1040_v4  ;;  %vm6115_vm1 = vcmp.ge.s32.totalorder %v3182_v26, 2 }
 0x42a   :  { %6110 = vst [vmem:[#allocation39_spill] sm:$0xff] %v4337_v36  ;;  %v4353_v31 = vsel %vm6115_vm1, %v1363_v32, %v1364_v49  ;;  %v1408_v33 = vsel %vm4317_vm12, 1, %v6025_v40  ;;  %vm6116_vm11 = vcmp.lt.s32.totalorder %v3179_v22, 29  ;;  %vm6118_vm1 = vcmp.eq.s32.totalorder %v1341_v9, 1  ;;  %2266 = vrot.lane.b32.xlu1 %v3247_v38, %s3008_s30  ;;  %2264 = vrot.lane.b32.xlu0 %v3244_v37, %s3008_s30  ;;  %s4856_s30 = sld [smem:[#allocation15 + $0x54]] }
 0x42b   :  { %v1085_v27 = vsel %vm6116_vm11, %v1081_v52, %v1083_v29  ;;  %vm6117_vm8 = vmmov %vm6116_vm11  ;;  %v4369_v8 = vsel %vm6118_vm1, %v1326_v46, 0.0  ;;  %vm6120_vm9 = vcmp.eq.s32.totalorder %v1345_v24, 1  ;;  %vm6122_vm12 = vnez %v5952_v12  ;;  %v1122_v57 = vpop.permute.xlu1 %1121  ;;  %v1120_v49 = vpop.permute.xlu0 %1119 }
 0x42c   :  { %v1086_v42 = vsel %vm6117_vm8, %v1083_v29, %v1081_v52  ;;  %6119 = vst [vmem:[#allocation40_spill] sm:$0xff] %v4369_v8  ;;  %v4372_v39 = vsel %vm6120_vm9, %v1326_v46, 0.0  ;;  %vm4381_vm2 = vmand %vm6123_vm4, %vm6122_vm12  ;;  %v1116_v9 = vmul.f32 %v4085_v55, %v1085_v27  ;;  %v1380_v24 = vrot.slane %v1372_v44, %v3192_v14 }
 0x42d   :  { %6121 = vst [vmem:[#allocation41_spill] sm:$0xff] %v4372_v39  ;;  %v1115_v32 = vmul.f32 %v4082_v11, %v1086_v42  ;;  %v1447_v46 = vsel %vm4347_vm0, 1, %v6025_v40  ;;  %v1384_v11 = vrot.slane %v1376_v54, %v3192_v14  ;;  %v1402_v0 = vstv %s4296_s21  ;;  %vm6127_vm4 = vmand %vm4261_vm5, %vm6016_vm15  ;;  %s4693_s21 = sld [smem:[#allocation15 + $0x50]] }
 0x42e   :  { %v1403_v55 = vstv %s4294_s6  ;;  %v1412_v4 = vrot.slane %v1408_v33, %v3192_v14  ;;  %vm6126_vm9 = vnez %v5963_v35  ;;  %v1118_v25 = vadd.f32 %v1116_v9, %v1079_v20  ;;  %vm1571_vm0 = vmand %vm4261_vm5, %vm3471_vm6  ;;  %2305 = vrot.lane.b32.xlu1 %v3247_v38, %s3009_s9  ;;  %2303 = vrot.lane.b32.xlu0 %v3244_v37, %s3009_s9  ;;  %s4691_s6 = sld [smem:[#allocation15 + $0x1f]]  ;;  %s4914_s9 = sld [smem:[#allocation15 + $0x55]] }
 0x42f   :  { %vm4408_vm11 = vmand %vm6127_vm4, %vm6126_vm9  ;;  %v1117_v47 = vadd.f32 %v1115_v32, %v1078_v6  ;;  %v1442_v44 = vstv %s4298_s2  ;;  %v1486_v19 = vsel %vm4381_vm2, 1, %v6025_v40  ;;  %vm6130_vm8 = vcmp.lt.s32.totalorder %v3179_v22, 19  ;;  %v4469_v32 = vpop.permute.xlu1 %1161  ;;  %v4471_v9 = vpop.permute.xlu0 %1159  ;;  %s4752_s2 = sld [smem:[#allocation15 + $0x20]] }
 0x430   :  { %v1124_v50 = vsel %vm6130_vm8, %v1120_v49, %v1122_v57  ;;  %vm6131_vm1 = vmmov %vm6130_vm8  ;;  %v1416_v54 = vrot.slane %v1408_v33, %v3378_v3  ;;  %v1451_v21 = vrot.slane %v1447_v46, %v3192_v14  ;;  %vm6132_vm4 = vcmp.lt.s32.totalorder %v3279_v43, 15 }
 0x431   :  { %v1125_v59 = vsel %vm6131_vm1, %v1122_v57, %v1120_v49  ;;  %vm6133_vm9 = vcmp.ge.s32.totalorder %v3279_v43, 4294967295  ;;  %v1156_v29 = vmul.f32 %v4152_v45, %v1124_v50  ;;  %v1455_v52 = vrot.slane %v1447_v46, %v3378_v3 }
 0x432   :  { %vm4430_vm2 = vmand %vm6133_vm9, %vm6132_vm4  ;;  %v1155_v20 = vmul.f32 %v4142_v41, %v1125_v59  ;;  %v4446_v33 = vsel %vm4408_vm11, 1, %v6025_v40  ;;  %vm1385_vm8 = vcmp.eq.s32.totalorder %v1380_v24, 1  ;;  %v1420_v41 = vrot.slane %v1412_v4, %v3192_v14  ;;  %2344 = vrot.lane.b32.xlu1 %v3247_v38, %s3010_s10  ;;  %2342 = vrot.lane.b32.xlu0 %v3244_v37, %s3010_s10  ;;  %s5023_s10 = sld [smem:[#allocation15 + $0x58]] }
 0x433   :  { %vm1610_vm9 = vmand %vm4261_vm5, %vm3531_vm10  ;;  %v1490_v45 = vrot.slane %v1486_v19, %v3192_v14  ;;  %v4467_v7 = vadd.f32 %v1156_v29, %v1118_v25  ;;  %v1443_v46 = vstv %s4358_s24  ;;  %v1494_v4 = vrot.slane %v1486_v19, %v3378_v3  ;;  %s4810_s24 = sld [smem:[#allocation15 + $0x21]] }
 0x434   :  { %vm4461_vm11 = vmand %vm1571_vm0, %vm6085_vm7  ;;  %v4465_v42 = vadd.f32 %v1155_v20, %v1117_v47  ;;  %vm6138_vm4 = vcmp.ge.s32.totalorder %v3182_v26, 2  ;;  %v1424_v47 = vrot.slane %v1416_v54, %v3192_v14  ;;  %v1459_v25 = vrot.slane %v1451_v21, %v3192_v14 }
 0x435   :  { %v1404_v5 = vsel %vm6138_vm4, %v1402_v0, %v1403_v55  ;;  %v1538_v57 = vrot.slane %v4446_v33, %v3192_v14  ;;  %vm4492_vm1 = vmand %vm1610_vm9, %vm3568_vm14  ;;  %v4500_v0 = vsel %vm1385_vm8, %v4353_v31, 0.0  ;;  %v1463_v55 = vrot.slane %v1455_v52, %v3192_v14 }
 0x436   :  { %6141 = vst [vmem:[#allocation42_spill] sm:$0xff] %v4500_v0  ;;  %v1481_v19 = vstv %s4395_s29  ;;  %v1482_v15 = vstv %s4393_s27  ;;  %vm6142_vm4 = vcmp.eq.s32.totalorder %v1384_v11, 1  ;;  %vm1425_vm5 = vcmp.eq.s32.totalorder %v1420_v41, 1  ;;  %vm6146_vm8 = vmand %vm4430_vm2, %vm3311_vm13  ;;  %v4523_v11 = vpop.permute.xlu1 %1200  ;;  %2383 = vrot.lane.b32.xlu1 %v3247_v38, %s3011_s14  ;;  %2381 = vrot.lane.b32.xlu0 %v3244_v37, %s3011_s14  ;;  %s4825_s27 = sld [smem:[#allocation15 + $0x22]]  ;;  %s4827_s29 = sld [smem:[#allocation15 + $0x53]] }
 0x437   :  { %v4507_v50 = vsel %vm6142_vm4, %v4353_v31, 0.0  ;;  %vm6144_vm9 = vcmp.ge.s32.totalorder %v3182_v26, 2  ;;  %v1498_v54 = vrot.slane %v1490_v45, %v3192_v14  ;;  %vm6145_vm0 = vnez %v5942_v51  ;;  %v4525_v31 = vpop.permute.xlu0 %1198  ;;  %s5086_s14 = sld [smem:[#allocation15 + $0x5a]] }
 0x438   :  { %6143 = vst [vmem:[#allocation43_spill] sm:$0xff] %v4507_v50  ;;  %v1444_v59 = vsel %vm6144_vm9, %v1442_v44, %v1443_v46  ;;  %vm4519_vm14 = vmand %vm6146_vm8, %vm6145_vm0  ;;  %v1502_v21 = vrot.slane %v1494_v4, %v3192_v14  ;;  %v1542_v44 = vrot.slane %v4446_v33, %v3378_v3  ;;  %v1573_v20 = vsel %vm4461_vm11, 1, %v6025_v40 }
 0x439   :  { %v1612_v29 = vsel %vm4492_vm1, 1, %v6025_v40  ;;  %vm1426_vm4 = vcmp.eq.s32.totalorder %v1424_v47, 1  ;;  %vm6149_vm8 = vmmov %vm6144_vm9  ;;  %v1546_v33 = vrot.slane %v1538_v57, %v3192_v14  ;;  %v1529_v45 = vstv %s4441_s28  ;;  %s4912_s28 = sld [smem:[#allocation15 + $0x24]] }
 0x43a   :  { %v1483_v52 = vsel %vm6149_vm8, %v1481_v19, %v1482_v15  ;;  %v1530_v27 = vstv %s4439_s1  ;;  %v1652_v46 = vsel %vm4519_vm14, 1, %v6025_v40  ;;  %v1577_v4 = vrot.slane %v1573_v20, %v3192_v14  ;;  %v4561_v19 = vpop.permute.xlu1 %1239  ;;  %vm6153_vm11 = vmmov %vm6144_vm9  ;;  %2422 = vrot.lane.b32.xlu1 %v3247_v38, %s3012_s17  ;;  %2420 = vrot.lane.b32.xlu0 %v3244_v37, %s3012_s17  ;;  %s4872_s1 = sld [smem:[#allocation15 + $0x23]]  ;;  %s5152_s17 = sld [smem:[#allocation15 + $0x2a]] }
 0x43b   :  { %v1581_v57 = vrot.slane %v1573_v20, %v3378_v3  ;;  %v1616_v49 = vrot.slane %v1612_v29, %v3192_v14  ;;  %v4563_v15 = vpop.permute.xlu0 %1237  ;;  %v4566_v17 = vsel %vm1425_vm5, %v1404_v5, 0.0  ;;  %v4569_v50 = vsel %vm1426_vm4, %v1404_v5, 0.0 }
 0x43c   :  { %6150 = vst [vmem:[#allocation44_spill] sm:$0xff] %v4566_v17  ;;  %6151 = vst [vmem:[#allocation45_spill] sm:$0xff] %v4569_v50  ;;  %vm1504_vm8 = vcmp.eq.s32.totalorder %v1502_v21, 1  ;;  %v4574_v24 = vrot.slane %v1542_v44, %v3192_v14  ;;  %vm6152_vm14 = vnez %v5944_v53  ;;  %v1531_v20 = vsel %vm6153_vm11, %v1529_v45, %v1530_v27 }
 0x43d   :  { %v1620_v41 = vrot.slane %v1612_v29, %v3378_v3  ;;  %v1656_v5 = vrot.slane %v1652_v46, %v3192_v14  ;;  %vm6154_vm4 = vcmp.eq.s32.totalorder %v1459_v25, 1  ;;  %vm6156_vm11 = vcmp.eq.s32.totalorder %v1463_v55, 1 }
 0x43e   :  { %v4591_v47 = vsel %vm6154_vm4, %v1444_v59, 0.0  ;;  %v4594_v44 = vsel %vm6156_vm11, %v1444_v59, 0.0  ;;  %vm6158_vm9 = vcmp.eq.s32.totalorder %v1498_v54, 1  ;;  %v1660_v45 = vrot.slane %v1652_v46, %v3378_v3  ;;  %vm6163_vm4 = vmand %vm4430_vm2, %vm6152_vm14  ;;  %v4621_v21 = vpop.permute.xlu1 %1278 }
 0x43f   :  { %6155 = vst [vmem:[#allocation46_spill] sm:$0xff] %v4591_v47  ;;  %6157 = vst [vmem:[#allocation47_spill] sm:$0xff] %v4594_v44  ;;  %v4597_v29 = vsel %vm6158_vm9, %v1483_v52, 0.0  ;;  %vm6160_vm5 = vnez %v5954_v16  ;;  %v4605_v25 = vsel %vm1504_vm8, %v1483_v52, 0.0  ;;  %v1585_v27 = vrot.slane %v1577_v4, %v3192_v14  ;;  %v4623_v52 = vpop.permute.xlu0 %1276 }
 0x440   :  { %6159 = vst [vmem:[#allocation48_spill] sm:$0xff] %v4597_v29  ;;  %6161 = vst [vmem:[#allocation49_spill] sm:$0xff] %v4605_v25  ;;  %v1589_v55 = vrot.slane %v1581_v57, %v3192_v14  ;;  %v1624_v59 = vrot.slane %v1616_v49, %v3192_v14  ;;  %vm6162_vm9 = vnez %v5948_v58  ;;  %vm6166_vm1 = vcmp.eq.s32.totalorder %v1546_v33, 1 }
 0x441   :  { %vm4617_vm11 = vmand %vm6163_vm4, %vm6162_vm9  ;;  %v4627_v46 = vsel %vm6166_vm1, %v1531_v20, 0.0  ;;  %v1568_v4 = vstv %s4532_s22  ;;  %v1569_v57 = vstv %s4530_s0  ;;  %v1607_v25 = vstv %s4545_s25  ;;  %s4946_s0 = sld [smem:[#allocation15 + $0x25]]  ;;  %s4948_s22 = sld [smem:[#allocation15 + $0x56]] }
 0x442   :  { %6167 = vst [vmem:[#allocation50_spill] sm:$0xff] %v4627_v46  ;;  %vm6168_vm4 = vmand %vm4430_vm2, %vm6106_vm3  ;;  %v1608_v33 = vstv %s4543_s4  ;;  %v1628_v29 = vrot.slane %v1620_v41, %v3192_v14  ;;  %v1664_v46 = vrot.slane %v1656_v5, %v3192_v14  ;;  %vm6171_vm1 = vnez %v5961_v30  ;;  %s4996_s4 = sld [smem:[#allocation15 + $0x26]]  ;;  %s4998_s25 = sld [smem:[#allocation15 + $0x57]] }
 0x443   :  { %vm4638_vm9 = vmand %vm6168_vm4, %vm6122_vm12  ;;  %v1646_v41 = vstv %s4553_s12  ;;  %v1647_v5 = vstv %s4551_s11  ;;  %v1668_v47 = vrot.slane %v1660_v45, %v3192_v14  ;;  %v1691_v50 = vsel %vm4617_vm11, 1, %v6025_v40  ;;  %v4681_v45 = vpop.permute.xlu1 %1317  ;;  %v4683_v0 = vpop.permute.xlu0 %1315  ;;  %s5032_s11 = sld [smem:[#allocation15 + $0x27]]  ;;  %s5053_s12 = sld [smem:[#allocation15 + $0x28]] }
 0x444   :  { %vm6172_vm4 = vmand %vm4430_vm2, %vm6160_vm5  ;;  %vm1590_vm5 = vcmp.eq.s32.totalorder %v1585_v27, 1  ;;  %v1513_v54 = vstv %s4571_s13  ;;  %v1730_v8 = vsel %vm4638_vm9, 1, %v6025_v40  ;;  %v1695_v36 = vrot.slane %v1691_v50, %v3192_v14  ;;  %s5055_s13 = sld [smem:[#allocation15 + $0x59]] }
 0x445   :  { %vm4657_vm8 = vmand %vm6172_vm4, %vm6171_vm1  ;;  %vm6175_vm1 = vcmp.ge.s32.totalorder %v3182_v26, 2 }
 0x446   :  { %vm1806_vm4 = vmand %vm4430_vm2, %vm6016_vm15  ;;  %v1570_v17 = vsel %vm6175_vm1, %v1568_v4, %v1569_v57  ;;  %v1769_v4 = vsel %vm4657_vm8, 1, %v6025_v40  ;;  %vm6181_vm8 = vcmp.eq.s32.totalorder %v4574_v24, 1  ;;  %v1738_v24 = vrot.slane %v1730_v8, %v3378_v3 }
 0x447   :  { %vm6176_vm11 = vmmov %vm6175_vm1  ;;  %vm1630_vm1 = vcmp.eq.s32.totalorder %v1628_v29, 1  ;;  %v4714_v44 = vsel %vm6181_vm8, %v1531_v20, 0.0  ;;  %v4717_v49 = vsel %vm1590_vm5, %v1570_v17, 0.0  ;;  %v1773_v20 = vrot.slane %v1769_v4, %v3192_v14  ;;  %v4730_v27 = vpop.permute.xlu1 %1356 }
 0x448   :  { %v1609_v39 = vsel %vm6176_vm11, %v1607_v25, %v1608_v33  ;;  %vm6177_vm3 = vmmov %vm6176_vm11  ;;  %vm6178_vm11 = vnez %v5963_v35  ;;  %6182 = vst [vmem:[#allocation51_spill] sm:$0xff] %v4714_v44  ;;  %v1699_v33 = vrot.slane %v1691_v50, %v3378_v3  ;;  %vm6188_vm5 = vcmp.eq.s32.totalorder %v1624_v59, 1 }
 0x449   :  { %v1648_v57 = vsel %vm6177_vm3, %v1646_v41, %v1647_v5  ;;  %vm4708_vm9 = vmand %vm1806_vm4, %vm6178_vm11  ;;  %6183 = vst [vmem:[#allocation52_spill] sm:$0xff] %v4717_v49  ;;  %vm1670_vm3 = vcmp.eq.s32.totalorder %v1668_v47, 1  ;;  %vm6184_vm4 = vcmp.eq.s32.totalorder %v1589_v55, 1  ;;  %v1734_v5 = vrot.slane %v1730_v8, %v3192_v14  ;;  %v4732_v47 = vpop.permute.xlu0 %1354 }
 0x44a   :  { %vm1845_vm12 = vmand %vm4430_vm2, %vm3471_vm6  ;;  %v4725_v41 = vsel %vm6184_vm4, %v1570_v17, 0.0  ;;  %6186 = vst [vmem:[#allocation54_spill] sm:$0xff] %v4730_v27  ;;  %v4735_v50 = vsel %vm6188_vm5, %v1609_v39, 0.0  ;;  %v4738_v55 = vsel %vm1630_vm1, %v1609_v39, 0.0  ;;  %vm6191_vm8 = vcmp.eq.s32.totalorder %v1664_v46, 1 }
 0x44b   :  { %6185 = vst [vmem:[#allocation53_spill] sm:$0xff] %v4725_v41  ;;  %6187 = vst [vmem:[#allocation55_spill] sm:$0xff] %v4732_v47  ;;  %v4741_v17 = vsel %vm6191_vm8, %v1648_v57, 0.0  ;;  %v1777_v8 = vrot.slane %v1769_v4, %v3378_v3  ;;  %v1514_v41 = vstv %s4642_s15  ;;  %v4749_v49 = vsel %vm1670_vm3, %v1648_v57, 0.0  ;;  %v4797_v44 = vpop.permute.xlu1 %1395  ;;  %s5092_s15 = sld [smem:[#allocation15 + $0x29]] }
 0x44c   :  { %6189 = vst [vmem:[#allocation56_spill] sm:$0xff] %v4735_v50  ;;  %6190 = vst [vmem:[#allocation57_spill] sm:$0xff] %v4738_v55  ;;  %v1703_v59 = vrot.slane %v1695_v36, %v3192_v14  ;;  %v1808_v39 = vsel %vm4708_vm9, 1, %v6025_v40  ;;  %v1686_v36 = vstv %s4666_s19  ;;  %v1687_v46 = vstv %s4648_s16  ;;  %s5128_s16 = sld [smem:[#allocation15 + $0x5b]] }
 0x44d   :  { %6192 = vst [vmem:[#allocation58_spill] sm:$0xff] %v4741_v17  ;;  %vm1884_vm4 = vmand %vm4430_vm2, %vm3531_vm10  ;;  %v1707_v4 = vrot.slane %v1699_v33, %v3192_v14  ;;  %v1725_v57 = vstv %s4671_s20  ;;  %vm6196_vm3 = vcmp.lt.s32.totalorder %v3279_v43, 14  ;;  %vm6197_vm9 = vcmp.ge.s32.totalorder %v3279_v43, 4294967294  ;;  %v4799_v47 = vpop.permute.xlu0 %1393  ;;  %s5312_s19 = sld [smem:[#allocation15 + $0x2b]]  ;;  %s5314_s20 = sld [smem:[#allocation15 + $0x5c]] }
 0x44e   :  { %6193 = vst [vmem:[#allocation59_spill] sm:$0xff] %v4749_v49  ;;  %vm4766_vm1 = vmand %vm1845_vm12, %vm6085_vm7  ;;  %v1726_v49 = vstv %s4679_s5  ;;  %v1742_v17 = vrot.slane %v1734_v5, %v3192_v14  ;;  %v1746_v55 = vrot.slane %v1738_v24, %v3192_v14  ;;  %v1781_v50 = vrot.slane %v1773_v20, %v3192_v14  ;;  %s5359_s5 = sld [smem:[#allocation15 + $0x2c]] }
 0x44f   :  { %vm4778_vm5 = vmand %vm6197_vm9, %vm6196_vm3  ;;  %vm6200_vm12 = vnez %v5989_v2  ;;  %6203 = vst [vmem:[#allocation60_spill] sm:$0xff] %v4797_v44  ;;  %v1764_v5 = vstv %s4693_s21  ;;  %v1765_v27 = vstv %s4691_s6  ;;  %v1785_v24 = vrot.slane %v1777_v8, %v3192_v14  ;;  %v4834_v29 = vpop.permute.xlu1 %1435  ;;  %s5361_s6 = sld [smem:[#allocation15 + $0x5d]] }
 0x450   :  { %vm4793_vm8 = vmand %vm1884_vm4, %vm6200_vm12  ;;  %6204 = vst [vmem:[#allocation61_spill] sm:$0xff] %v4799_v47  ;;  %v1812_v20 = vrot.slane %v1808_v39, %v3192_v14  ;;  %vm6205_vm3 = vcmp.ge.s32.totalorder %v3182_v26, 2  ;;  %v1816_v62 = vrot.slane %v1808_v39, %v3378_v3  ;;  %v1847_v47 = vsel %vm4766_vm1, 1, %v6025_v40  ;;  %s5386_s21 = sld [smem:[#allocation15 + $0x2d]] }
 0x451   :  { %v4807_v6 = vsel %vm6205_vm3, %v1513_v54, %v1514_v41  ;;  %vm6206_vm4 = vmmov %vm6205_vm3  ;;  %vm1709_vm3 = vcmp.eq.s32.totalorder %v1707_v4, 1  ;;  %v1886_v8 = vsel %vm4793_vm8, 1, %v6025_v40  ;;  %vm1747_vm1 = vcmp.eq.s32.totalorder %v1742_v17, 1  ;;  %6209 = vst [vmem:[#allocation62_spill] sm:$0xff] %v4834_v29 }
 0x452   :  { %v1688_v54 = vsel %vm6206_vm4, %v1686_v36, %v1687_v46  ;;  %vm6207_vm9 = vmmov %vm6206_vm4  ;;  %vm1748_vm12 = vcmp.eq.s32.totalorder %v1746_v55, 1  ;;  %v4836_v36 = vpop.permute.xlu0 %1433  ;;  %v1851_v46 = vrot.slane %v1847_v47, %v3192_v14  ;;  %v1803_v33 = vstv %s4754_s23  ;;  %s5449_s23 = sld [smem:[#allocation15 + $0x5f]] }
 0x453   :  { %v1727_v41 = vsel %vm6207_vm9, %v1725_v57, %v1726_v49  ;;  %vm6208_vm2 = vmmov %vm6206_vm4  ;;  %6210 = vst [vmem:[#allocation63_spill] sm:$0xff] %v4836_v36  ;;  %v1820_v49 = vrot.slane %v1812_v20, %v3192_v14  ;;  %v1855_v57 = vrot.slane %v1847_v47, %v3378_v3  ;;  %v1824_v36 = vrot.slane %v1816_v62, %v3192_v14 }
 0x454   :  { %v1766_v39 = vsel %vm6208_vm2, %v1764_v5, %v1765_v27  ;;  %vm6211_vm8 = vmand %vm4778_vm5, %vm3311_vm13  ;;  %v1804_v5 = vstv %s4752_s2  ;;  %v1890_v20 = vrot.slane %v1886_v8, %v3192_v14  ;;  %vm6214_vm4 = vcmp.eq.s32.totalorder %v1703_v59, 1  ;;  %s5388_s2 = sld [smem:[#allocation15 + $0x5e]] }
 0x455   :  { %vm4848_vm2 = vmand %vm6211_vm8, %vm6145_vm0  ;;  %v4863_v47 = vsel %vm6214_vm4, %v1688_v54, 0.0  ;;  %v4866_v29 = vsel %vm1709_vm3, %v1688_v54, 0.0  ;;  %v4869_v44 = vsel %vm1747_vm1, %v1727_v41, 0.0  ;;  %v1894_v62 = vrot.slane %v1886_v8, %v3378_v3  ;;  %v4890_v8 = vpop.permute.xlu1 %1474 }
 0x456   :  { %6215 = vst [vmem:[#allocation64_spill] sm:$0xff] %v4863_v47  ;;  %6216 = vst [vmem:[#allocation65_spill] sm:$0xff] %v4866_v29  ;;  %vm6218_vm8 = vnez %v5950_v61  ;;  %v4879_v59 = vsel %vm1748_vm12, %v1727_v41, 0.0  ;;  %vm6220_vm4 = vcmp.eq.s32.totalorder %v1781_v50, 1  ;;  %vm6222_vm3 = vcmp.eq.s32.totalorder %v1785_v24, 1 }
 0x457   :  { %6217 = vst [vmem:[#allocation66_spill] sm:$0xff] %v4869_v44  ;;  %6219 = vst [vmem:[#allocation67_spill] sm:$0xff] %v4879_v59  ;;  %v4882_v4 = vsel %vm6220_vm4, %v1766_v39, 0.0  ;;  %v4885_v17 = vsel %vm6222_vm3, %v1766_v39, 0.0  ;;  %v1926_v54 = vsel %vm4848_vm2, 1, %v6025_v40  ;;  %v4892_v44 = vpop.permute.xlu0 %1472  ;;  %v1859_v50 = vrot.slane %v1851_v46, %v3192_v14 }
 0x458   :  { %6221 = vst [vmem:[#allocation68_spill] sm:$0xff] %v4882_v4  ;;  %6223 = vst [vmem:[#allocation69_spill] sm:$0xff] %v4885_v17  ;;  %v1863_v24 = vrot.slane %v1855_v57, %v3192_v14  ;;  %vm6226_vm4 = vnez %v5948_v58  ;;  %v1842_v39 = vstv %s4812_s26  ;;  %v1843_v27 = vstv %s4810_s24  ;;  %s5471_s24 = sld [smem:[#allocation15 + $0x2e]]  ;;  %s5595_s26 = sld [smem:[#allocation15 + $0x60]] }
 0x459   :  { %6224 = vst [vmem:[#allocation70_spill] sm:$0xff] %v4892_v44  ;;  %vm6225_vm1 = vmmov %vm6207_vm9  ;;  %v1881_v57 = vstv %s4827_s29  ;;  %v1902_v17 = vrot.slane %v1894_v62, %v3192_v14  ;;  %vm6234_vm9 = vnez %v5954_v16  ;;  %v4937_v4 = vmul.f32 %v4807_v6, %v3247_v38  ;;  %v4950_v47 = vpop.permute.xlu1 %1522  ;;  %s5670_s29 = sld [smem:[#allocation15 + $0x61]] }
 0x45a   :  { %v1805_v55 = vsel %vm6225_vm1, %v1803_v33, %v1804_v5  ;;  %vm6227_vm2 = vmand %vm4778_vm5, %vm6152_vm14  ;;  %v1898_v33 = vrot.slane %v1890_v20, %v3192_v14  ;;  %vm6230_vm1 = vnez %v5952_v12  ;;  %v1882_v5 = vstv %s4825_s27  ;;  %s5608_s27 = sld [smem:[#allocation15 + $0x2f]] }
 0x45b   :  { %vm4905_vm3 = vmand %vm6227_vm2, %vm6226_vm4  ;;  %v1930_v20 = vrot.slane %v1926_v54, %v3192_v14  ;;  %v1934_v29 = vrot.slane %v1926_v54, %v3378_v3  ;;  %v4952_v44 = vpop.permute.xlu0 %1520  ;;  %vm6237_vm4 = vcmp.eq.s32.totalorder %v1824_v36, 1  ;;  %v1920_v41 = vstv %s4856_s30  ;;  %s5703_s30 = sld [smem:[#allocation15 + $0x30]] }
 0x45c   :  { %vm6231_vm12 = vmand %vm4778_vm5, %vm6218_vm8  ;;  %v1965_v62 = vsel %vm4905_vm3, 1, %v6025_v40  ;;  %v4955_v38 = vsel %vm6237_vm4, %v1805_v55, 0.0  ;;  %vm1865_vm8 = vcmp.eq.s32.totalorder %v1863_v24, 1  ;;  %vm1903_vm0 = vcmp.eq.s32.totalorder %v1898_v33, 1 }
 0x45d   :  { %vm4923_vm2 = vmand %vm6231_vm12, %vm6230_vm1  ;;  %vm6235_vm12 = vcmp.eq.s32.totalorder %v1820_v49, 1  ;;  %6238 = vst [vmem:[#allocation72_spill] sm:$0xff] %v4955_v38  ;;  %vm1864_vm1 = vcmp.eq.s32.totalorder %v1859_v50, 1  ;;  %vm6241_vm4 = vnez %v5961_v30  ;;  %vm1904_vm3 = vcmp.eq.s32.totalorder %v1902_v17, 1 }
 0x45e   :  { %v4940_v59 = vsel %vm6235_vm12, %v1805_v55, 0.0  ;;  %vm6239_vm12 = vcmp.ge.s32.totalorder %v3182_v26, 2  ;;  %v2004_v36 = vsel %vm4923_vm2, 1, %v6025_v40  ;;  %v1921_v50 = vstv %s4872_s1  ;;  %vm6247_vm2 = vmand %vm4778_vm5, %vm6016_vm15 }
 0x45f   :  { %6236 = vst [vmem:[#allocation71_spill] sm:$0xff] %v4940_v59  ;;  %v1844_v49 = vsel %vm6239_vm12, %v1842_v39, %v1843_v27  ;;  %vm6240_vm14 = vmmov %vm6239_vm12  ;;  %v1938_v24 = vrot.slane %v1930_v20, %v3192_v14  ;;  %v1969_v39 = vrot.slane %v1965_v62, %v3192_v14  ;;  %v4989_v27 = vmul.f32 %v4807_v6, %v3244_v37  ;;  %v5011_v6 = vpop.permute.xlu1 %1561  ;;  %v5013_v20 = vpop.permute.xlu0 %1559 }
 0x460   :  { %v1883_v54 = vsel %vm6240_vm14, %v1881_v57, %v1882_v5  ;;  %vm6242_vm12 = vmand %vm4778_vm5, %vm6234_vm9  ;;  %v4991_v46 = vsel %vm1864_vm1, %v1844_v49, 0.0  ;;  %v4993_v57 = vsel %vm1865_vm8, %v1844_v49, 0.0  ;;  %v1942_v5 = vrot.slane %v1934_v29, %v3192_v14 }
 0x461   :  { %vm4976_vm13 = vmand %vm6242_vm12, %vm6241_vm4  ;;  %6245 = vst [vmem:[#allocation73_spill] sm:$0xff] %v4991_v46  ;;  %v5016_v29 = vsel %vm1903_vm0, %v1883_v54, 0.0  ;;  %v1973_v49 = vrot.slane %v1965_v62, %v3378_v3  ;;  %v5026_v38 = vsel %vm1904_vm3, %v1883_v54, 0.0  ;;  %vm6252_vm8 = vcmp.ge.s32.totalorder %v3182_v26, 2 }
 0x462   :  { %vm2119_vm14 = vmand %vm4778_vm5, %vm3471_vm6  ;;  %6246 = vst [vmem:[#allocation74_spill] sm:$0xff] %v4993_v57  ;;  %v2008_v57 = vrot.slane %v2004_v36, %v3192_v14  ;;  %v2043_v46 = vsel %vm4976_vm13, 1, %v6025_v40  ;;  %v1922_v33 = vsel %vm6252_vm8, %v1920_v41, %v1921_v50  ;;  %v1960_v59 = vstv %s4914_s9 }
 0x463   :  { %vm5007_vm12 = vmand %vm6247_vm2, %vm6178_vm11  ;;  %6250 = vst [vmem:[#allocation75_spill] sm:$0xff] %v5016_v29  ;;  %v1961_v29 = vstv %s4912_s28  ;;  %vm1943_vm0 = vcmp.eq.s32.totalorder %v1938_v24, 1  ;;  %v1977_v17 = vrot.slane %v1969_v39, %v3192_v14  ;;  %v2012_v54 = vrot.slane %v2004_v36, %v3378_v3  ;;  %v5060_v39 = vpop.permute.xlu0 %1598 }
 0x464   :  { %6251 = vst [vmem:[#allocation76_spill] sm:$0xff] %v5026_v38  ;;  %vm5041_vm13 = vmand %vm2119_vm14, %vm6085_vm7  ;;  %v2082_v41 = vsel %vm5007_vm12, 1, %v6025_v40  ;;  %vm1944_vm1 = vcmp.eq.s32.totalorder %v1942_v5, 1  ;;  %v1999_v55 = vstv %s4948_s22  ;;  %v2000_v50 = vstv %s4946_s0  ;;  %v5058_v38 = vpop.permute.xlu1 %1600 }
 0x465   :  { %v2047_v63 = vrot.slane %v2043_v46, %v3192_v14  ;;  %6255 = vst [vmem:[#allocation77_spill] sm:$0xff] %v5060_v39  ;;  %vm6256_vm14 = vmmov %vm6252_vm8  ;;  %v1981_v37 = vrot.slane %v1973_v49, %v3192_v14  ;;  %v2016_v1 = vrot.slane %v2008_v57, %v3192_v14  ;;  %v2121_v35 = vsel %vm5041_vm13, 1, %v6025_v40 }
 0x466   :  { %v1962_v36 = vsel %vm6256_vm14, %v1960_v59, %v1961_v29  ;;  %vm2158_vm2 = vmand %vm4778_vm5, %vm3531_vm10  ;;  %v5074_v28 = vsel %vm1943_vm0, %v1922_v33, 0.0  ;;  %v2051_v39 = vrot.slane %v2043_v46, %v3378_v3  ;;  %v2086_v59 = vrot.slane %v2082_v41, %v3192_v14 }
 0x467   :  { %6257 = vst [vmem:[#allocation78_spill] sm:$0xff] %v5074_v28  ;;  %v2090_v29 = vrot.slane %v2082_v41, %v3378_v3  ;;  %v5081_v57 = vsel %vm1944_vm1, %v1922_v33, 0.0  ;;  %vm1982_vm8 = vcmp.eq.s32.totalorder %v1977_v17, 1  ;;  %vm6259_vm13 = vmmov %vm6256_vm14  ;;  %v2020_v24 = vrot.slane %v2012_v54, %v3192_v14 }
 0x468   :  { %6258 = vst [vmem:[#allocation79_spill] sm:$0xff] %v5081_v57  ;;  %v2001_v49 = vsel %vm6259_vm13, %v1999_v55, %v2000_v50  ;;  %v2038_v46 = vstv %s4998_s25  ;;  %v2039_v62 = vstv %s4996_s4  ;;  %v2055_v28 = vrot.slane %v2047_v63, %v3192_v14  ;;  %v5106_v33 = vpop.permute.xlu1 %1639  ;;  %v5108_v63 = vpop.permute.xlu0 %1637  ;;  %vm6271_vm3 = vmmov %vm6256_vm14 }
 0x469   :  { %v2125_v41 = vrot.slane %v2121_v35, %v3192_v14  ;;  %vm6260_vm0 = vnez %v5989_v2  ;;  %6263 = vst [vmem:[#allocation80_spill] sm:$0xff] %v5106_v33  ;;  %6264 = vst [vmem:[#allocation81_spill] sm:$0xff] %v5108_v63  ;;  %vm1983_vm13 = vcmp.eq.s32.totalorder %v1981_v37, 1  ;;  %v2077_v54 = vstv %s5023_s10 }
 0x46a   :  { %vm5101_vm1 = vmand %vm2158_vm2, %vm6260_vm0  ;;  %v2129_v25 = vrot.slane %v2121_v35, %v3378_v3  ;;  %v2059_v55 = vrot.slane %v2051_v39, %v3192_v14  ;;  %v2078_v50 = vstv %s5032_s11  ;;  %v2094_v2 = vrot.slane %v2086_v59, %v3192_v14 }
 0x46b   :  { %v2098_v13 = vrot.slane %v2090_v29, %v3192_v14  ;;  %v5118_v57 = vsel %vm1982_vm8, %v1962_v36, 0.0  ;;  %v2040_v63 = vsel %vm6256_vm14, %v2038_v46, %v2039_v62  ;;  %v2160_v35 = vsel %vm5101_vm1, 1, %v6025_v40 }
 0x46c   :  { %6265 = vst [vmem:[#allocation82_spill] sm:$0xff] %v5118_v57  ;;  %v2116_v39 = vstv %s5055_s13  ;;  %v2117_v33 = vstv %s5053_s12  ;;  %v2133_v59 = vrot.slane %v2125_v41, %v3192_v14  ;;  %vm6266_vm5 = vcmp.lt.s32.totalorder %v3279_v43, 13  ;;  %v5139_v29 = vpop.permute.xlu1 %1679  ;;  %v5141_v46 = vpop.permute.xlu0 %1677 }
 0x46d   :  { %vm6267_vm8 = vcmp.ge.s32.totalorder %v3279_v43, 4294967293  ;;  %v5144_v62 = vsel %vm1983_vm13, %v1962_v36, 0.0  ;;  %vm6270_vm1 = vcmp.eq.s32.totalorder %v2016_v1, 1  ;;  %v2079_v43 = vsel %vm6271_vm3, %v2077_v54, %v2078_v50 }
 0x46e   :  { %vm5134_vm12 = vmand %vm6267_vm8, %vm6266_vm5  ;;  %v5147_v41 = vsel %vm6270_vm1, %v2001_v49, 0.0  ;;  %v2137_v5 = vrot.slane %v2129_v25, %v3192_v14  ;;  %vm2061_vm5 = vcmp.eq.s32.totalorder %v2059_v55, 1  ;;  %v2164_v57 = vrot.slane %v2160_v35, %v3192_v14 }
 0x46f   :  { %vm6272_vm13 = vcmp.eq.s32.totalorder %v2020_v24, 1  ;;  %vm6273_vm1 = vcmp.eq.s32.totalorder %v2055_v28, 1  ;;  %v2118_v37 = vsel %vm6271_vm3, %v2116_v39, %v2117_v33  ;;  %v2155_v54 = vstv %s5086_s14 }
 0x470   :  { %v5157_v36 = vsel %vm6272_vm13, %v2001_v49, 0.0  ;;  %v5160_v1 = vsel %vm6273_vm1, %v2040_v63, 0.0  ;;  %vm6275_vm0 = vnez %v5940_v48  ;;  %vm6276_vm14 = vcmp.lt.s32.totalorder %v3179_v22, 18  ;;  %v5179_v24 = vpop.permute.xlu1 %1718  ;;  %v5181_v33 = vpop.permute.xlu0 %1716 }
 0x471   :  { %6274 = vst [vmem:[#allocation83_spill] sm:$0xff] %v5160_v1  ;;  %v1164_v25 = vsel %vm6276_vm14, %v4471_v9, %v4469_v32  ;;  %vm6277_vm13 = vmmov %vm6276_vm14  ;;  %vm2138_vm1 = vcmp.eq.s32.totalorder %v2133_v59, 1  ;;  %v2156_v49 = vstv %s5092_s15  ;;  %v5184_v50 = vsel %vm2061_vm5, %v2040_v63, 0.0 }
 0x472   :  { %v1165_v28 = vsel %vm6277_vm13, %v4469_v32, %v4471_v9  ;;  %vm6278_vm2 = vcmp.eq.s32.totalorder %v2094_v2, 1  ;;  %vm6279_vm14 = vcmp.eq.s32.totalorder %v2098_v13, 1  ;;  %vm2139_vm8 = vcmp.eq.s32.totalorder %v2137_v5, 1  ;;  %vm6283_vm5 = vmand %vm5134_vm12, %vm6275_vm0 }
 0x473   :  { %v5187_v39 = vsel %vm6278_vm2, %v2079_v43, 0.0  ;;  %v5190_v1 = vsel %vm6279_vm14, %v2079_v43, 0.0  ;;  %vm6280_vm13 = vcmp.lt.s32.totalorder %v3179_v22, 17  ;;  %v2168_v63 = vrot.slane %v2160_v35, %v3378_v3 }
 0x474   :  { %v1203_v32 = vsel %vm6280_vm13, %v4525_v31, %v4523_v11  ;;  %vm6281_vm3 = vmmov %vm6280_vm13  ;;  %v2172_v2 = vrot.slane %v2164_v57, %v3192_v14  ;;  %vm6282_vm2 = vnez %v5942_v51  ;;  %v1194_v55 = vmul.f32 %v4191_v56, %v1165_v28  ;;  %v5237_v43 = vpop.permute.xlu1 %1757  ;;  %v5239_v5 = vpop.permute.xlu0 %1755 }
 0x475   :  { %v1204_v9 = vsel %vm6281_vm3, %v4523_v11, %v4525_v31  ;;  %vm5209_vm14 = vmand %vm6283_vm5, %vm6282_vm2  ;;  %v1195_v11 = vmul.f32 %v4199_v60, %v1164_v25  ;;  %v5217_v31 = vsel %vm2138_vm1, %v2118_v37, 0.0  ;;  %vm6286_vm13 = vcmp.ge.s32.totalorder %v3182_v26, 2 }
 0x476   :  { %v5221_v51 = vsel %vm6286_vm13, %v2155_v54, %v2156_v49  ;;  %vm6287_vm0 = vcmp.lt.s32.totalorder %v3179_v22, 16  ;;  %v5231_v60 = vsel %vm2139_vm8, %v2118_v37, 0.0  ;;  %v2194_v57 = vstv %s5128_s16 }
 0x477   :  { %v1242_v48 = vsel %vm6287_vm0, %v4563_v15, %v4561_v19  ;;  %vm6288_vm2 = vmmov %vm6287_vm0  ;;  %v1233_v35 = vmul.f32 %v4214_v18, %v1204_v9  ;;  %v1234_v59 = vmul.f32 %v4240_v23, %v1203_v32  ;;  %v2195_v54 = vstv %s5152_s17 }
 0x478   :  { %v1243_v56 = vsel %vm6288_vm2, %v4561_v19, %v4563_v15  ;;  %v2200_v25 = vsel %vm5209_vm14, 1, %v6025_v40  ;;  %vm6289_vm8 = vcmp.lt.s32.totalorder %v3179_v22, 15  ;;  %v5254_v23 = vrot.slane %v2168_v63, %v3192_v14  ;;  %v6297_v63 = vld [vmem:[#allocation39_spill] sm:$0xff] }
 0x479   :  { %v1281_v19 = vsel %vm6289_vm8, %v4623_v52, %v4621_v21  ;;  %vm6290_vm5 = vmmov %vm6289_vm8  ;;  %vm6291_vm0 = vnez %v5944_v53  ;;  %v1196_v15 = vadd.f32 %v1194_v55, %v4465_v42  ;;  %v1197_v37 = vadd.f32 %v1195_v11, %v4467_v7  ;;  %v6296_v7 = vld [vmem:[#allocation38_spill] sm:$0xff]  ;;  %v5283_v55 = vpop.permute.xlu1 %1796 }
 0x47a   :  { %v1282_v18 = vsel %vm6290_vm5, %v4621_v21, %v4623_v52  ;;  %vm2237_vm2 = vmand %vm5134_vm12, %vm6291_vm0  ;;  %v1272_v28 = vmul.f32 %v4289_v10, %v1243_v56  ;;  %v1273_v49 = vmul.f32 %v4331_v34, %v1242_v48  ;;  %vm6292_vm14 = vcmp.lt.s32.totalorder %v3179_v22, 14  ;;  %v6301_v11 = vld [vmem:[#allocation54_spill] sm:$0xff]  ;;  %v6302_v48 = vld [vmem:[#allocation55_spill] sm:$0xff] }
 0x47b   :  { %v1320_v21 = vsel %vm6292_vm14, %v4683_v0, %v4681_v45  ;;  %vm6293_vm8 = vmmov %vm6292_vm14  ;;  %v2204_v42 = vrot.slane %v2200_v25, %v3192_v14  ;;  %vm6295_vm1 = vnez %v5950_v61  ;;  %v1235_v10 = vadd.f32 %v1233_v35, %v1196_v15 }
 0x47c   :  { %v1321_v52 = vsel %vm6293_vm8, %v4681_v45, %v4683_v0  ;;  %vm6294_vm5 = vmmov %vm6286_vm13  ;;  %v1236_v34 = vadd.f32 %v1234_v59, %v1197_v37  ;;  %v1311_v9 = vmul.f32 %v6296_v7, %v1282_v18  ;;  %v1312_v13 = vmul.f32 %v6297_v63, %v1281_v19  ;;  %v5285_v0 = vpop.permute.xlu0 %1794  ;;  %v6307_v18 = vld [vmem:[#allocation41_spill] sm:$0xff]  ;;  %v6317_v7 = vld [vmem:[#allocation43_spill] sm:$0xff] }
 0x47d   :  { %v5274_v32 = vsel %vm6294_vm5, %v2194_v57, %v2195_v54  ;;  %vm6298_vm14 = vnez %v5948_v58  ;;  %vm6303_vm5 = vcmp.lt.s32.totalorder %v3179_v22, 13  ;;  %vm2178_vm13 = vcmp.eq.s32.totalorder %v5254_v23, 1  ;;  %v6306_v54 = vld [vmem:[#allocation40_spill] sm:$0xff]  ;;  %v6313_v37 = vld [vmem:[#allocation61_spill] sm:$0xff] }
 0x47e   :  { %vm5294_vm8 = vmand %vm2237_vm2, %vm6298_vm14  ;;  %v1359_v56 = vsel %vm6303_vm5, %v6302_v48, %v6301_v11  ;;  %vm6305_vm10 = vcmp.eq.s32.totalorder %v2172_v2, 1  ;;  %v2208_v58 = vrot.slane %v2200_v25, %v3378_v3  ;;  %v1274_v35 = vadd.f32 %v1272_v28, %v1235_v10  ;;  %v6312_v25 = vld [vmem:[#allocation60_spill] sm:$0xff]  ;;  %v6316_v10 = vld [vmem:[#allocation42_spill] sm:$0xff] }
 0x47f   :  { %vm6304_vm3 = vmmov %vm6303_vm5  ;;  %v5309_v53 = vsel %vm6305_vm10, %v5221_v51, 0.0  ;;  %v1275_v59 = vadd.f32 %v1273_v49, %v1236_v34  ;;  %v1350_v19 = vmul.f32 %v6306_v54, %v1321_v52  ;;  %v1351_v15 = vmul.f32 %v6307_v18, %v1320_v21  ;;  %v6318_v54 = vld [vmem:[#allocation62_spill] sm:$0xff]  ;;  %v6319_v18 = vld [vmem:[#allocation63_spill] sm:$0xff] }
 0x480   :  { %v1360_v57 = vsel %vm6304_vm3, %v6301_v11, %v6302_v48  ;;  %vm6308_vm3 = vnez %v5952_v12  ;;  %vm6309_vm10 = vmand %vm5134_vm12, %vm6295_vm1  ;;  %vm6314_vm2 = vcmp.lt.s32.totalorder %v3179_v22, 3  ;;  %v5338_v12 = vrot.slane %v2204_v42, %v3192_v14  ;;  %v5346_v11 = vpop.permute.xlu1 %1835  ;;  %v5348_v48 = vpop.permute.xlu0 %1833 }
 0x481   :  { %vm5325_vm0 = vmand %vm6309_vm10, %vm6308_vm3  ;;  %v1398_v28 = vsel %vm6314_vm2, %v6313_v37, %v6312_v25  ;;  %v2239_v61 = vsel %vm5294_vm8, 1, %v6025_v40  ;;  %v1313_v21 = vadd.f32 %v1311_v9, %v1274_v35  ;;  %v1314_v52 = vadd.f32 %v1312_v13, %v1275_v59  ;;  %v6322_v35 = vld [vmem:[#allocation44_spill] sm:$0xff] }
 0x482   :  { %vm6315_vm14 = vmmov %vm6314_vm2  ;;  %v1389_v34 = vmul.f32 %v6316_v10, %v1360_v57  ;;  %v1390_v63 = vmul.f32 %v6317_v7, %v1359_v56  ;;  %vm1524_vm1 = vcmp.lt.s32.totalorder %v3179_v22, 127  ;;  %vm6320_vm5 = vcmp.lt.s32.totalorder %v3179_v22, 2  ;;  %v6328_v7 = vld [vmem:[#allocation47_spill] sm:$0xff] }
 0x483   :  { %v1399_v49 = vsel %vm6315_vm14, %v6312_v25, %v6313_v37  ;;  %v1438_v42 = vsel %vm6320_vm5, %v6319_v18, %v6318_v54  ;;  %vm6321_vm8 = vmmov %vm6320_vm5  ;;  %v2216_v13 = vrot.slane %v2208_v58, %v3192_v14  ;;  %v2278_v45 = vsel %vm5325_vm0, 1, %v6025_v40  ;;  %v6323_v25 = vld [vmem:[#allocation45_spill] sm:$0xff]  ;;  %v6324_v58 = vld [vmem:[#allocation70_spill] sm:$0xff] }
 0x484   :  { %v1439_v9 = vsel %vm6321_vm8, %v6318_v54, %v6319_v18  ;;  %v1352_v56 = vadd.f32 %v1350_v19, %v1313_v21  ;;  %v1353_v57 = vadd.f32 %v1351_v15, %v1314_v52  ;;  %v1429_v59 = vmul.f32 %v6322_v35, %v1399_v49  ;;  %v5382_v18 = vpop.permute.xlu1 %1874  ;;  %v5384_v35 = vpop.permute.xlu0 %1872  ;;  %vm2315_vm5 = vmand %vm5134_vm12, %vm6234_vm9 }
 0x485   :  { %v1430_v37 = vmul.f32 %v6323_v25, %v1398_v28  ;;  %vm1563_vm3 = vcmp.lt.s32.totalorder %v3179_v22, 126  ;;  %vm6325_vm10 = vcmp.lt.s32.totalorder %v3179_v22, 1  ;;  %v2243_v19 = vrot.slane %v2239_v61, %v3192_v14  ;;  %v6327_v28 = vld [vmem:[#allocation46_spill] sm:$0xff] }
 0x486   :  { %v1477_v10 = vsel %vm6325_vm10, %v6324_v58, %v4890_v8  ;;  %vm6326_vm2 = vmmov %vm6325_vm10  ;;  %v2247_v15 = vrot.slane %v2239_v61, %v3378_v3  ;;  %v1391_v49 = vadd.f32 %v1389_v34, %v1352_v56  ;;  %v1392_v21 = vadd.f32 %v1390_v63, %v1353_v57  ;;  %v6329_v56 = vld [vmem:[#allocation48_spill] sm:$0xff]  ;;  %v6330_v57 = vld [vmem:[#allocation49_spill] sm:$0xff] }
 0x487   :  { %v1478_v2 = vsel %vm6326_vm2, %v4890_v8, %v6324_v58  ;;  %v1468_v52 = vmul.f32 %v6327_v28, %v1439_v9  ;;  %v1469_v54 = vmul.f32 %v6328_v7, %v1438_v42  ;;  %vm1602_vm0 = vcmp.lt.s32.totalorder %v3179_v22, 125  ;;  %vm5427_vm2 = vmand %vm2315_vm5, %vm6241_vm4 }
 0x488   :  { %v2234_v8 = vstv %s5314_s20  ;;  %v2235_v25 = vstv %s5312_s19  ;;  %v2282_v61 = vrot.slane %v2278_v45, %v3192_v14  ;;  %v2286_v34 = vrot.slane %v2278_v45, %v3378_v3 }
 0x489   :  { %v1431_v63 = vadd.f32 %v1429_v59, %v1391_v49  ;;  %v1432_v9 = vadd.f32 %v1430_v37, %v1392_v21  ;;  %v1507_v42 = vmul.f32 %v6329_v56, %v1478_v2  ;;  %v1508_v58 = vmul.f32 %v6330_v57, %v1477_v10  ;;  %v5405_v2 = vpop.permute.xlu1 %1913  ;;  %v5407_v10 = vpop.permute.xlu0 %1911 }
 0x48a   :  { %vm2217_vm8 = vcmp.eq.s32.totalorder %v5338_v12, 1  ;;  %vm2218_vm10 = vcmp.eq.s32.totalorder %v2216_v13, 1  ;;  %v2251_v45 = vrot.slane %v2243_v19, %v3192_v14  ;;  %v2255_v59 = vrot.slane %v2247_v15, %v3192_v14 }
 0x48b   :  { %v1470_v37 = vadd.f32 %v1468_v52, %v1431_v63  ;;  %v1471_v49 = vadd.f32 %v1469_v54, %v1432_v9  ;;  %v5412_v21 = vsel %vm2178_vm13, %v5221_v51, 0.0  ;;  %vm6331_vm14 = vcmp.ge.s32.totalorder %v3182_v26, 2 }
 0x48c   :  { %v2236_v28 = vsel %vm6331_vm14, %v2234_v8, %v2235_v25  ;;  %v2273_v7 = vstv %s5361_s6  ;;  %v2274_v19 = vstv %s5359_s5  ;;  %v2290_v15 = vrot.slane %v2282_v61, %v3192_v14 }
 0x48d   :  { %v2294_v52 = vrot.slane %v2286_v34, %v3192_v14  ;;  %v1509_v23 = vadd.f32 %v1507_v42, %v1470_v37  ;;  %v1510_v54 = vadd.f32 %v1508_v58, %v1471_v49  ;;  %vm1720_vm13 = vcmp.lt.s32.totalorder %v3179_v22, 113  ;;  %v5452_v12 = vpop.permute.xlu1 %1953  ;;  %v6335_v42 = vld [vmem:[#allocation50_spill] sm:$0xff]  ;;  %v6336_v58 = vld [vmem:[#allocation51_spill] sm:$0xff]  ;;  %v6337_v49 = vld [vmem:[#allocation77_spill] sm:$0xff] }
 0x48e   :  { %v5435_v8 = vsel %vm2217_vm8, %v5274_v32, 0.0  ;;  %v5439_v30 = vsel %vm2218_vm10, %v5274_v32, 0.0  ;;  %v1525_v16 = vsel %vm1524_vm1, %v4952_v44, %v4950_v47  ;;  %v1526_v25 = vsel %vm1524_vm1, %v4950_v47, %v4952_v44  ;;  %v5454_v32 = vpop.permute.xlu0 %1951 }
 0x48f   :  { %vm2256_vm9 = vcmp.eq.s32.totalorder %v2251_v45, 1  ;;  %vm2257_vm4 = vcmp.eq.s32.totalorder %v2255_v59, 1  ;;  %vm1759_vm14 = vcmp.lt.s32.totalorder %v3179_v22, 112  ;;  %vm6334_vm5 = vcmp.ge.s32.totalorder %v3182_v26, 2 }
 0x490   :  { %v2275_v13 = vsel %vm6334_vm5, %v2273_v7, %v2274_v19  ;;  %v2312_v61 = vstv %s5388_s2  ;;  %v2313_v34 = vstv %s5386_s21  ;;  %v2317_v63 = vsel %vm5427_vm2, 1, %v6025_v40  ;;  %v6339_v19 = vld [vmem:[#allocation52_spill] sm:$0xff] }
 0x491   :  { %v1564_v44 = vsel %vm1563_vm3, %v5013_v20, %v5011_v6  ;;  %v1565_v47 = vsel %vm1563_vm3, %v5011_v6, %v5013_v20  ;;  %vm2295_vm1 = vcmp.eq.s32.totalorder %v2290_v15, 1  ;;  %vm2296_vm8 = vcmp.eq.s32.totalorder %v2294_v52, 1  ;;  %vm2354_vm3 = vmand %vm5134_vm12, %vm6016_vm15  ;;  %v6353_v20 = vld [vmem:[#allocation59_spill] sm:$0xff] }
 0x492   :  { %v1519_v9 = vadd.f32 %v4937_v4, %v1510_v54  ;;  %v1518_v56 = vadd.f32 %v4989_v27, %v1509_v23  ;;  %v1555_v57 = vmul.f32 %v6335_v42, %v1525_v16  ;;  %v1556_v37 = vmul.f32 %v6336_v58, %v1526_v25  ;;  %v6340_v23 = vld [vmem:[#allocation53_spill] sm:$0xff]  ;;  %v5499_v16 = vpop.permute.xlu1 %1992 }
 0x493   :  { %vm1798_vm10 = vcmp.lt.s32.totalorder %v3179_v22, 111  ;;  %v1603_v7 = vsel %vm1602_vm0, %v6337_v49, %v5058_v38  ;;  %v1604_v6 = vsel %vm1602_vm0, %v5058_v38, %v6337_v49  ;;  %v5487_v4 = vsel %vm2256_vm9, %v2236_v28, 0.0  ;;  %v5501_v38 = vpop.permute.xlu0 %1990  ;;  %vm6342_vm0 = vmmov %vm6334_vm5  ;;  %v6344_v25 = vld [vmem:[#allocation81_spill] sm:$0xff] }
 0x494   :  { %v5490_v27 = vsel %vm2257_vm4, %v2236_v28, 0.0  ;;  %v1594_v51 = vmul.f32 %v6339_v19, %v1564_v44  ;;  %v1595_v54 = vmul.f32 %v6340_v23, %v1565_v47  ;;  %vm1837_vm2 = vcmp.lt.s32.totalorder %v3179_v22, 110  ;;  %v6343_v28 = vld [vmem:[#allocation80_spill] sm:$0xff] }
 0x495   :  { %v5504_v45 = vsel %vm2295_vm1, %v2275_v13, 0.0  ;;  %v5508_v59 = vsel %vm6342_vm0, %v2312_v61, %v2313_v34  ;;  %vm6345_vm9 = vcmp.lt.s32.totalorder %v3179_v22, 115  ;;  %v5519_v42 = vsel %vm2296_vm8, %v2275_v13, 0.0  ;;  %v6347_v19 = vld [vmem:[#allocation56_spill] sm:$0xff]  ;;  %v6348_v34 = vld [vmem:[#allocation57_spill] sm:$0xff]  ;;  %vm2355_vm1 = vmand %vm2354_vm3, %vm6178_vm11 }
 0x496   :  { %6341 = vst [vmem:[#allocation38_spill] sm:$0xff] %v5504_v45  ;;  %v1642_v44 = vsel %vm6345_vm9, %v6344_v25, %v6343_v28  ;;  %vm6346_vm4 = vmmov %vm6345_vm9  ;;  %v2321_v15 = vrot.slane %v2317_v63, %v3192_v14  ;;  %v1557_v58 = vadd.f32 %v1555_v57, %v1518_v56  ;;  %v1558_v49 = vadd.f32 %v1556_v37, %v1519_v9 }
 0x497   :  { %v1643_v47 = vsel %vm6346_vm4, %v6343_v28, %v6344_v25  ;;  %v1633_v61 = vmul.f32 %v6347_v19, %v1603_v7  ;;  %v1634_v23 = vmul.f32 %v6348_v34, %v1604_v6  ;;  %vm1876_vm5 = vcmp.lt.s32.totalorder %v3179_v22, 109  ;;  %v6352_v7 = vld [vmem:[#allocation58_spill] sm:$0xff]  ;;  %v5545_v28 = vpop.permute.xlu1 %2031  ;;  %v5547_v25 = vpop.permute.xlu0 %2029 }
 0x498   :  { %vm6350_vm8 = vcmp.lt.s32.totalorder %v3179_v22, 114  ;;  %v2325_v9 = vrot.slane %v2317_v63, %v3378_v3  ;;  %v2351_v56 = vstv %s5449_s23  ;;  %v1596_v57 = vadd.f32 %v1594_v51, %v1557_v58 }
 0x499   :  { %v1682_v52 = vsel %vm6350_vm8, %v5141_v46, %v5139_v29  ;;  %vm6351_vm0 = vmmov %vm6350_vm8  ;;  %v1597_v37 = vadd.f32 %v1595_v54, %v1558_v49  ;;  %v1673_v6 = vmul.f32 %v6352_v7, %v1642_v44  ;;  %v1674_v45 = vmul.f32 %v6353_v20, %v1643_v47  ;;  %v6354_v47 = vld [vmem:[#allocation64_spill] sm:$0xff]  ;;  %v6355_v49 = vld [vmem:[#allocation65_spill] sm:$0xff] }
 0x49a   :  { %v1683_v13 = vsel %vm6351_vm0, %v5139_v29, %v5141_v46  ;;  %vm1915_vm15 = vcmp.lt.s32.totalorder %v3179_v22, 99  ;;  %v1721_v29 = vsel %vm1720_vm13, %v5181_v33, %v5179_v24  ;;  %v1722_v46 = vsel %vm1720_vm13, %v5179_v24, %v5181_v33 }
 0x49b   :  { %v2352_v63 = vstv %s5471_s24  ;;  %v5559_v51 = vsel %vm2355_vm1, 1, %v6025_v40  ;;  %v1635_v54 = vadd.f32 %v1633_v61, %v1596_v57  ;;  %v1636_v44 = vadd.f32 %v1634_v23, %v1597_v37  ;;  %v6356_v57 = vld [vmem:[#allocation66_spill] sm:$0xff]  ;;  %v6357_v37 = vld [vmem:[#allocation67_spill] sm:$0xff]  ;;  %v5577_v20 = vpop.permute.xlu1 %2070 }
 0x49c   :  { %v1712_v58 = vmul.f32 %v6354_v47, %v1682_v52  ;;  %v1713_v19 = vmul.f32 %v6355_v49, %v1683_v13  ;;  %vm1955_vm11 = vcmp.lt.s32.totalorder %v3179_v22, 98  ;;  %v1760_v34 = vsel %vm1759_vm14, %v5239_v5, %v5237_v43  ;;  %v5579_v47 = vpop.permute.xlu0 %2068 }
 0x49d   :  { %v1761_v24 = vsel %vm1759_vm14, %v5237_v43, %v5239_v5  ;;  %v2329_v33 = vrot.slane %v2321_v15, %v3192_v14  ;;  %v2333_v61 = vrot.slane %v2325_v9, %v3192_v14  ;;  %v1675_v23 = vadd.f32 %v1673_v6, %v1635_v54  ;;  %v6360_v54 = vld [vmem:[#allocation69_spill] sm:$0xff] }
 0x49e   :  { %v1676_v52 = vadd.f32 %v1674_v45, %v1636_v44  ;;  %v1751_v13 = vmul.f32 %v6356_v57, %v1721_v29  ;;  %v1752_v7 = vmul.f32 %v6357_v37, %v1722_v46  ;;  %vm1994_vm13 = vcmp.lt.s32.totalorder %v3179_v22, 97  ;;  %v6359_v29 = vld [vmem:[#allocation68_spill] sm:$0xff] }
 0x49f   :  { %v1799_v43 = vsel %vm1798_vm10, %v5285_v0, %v5283_v55  ;;  %v1800_v5 = vsel %vm1798_vm10, %v5283_v55, %v5285_v0  ;;  %vm6358_vm14 = vcmp.ge.s32.totalorder %v3182_v26, 2  ;;  %v2360_v9 = vrot.slane %v5559_v51, %v3192_v14 }
 0x4a0   :  { %v5591_v15 = vsel %vm6358_vm14, %v2351_v56, %v2352_v63  ;;  %v1714_v6 = vadd.f32 %v1712_v58, %v1675_v23  ;;  %v1715_v45 = vadd.f32 %v1713_v19, %v1676_v52  ;;  %v1790_v46 = vmul.f32 %v6359_v29, %v1760_v34  ;;  %v6361_v58 = vld [vmem:[#allocation71_spill] sm:$0xff]  ;;  %v6362_v19 = vld [vmem:[#allocation72_spill] sm:$0xff]  ;;  %v5615_v23 = vpop.permute.xlu0 %2107 }
 0x4a1   :  { %v1791_v44 = vmul.f32 %v6360_v54, %v1761_v24  ;;  %vm2033_vm3 = vcmp.lt.s32.totalorder %v3179_v22, 96  ;;  %v1838_v55 = vsel %vm1837_vm2, %v5348_v48, %v5346_v11  ;;  %v1839_v0 = vsel %vm1837_vm2, %v5346_v11, %v5348_v48  ;;  %v5613_v24 = vpop.permute.xlu1 %2109  ;;  %vm2393_vm2 = vmand %vm5134_vm12, %vm3471_vm6  ;;  %v6366_v54 = vld [vmem:[#allocation75_spill] sm:$0xff] }
 0x4a2   :  { %vm2334_vm10 = vcmp.eq.s32.totalorder %v2329_v33, 1  ;;  %vm2335_vm9 = vcmp.eq.s32.totalorder %v2333_v61, 1  ;;  %v1753_v56 = vadd.f32 %v1751_v13, %v1714_v6  ;;  %v1754_v63 = vadd.f32 %v1752_v7, %v1715_v45  ;;  %v6365_v6 = vld [vmem:[#allocation74_spill] sm:$0xff]  ;;  %vm2394_vm8 = vmand %vm2393_vm2, %vm6085_vm7 }
 0x4a3   :  { %v1829_v49 = vmul.f32 %v6361_v58, %v1799_v43  ;;  %v1830_v34 = vmul.f32 %v6362_v19, %v1800_v5  ;;  %vm2072_vm4 = vcmp.lt.s32.totalorder %v3179_v22, 95  ;;  %v1877_v11 = vsel %vm1876_vm5, %v5384_v35, %v5382_v18  ;;  %v6364_v43 = vld [vmem:[#allocation73_spill] sm:$0xff] }
 0x4a4   :  { %v1878_v48 = vsel %vm1876_vm5, %v5382_v18, %v5384_v35  ;;  %v2364_v52 = vrot.slane %v5559_v51, %v3378_v3  ;;  %v2368_v57 = vrot.slane %v2360_v9, %v3192_v14  ;;  %v1792_v37 = vadd.f32 %v1790_v46, %v1753_v56 }
 0x4a5   :  { %v1793_v7 = vadd.f32 %v1791_v44, %v1754_v63  ;;  %v1868_v5 = vmul.f32 %v6364_v43, %v1838_v55  ;;  %v1869_v45 = vmul.f32 %v6365_v6, %v1839_v0  ;;  %vm2111_vm1 = vcmp.lt.s32.totalorder %v3179_v22, 94  ;;  %v6367_v55 = vld [vmem:[#allocation76_spill] sm:$0xff]  ;;  %v2149_v56 = vpop.permute.xlu1 %2148  ;;  %v2147_v63 = vpop.permute.xlu0 %2146  ;;  %v6371_v43 = vld [vmem:[#allocation82_spill] sm:$0xff] }
 0x4a6   :  { %v1916_v18 = vsel %vm1915_vm15, %v5407_v10, %v5405_v2  ;;  %v1917_v35 = vsel %vm1915_vm15, %v5405_v2, %v5407_v10  ;;  %v5645_v51 = vsel %vm2334_vm10, %v5508_v59, 0.0  ;;  %v5649_v9 = vsel %vm2335_vm9, %v5508_v59, 0.0 }
 0x4a7   :  { %v1831_v29 = vadd.f32 %v1829_v49, %v1792_v37  ;;  %v1832_v46 = vadd.f32 %v1830_v34, %v1793_v7  ;;  %v1907_v44 = vmul.f32 %v6366_v54, %v1877_v11  ;;  %v1908_v0 = vmul.f32 %v6367_v55, %v1878_v48  ;;  %v6369_v49 = vld [vmem:[#allocation78_spill] sm:$0xff]  ;;  %v6370_v34 = vld [vmem:[#allocation79_spill] sm:$0xff] }
 0x4a8   :  { %vm2150_vm5 = vcmp.lt.s32.totalorder %v3179_v22, 93  ;;  %v1956_v10 = vsel %vm1955_vm11, %v5454_v32, %v5452_v12  ;;  %v1957_v59 = vsel %vm1955_vm11, %v5452_v12, %v5454_v32  ;;  %vm2373_vm0 = vcmp.eq.s32.totalorder %v2368_v57, 1 }
 0x4a9   :  { %v2390_v33 = vstv %s5595_s26  ;;  %v1870_v61 = vadd.f32 %v1868_v5, %v1831_v29  ;;  %v1871_v58 = vadd.f32 %v1869_v45, %v1832_v46  ;;  %v1947_v19 = vmul.f32 %v6369_v49, %v1916_v18  ;;  %v2188_v45 = vpop.permute.xlu1 %2187  ;;  %v2186_v18 = vpop.permute.xlu0 %2185  ;;  %v6372_v29 = vld [vmem:[#allocation36_spill] sm:$0xff] }
 0x4aa   :  { %v1948_v11 = vmul.f32 %v6370_v34, %v1917_v35  ;;  %vm2189_vm6 = vcmp.lt.s32.totalorder %v3179_v22, 83  ;;  %v1995_v48 = vsel %vm1994_vm13, %v5501_v38, %v5499_v16  ;;  %v1996_v12 = vsel %vm1994_vm13, %v5499_v16, %v5501_v38 }
 0x4ab   :  { %v2391_v32 = vstv %s5608_s27  ;;  %v2395_v13 = vsel %vm2394_vm8, 1, %v6025_v40  ;;  %v1909_v37 = vadd.f32 %v1907_v44, %v1870_v61  ;;  %v1910_v7 = vadd.f32 %v1908_v0, %v1871_v58  ;;  %v6374_v0 = vld [vmem:[#allocation83_spill] sm:$0xff]  ;;  %v6375_v58 = vld [vmem:[#allocation37_spill] sm:$0xff]  ;;  %vm6378_vm8 = vmmov %vm6358_vm14 }
 0x4ac   :  { %v1986_v5 = vmul.f32 %v6371_v43, %v1956_v10  ;;  %v1987_v6 = vmul.f32 %v5144_v62, %v1957_v59  ;;  %vm2229_vm7 = vcmp.lt.s32.totalorder %v3179_v22, 82  ;;  %v2034_v35 = vsel %vm2033_vm3, %v5547_v25, %v5545_v28 }
 0x4ad   :  { %v2035_v16 = vsel %vm2033_vm3, %v5545_v28, %v5547_v25  ;;  %v5697_v38 = vrot.slane %v2364_v52, %v3192_v14  ;;  %v5701_v62 = vsel %vm2373_vm0, %v5591_v15, 0.0  ;;  %vm6373_vm15 = vnez %v6372_v29  ;;  %v2228_v59 = vpop.permute.xlu1 %2227  ;;  %v2226_v61 = vpop.permute.xlu0 %2225 }
 0x4ae   :  { %vm2432_vm11 = vmand %vm5134_vm12, %vm6373_vm15  ;;  %v1949_v46 = vadd.f32 %v1947_v19, %v1909_v37  ;;  %v1950_v54 = vadd.f32 %v1948_v11, %v1910_v7  ;;  %v2025_v44 = vmul.f32 %v5147_v41, %v1995_v48  ;;  %v2026_v28 = vmul.f32 %v5157_v36, %v1996_v12 }
 0x4af   :  { %vm2268_vm13 = vcmp.lt.s32.totalorder %v3179_v22, 81  ;;  %v2073_v25 = vsel %vm2072_vm4, %v5579_v47, %v5577_v20  ;;  %v2074_v52 = vsel %vm2072_vm4, %v5577_v20, %v5579_v47  ;;  %v5722_v57 = vsel %vm6358_vm14, %v2390_v33, %v2391_v32 }
 0x4b0   :  { %v2399_v41 = vrot.slane %v2395_v13, %v3192_v14  ;;  %v1988_v36 = vadd.f32 %v1986_v5, %v1949_v46  ;;  %v1989_v55 = vadd.f32 %v1987_v6, %v1950_v54  ;;  %v2064_v2 = vmul.f32 %v6374_v0, %v2034_v35 }
 0x4b1   :  { %v2065_v10 = vmul.f32 %v5184_v50, %v2035_v16  ;;  %vm2307_vm3 = vcmp.lt.s32.totalorder %v3179_v22, 80  ;;  %vm6376_vm10 = vnez %v6375_v58  ;;  %v2112_v20 = vsel %vm2111_vm1, %v5615_v23, %v5613_v24  ;;  %v2265_v37 = vpop.permute.xlu0 %2264 }
 0x4b2   :  { %vm2433_vm9 = vmand %vm2432_vm11, %vm6376_vm10  ;;  %v2113_v50 = vsel %vm2111_vm1, %v5613_v24, %v5615_v23  ;;  %v2403_v47 = vrot.slane %v2395_v13, %v3378_v3  ;;  %v2429_v33 = vstv %s5670_s29  ;;  %v2027_v49 = vadd.f32 %v2025_v44, %v1988_v36  ;;  %v2267_v13 = vpop.permute.xlu1 %2266 }
 0x4b3   :  { %v2028_v19 = vadd.f32 %v2026_v28, %v1989_v55  ;;  %v2103_v17 = vmul.f32 %v5187_v39, %v2073_v25  ;;  %v2104_v34 = vmul.f32 %v5190_v1, %v2074_v52  ;;  %vm2346_vm12 = vcmp.lt.s32.totalorder %v3179_v22, 79 }
 0x4b4   :  { %vm2374_vm4 = vcmp.eq.s32.totalorder %v5697_v38, 1  ;;  %v2151_v11 = vsel %vm2150_vm5, %v2147_v63, %v2149_v56  ;;  %v2152_v24 = vsel %vm2150_vm5, %v2149_v56, %v2147_v63  ;;  %v2407_v23 = vrot.slane %v2399_v41, %v3192_v14 }
 0x4b5   :  { %v2434_v48 = vsel %vm2433_vm9, 1, %v6025_v40  ;;  %v2066_v12 = vadd.f32 %v2064_v2, %v2027_v49  ;;  %v2067_v32 = vadd.f32 %v2065_v10, %v2028_v19  ;;  %v2142_v39 = vmul.f32 %v5217_v31, %v2112_v20  ;;  %v6377_v10 = vld [vmem:[#allocation38_spill] sm:$0xff] }
 0x4b6   :  { %v2143_v1 = vmul.f32 %v5231_v60, %v2113_v50  ;;  %v2190_v7 = vsel %vm2189_vm6, %v2186_v18, %v2188_v45  ;;  %v2191_v43 = vsel %vm2189_vm6, %v2188_v45, %v2186_v18  ;;  %v2411_v56 = vrot.slane %v2403_v47, %v3192_v14  ;;  %v2306_v54 = vpop.permute.xlu1 %2305 }
 0x4b7   :  { %v2430_v63 = vstv %s5703_s30  ;;  %v2105_v5 = vadd.f32 %v2103_v17, %v2066_v12  ;;  %v2106_v6 = vadd.f32 %v2104_v34, %v2067_v32  ;;  %v2181_v40 = vmul.f32 %v5309_v53, %v2151_v11 }
 0x4b8   :  { %v2182_v35 = vmul.f32 %v5412_v21, %v2152_v24  ;;  %vm2385_vm2 = vcmp.lt.s32.totalorder %v3179_v22, 78  ;;  %v2230_v31 = vsel %vm2229_vm7, %v2226_v61, %v2228_v59  ;;  %v2231_v60 = vsel %vm2229_vm7, %v2228_v59, %v2226_v61  ;;  %v2304_v21 = vpop.permute.xlu0 %2303 }
 0x4b9   :  { %v2438_v16 = vrot.slane %v2434_v48, %v3192_v14  ;;  %v2442_v45 = vrot.slane %v2434_v48, %v3378_v3  ;;  %v2144_v18 = vadd.f32 %v2142_v39, %v2105_v5  ;;  %v2145_v29 = vadd.f32 %v2143_v1, %v2106_v6 }
 0x4ba   :  { %v2221_v46 = vmul.f32 %v5435_v8, %v2190_v7  ;;  %v2222_v53 = vmul.f32 %v5439_v30, %v2191_v43  ;;  %v2269_v44 = vsel %vm2268_vm13, %v2265_v37, %v2267_v13  ;;  %v2270_v28 = vsel %vm2268_vm13, %v2267_v13, %v2265_v37  ;;  %v2345_v58 = vpop.permute.xlu1 %2344 }
 0x4bb   :  { %vm2412_vm1 = vcmp.eq.s32.totalorder %v2407_v23, 1  ;;  %vm2413_vm5 = vcmp.eq.s32.totalorder %v2411_v56, 1  ;;  %v2183_v25 = vadd.f32 %v2181_v40, %v2144_v18  ;;  %v2184_v52 = vadd.f32 %v2182_v35, %v2145_v29 }
 0x4bc   :  { %v2260_v3 = vmul.f32 %v5487_v4, %v2230_v31  ;;  %v2261_v41 = vmul.f32 %v5490_v27, %v2231_v60  ;;  %v2308_v8 = vsel %vm2307_vm3, %v2304_v21, %v2306_v54  ;;  %v2309_v30 = vsel %vm2307_vm3, %v2306_v54, %v2304_v21  ;;  %v2343_v4 = vpop.permute.xlu0 %2342 }
 0x4bd   :  { %v2446_v36 = vrot.slane %v2438_v16, %v3192_v14  ;;  %v2450_v55 = vrot.slane %v2442_v45, %v3192_v14  ;;  %v2223_v0 = vadd.f32 %v2221_v46, %v2183_v25  ;;  %v2224_v2 = vadd.f32 %v2222_v53, %v2184_v52 }
 0x4be   :  { %v2299_v59 = vmul.f32 %v6377_v10, %v2269_v44  ;;  %v2300_v61 = vmul.f32 %v5519_v42, %v2270_v28  ;;  %v2376_v27 = vsel %vm2374_vm4, %v5591_v15, 0.0  ;;  %v2347_v20 = vsel %vm2346_vm12, %v2343_v4, %v2345_v58 }
 0x4bf   :  { %v2348_v50 = vsel %vm2346_vm12, %v2345_v58, %v2343_v4  ;;  %v2431_v47 = vsel %vm6378_vm8, %v2429_v33, %v2430_v63  ;;  %v2262_v49 = vadd.f32 %v2260_v3, %v2223_v0  ;;  %v2263_v19 = vadd.f32 %v2261_v41, %v2224_v2  ;;  %v2384_v33 = vpop.permute.xlu1 %2383 }
 0x4c0   :  { %v2338_v17 = vmul.f32 %v5645_v51, %v2308_v8  ;;  %v2339_v42 = vmul.f32 %v5649_v9, %v2309_v30  ;;  %v2414_v34 = vsel %vm2412_vm1, %v5722_v57, 0.0  ;;  %v2415_v15 = vsel %vm2413_vm5, %v5722_v57, 0.0  ;;  %v2382_v12 = vpop.permute.xlu0 %2381 }
 0x4c1   :  { %vm2451_vm0 = vcmp.eq.s32.totalorder %v2446_v36, 1  ;;  %vm2452_vm6 = vcmp.eq.s32.totalorder %v2450_v55, 1  ;;  %v2301_v38 = vadd.f32 %v2299_v59, %v2262_v49  ;;  %v2302_v11 = vadd.f32 %v2300_v61, %v2263_v19  ;;  %v6380_v19 = vld [vmem:[#allocation26_spill] sm:$0xff] }
 0x4c2   :  { %v2377_v24 = vmul.f32 %v5701_v62, %v2347_v20  ;;  %v2378_v48 = vmul.f32 %v2376_v27, %v2348_v50  ;;  %v2386_v51 = vsel %vm2385_vm2, %v2382_v12, %v2384_v33  ;;  %v2387_v9 = vsel %vm2385_vm2, %v2384_v33, %v2382_v12  ;;  %v6379_v20 = vld [vmem:[#allocation23_spill] sm:$0xff]  ;;  %v6385_v33 = vld [vmem:[#allocation29_spill] sm:$0xff] }
 0x4c3   :  { %vm2424_vm7 = vcmp.lt.s32.totalorder %v3179_v22, 77  ;;  %v2340_v23 = vadd.f32 %v2338_v17, %v2301_v38  ;;  %v2341_v32 = vadd.f32 %v2339_v42, %v2302_v11  ;;  %v2416_v57 = vmul.f32 %v2414_v34, %v2386_v51  ;;  %v2423_v62 = vpop.permute.xlu1 %2422  ;;  %v6381_v42 = vld [vmem:[#allocation27_spill] sm:$0xff]  ;;  %v6382_v34 = vld [vmem:[#allocation24_spill] sm:$0xff]  ;;  %v6383_v38 = vld [vmem:[#allocation25_spill] sm:$0xff] }
 0x4c4   :  { %v2417_v39 = vmul.f32 %v2415_v15, %v2387_v9  ;;  %v2453_v1 = vsel %vm2451_vm0, %v2431_v47, 0.0  ;;  %v2454_v13 = vsel %vm2452_vm6, %v2431_v47, 0.0  ;;  %v2421_v43 = vpop.permute.xlu0 %2420  ;;  %v2468_v45 = vstv %s5847_s7  ;;  %s3014_s7 = smov [#allocation16]   ;;  %v6386_v51 = vld [vmem:[#allocation30_spill] sm:$0xff] }
 0x4c5   :  { %v2379_v37 = vadd.f32 %v2377_v24, %v2340_v23  ;;  %v2380_v7 = vadd.f32 %v2378_v48, %v2341_v32  ;;  %v2425_v56 = vsel %vm2424_vm7, %v2421_v43, %v2423_v62  ;;  %v2426_v63 = vsel %vm2424_vm7, %v2423_v62, %v2421_v43  ;;  %s2547_s9 = sshll.u32 %s3014_s7, 4  ;;  %v6384_v24 = vld [vmem:[#allocation28_spill] sm:$0xff]  ;;  %v6387_v23 = vld [vmem:[#allocation31_spill] sm:$0xff]  ;;  %s2548_s9 = int_to_ptr.vmem [resolvable:$true] %s2547_s9 }
 0x4c6   :  { %v2455_v40 = vmul.f32 %v2453_v1, %v2425_v56  ;;  %v2456_v35 = vmul.f32 %v2454_v13, %v2426_v63  ;;  %v3013_v8 = vmov 1966171168   ;;  %s2917_s0 = scalar_lea.vmem %s2548_s9, 1024  ;;  %p2922_p10 = scmp.lt.s32.totalorder %s2548_s9, %s2548_s9 }
 0x4c7   :  { %v2418_v5 = vadd.f32 %v2416_v57, %v2379_v37  ;;  %v2419_v6 = vadd.f32 %v2417_v39, %v2380_v7  ;;  %v2485_v30 = vunpack.c.l.s4 %v3013_v8  ;;  %p2918_p9 = scmp.ne.s32.totalorder %s2548_s9, %s2917_s0  ;;  %p2923_p11 = scmp.lt.s32.totalorder %s2917_s0, %s2917_s0 }
 0x4c9   :  { %v2457_v31 = vadd.f32 %v2455_v40, %v2418_v5  ;;  %v2458_v60 = vadd.f32 %v2456_v35, %v2419_v6  ;;  %v2486_v36 = vunpack.c.0.s8 %v2485_v30  ;;  %p2924_p12 = por %p2923_p11, %p2922_p10 }
 0x4cb   :  { %v2461_v16 = vrot.slane %v2457_v31, 2  ;;  %v2462_v22 = vrot.slane %v2458_v60, 2  ;;  %v2489_v0 = vsub.s32 %v2486_v36, %v3182_v26  ;;  %p2925_p13 = pnand %p2924_p12, %p2918_p9 }
 0x4cd   :  { %v2465_v18 = vadd.f32 %v2461_v16, %v2457_v31  ;;  %v2466_v29 = vadd.f32 %v2462_v22, %v2458_v60 }
 0x4cf   :  { %v2469_v46 = vadd.f32 %v2468_v45, %v2465_v18  ;;  %v2470_v53 = vadd.f32 %v2468_v45, %v2466_v29 }
 0x4d1   :  { %v2471_v54 = vsub.f32 0.0, %v2469_v46  ;;  %v2472_v21 = vsub.f32 0.0, %v2470_v53 }
 0x4d3   :  { %v2473_v44 = vmul.f32 1.442695, %v2471_v54  ;;  %v2475_v28 = vmul.f32 1.442695, %v2472_v21 }
 0x4d5   :  { %2767 = vpow2.f32 %v2473_v44 }
 0x4d6   :  { %2769 = vpow2.f32 %v2475_v28 }
 0x4df   :  { %v2768_v25 = vpop.eup %2767 }
 0x4e0   :  { %v2770_v52 = vpop.eup %2769  ;;  %v2477_v3 = vadd.f32 1.0, %v2768_v25 }
 0x4e1   :  { %v2478_v41 = vadd.f32 1.0, %v2770_v52 }
 0x4e2   :  { %2771 = vrcp.f32 %v2477_v3 }
 0x4e3   :  { %2773 = vrcp.f32 %v2478_v41 }
 0x4ec   :  { %v2772_v55 = vpop.eup %2771 }
 0x4ed   :  { %v2774_v2 = vpop.eup %2773 }
 0x4ee   :  { %v2483_v10 = vcombine.low %v2772_v55, %v2774_v2 }
 0x4f0   :  { %v2490_v59 = vrot.slane %v2483_v10, %v2489_v0 }
 0x4f2   :  { %v2491_v61 = vcombine.high %v2490_v59, %v2490_v59  ;;  %v2498_v58 = vrot.slane %v2490_v59, %v2489_v0 }
 0x4f4   :  { %v2505_v4 = vrot.slane %v2491_v61, %v2489_v0  ;;  %v2509_v27 = vrot.slane %v2498_v58, %v3192_v14  ;;  %v2513_v50 = vrot.slane %v2498_v58, %v6379_v20 }
 0x4f6   :  { %v2517_v47 = vrot.slane %v2505_v4, %v3192_v14  ;;  %v2521_v49 = vrot.slane %v2505_v4, %v6379_v20  ;;  %v2526_v17 = vmul.f32 %v2509_v27, %v6380_v19  ;;  %v2527_v26 = vmul.f32 %v2513_v50, %v6381_v42 }
 0x4f7   :  { %v2528_v15 = vmul.f32 %v2509_v27, %v6382_v34  ;;  %v2529_v11 = vmul.f32 %v2513_v50, %v6383_v38 }
 0x4f8   :  { %v2530_v48 = vmul.f32 %v2517_v47, %v6384_v24  ;;  %v2531_v12 = vmul.f32 %v2521_v49, %v6385_v33  ;;  %v2532_v9 = vmul.f32 %v2517_v47, %v6386_v51  ;;  %v2533_v32 = vmul.f32 %v2521_v49, %v6387_v23  ;;  %2534 = vst [vmem:[#allocation16] sm:$0xff] %v2526_v17 }
 0x4f9   :  { %2535 = vst [vmem:[#allocation16 + $0x8] sm:$0xff] %v2527_v26  ;;  %2536 = vst [vmem:[#allocation16 + $0x10] sm:$0xff] %v2528_v15 }
 0x4fa   :  { %2537 = vst [vmem:[#allocation16 + $0x18] sm:$0xff] %v2529_v11  ;;  %2538 = vst [vmem:[#allocation16 + $0x20] sm:$0xff] %v2530_v48 }
 0x4fb   :  { %2539 = vst [vmem:[#allocation16 + $0x28] sm:$0xff] %v2531_v12  ;;  %2540 = vst [vmem:[#allocation16 + $0x30] sm:$0xff] %v2532_v9 }
 0x4fc   :  { %2541 = vst [vmem:[#allocation16 + $0x38] sm:$0xff] %v2533_v32 }
 0x4fd   :  { %2928 = shalt.err (!%p2925_p13)
}
 0x4fe   :  { %s2929_s25 = scalar_lea.hbm %s5848_s8, 1024 }
 0x4ff   :  { %p2930_p0 = scmp.ne.s32.totalorder %s5848_s8, %s2929_s25  ;;  %p2933_p1 = scmp.lt.u32.totalorder %s2929_s25, %s5848_s8 }
 0x501   :  { %p2935_p2 = pnand %p2933_p1, %p2930_p0 }
 0x503   :  { %2938 = shalt.err (!%p2935_p2)
}
 0x504   :  { %2553 = dma.vmem_to_hbm [thread:$0]  %s2548_s9, 1024, %s5848_s8, [#allocation5], %s2956_s3, %s2956_s3, %s2957_s18  }
 0x505   :  { %2949 = dma.done.wait [#allocation5], 1024  }
 0x506   :  { %2950 = vsyncadd [#allocation5], 4294966272 }
 0x507   :  { %2557 = vsyncpa [#allocation4], 1 }
 0x508   :  { %2558 = vsyncpa [#allocation8], 1 }
 0x509   :  { %2559 = vsyncpa [#allocation11], 1 }
 0x50a   :  { %2560 = vsyncpa [#allocation14], 1 }
 0x50b   :  { %2561 = vsyncpa [#allocation5], 1 }
 0x50c   :  { %2562 = vsyncpa [#allocation6], 1 }

</bundles_post_ra>
